<compile_context>
chip_gen: v5e
topology: v5e:2x2
jax: 0.10.0
libtpu: 0.0.40
codegen_flags: <defaults>
</compile_context>

<pallas_src>
import jax
import jax.numpy as jnp
from jax import lax
from jax.experimental import pallas as pl
from jax.experimental.pallas import tpu as pltpu

# dtype fed to the MXU (accumulation is always f32).
MXU_DTYPE = jnp.bfloat16

# NatureCNN conv stack: (out_channels, kernel, stride), padding=0 everywhere.
_CONV_CFG = [
    (32, 8, 4),
    (64, 4, 2),
    (64, 3, 1),
]


def _round_up(x, m):
    return ((x + m - 1) // m) * m


# ----------------------------- Pallas kernel --------------------------------


def _matmul_bias_relu_kernel(x_ref, w_ref, b_ref, o_ref):
    """out = relu(x @ w + b); x:(TM,K) w:(K,Cout) b:(1,Cout) out:(TM,Cout)."""
    acc = jnp.dot(x_ref[...], w_ref[...], preferred_element_type=jnp.float32)
    acc = jnp.maximum(acc + b_ref[...], 0.0)
    o_ref[...] = acc.astype(o_ref.dtype)


def matmul_bias_relu_pallas(x, w, b, *, out_dtype=jnp.float32, tm_cap=512):
    """Tiled (over M) fused matmul + bias + ReLU.

    K and Cout stay fully VMEM-resident (K <= a few thousand for NatureCNN);
    the grid pipelines the dominant (TM, K) activation stream.
    """
    M, K = x.shape
    Cout = w.shape[1]

    tm = min(tm_cap, _round_up(M, 128))        # mult. of 128: safe for any dtype
    m_pad = _round_up(M, tm)
    if m_pad != M:
        x = jnp.pad(x, ((0, m_pad - M), (0, 0)))

    grid = (m_pad // tm,)
    out = pl.pallas_call(
        _matmul_bias_relu_kernel,
        out_shape=jax.ShapeDtypeStruct((m_pad, Cout), out_dtype),
        grid_spec=pltpu.PrefetchScalarGridSpec(
            num_scalar_prefetch=0,
            grid=grid,
            in_specs=[
                pl.BlockSpec((tm, K), lambda i: (i, 0)),       # activations
                pl.BlockSpec((K, Cout), lambda i: (0, 0)),     # weights (resident)
                pl.BlockSpec((1, Cout), lambda i: (0, 0)),     # bias (f32)
            ],
            out_specs=pl.BlockSpec((tm, Cout), lambda i: (i, 0)),
        ),
        compiler_params=pltpu.CompilerParams(
            dimension_semantics=("parallel",)),   # 2 TCs on v7x
    )(x, w, b.reshape(1, Cout).astype(jnp.float32))

    return out[:M] if m_pad != M else out


# ------------------------------ conv wrapper ---------------------------------


def _im2col(x, kh, kw, sh, sw):
    """NHWC 'VALID' patches -> (N*Ho*Wo, kh*kw*C), features ordered (ky,kx,c)."""
    n, h, w, c = x.shape
    ho = (h - kh) // sh + 1
    wo = (w - kw) // sw + 1
    cols = []
    for ky in range(kh):
        for kx in range(kw):
            cols.append(x[:, ky:ky + sh * ho:sh, kx:kx + sw * wo:sw, :])
    patches = jnp.concatenate(cols, axis=-1)           # (N, Ho, Wo, kh*kw*C)
    return patches.reshape(n * ho * wo, kh * kw * c), (n, ho, wo)


def conv_relu_pallas(x_nhwc, w_hwio, b, *, stride):
    """conv2d(k, stride, pad=0) + bias + ReLU as one im2col matmul kernel."""
    kh, kw, cin, cout = w_hwio.shape
    xcol, (n, ho, wo) = _im2col(x_nhwc, kh, kw, stride, stride)
    y = matmul_bias_relu_pallas(
        xcol.astype(MXU_DTYPE),
        w_hwio.reshape(kh * kw * cin, cout).astype(MXU_DTYPE),
        b,
        out_dtype=MXU_DTYPE,          # bf16 activation stream between layers
    )
    return y.reshape(n, ho, wo, cout)


# ----------------------------- model forward ---------------------------------


def nature_cnn_forward(obs_nchw, params):
    x = jnp.transpose(obs_nchw, (0, 2, 3, 1))          # NCHW -> NHWC (C on lanes)
    for layer, (_, k, s) in zip(params["convs"], _CONV_CFG):
        x = conv_relu_pallas(x, layer["w"], layer["b"], stride=s)
    n = x.shape[0]
    feats = x.reshape(n, -1)     # NHWC flatten; NCHW permutation folded in lin_w
    return matmul_bias_relu_pallas(
        feats.astype(MXU_DTYPE),
        params["lin_w_nhwc"].astype(MXU_DTYPE),
        params["lin_b"],
        out_dtype=jnp.float32,
    )


# ----------------------------- params / reference ----------------------------


def init_params(key, obs_shape_hwc, output_dim=512):
    h, w, c = obs_shape_hwc
    cin, fh, fw = c, h, w
    convs = []
    for cout, k, s in _CONV_CFG:
        key, kw_, kb_ = jax.random.split(key, 3)
        scale = 1.0 / float(k * k * cin) ** 0.5
        wgt = jax.random.normal(kw_, (k, k, cin, cout), jnp.float32) * scale  # HWIO
        bias = jax.random.normal(kb_, (cout,), jnp.float32) * 0.05
        convs.append({"w": wgt, "b": bias})
        cin = cout
        fh = (fh - k) // s + 1
        fw = (fw - k) // s + 1
    hidden = cin * fh * fw
    key, k1, k2 = jax.random.split(key, 3)
    lin_w = jax.random.normal(k1, (hidden, output_dim), jnp.float32) / hidden ** 0.5
    lin_b = jax.random.normal(k2, (output_dim,), jnp.float32) * 0.05
    # Fold PyTorch's Flatten (C,H,W) row ordering into an NHWC-ordered copy once
    # at init so the Pallas path needs no runtime transpose before the linear.
    lin_w_nhwc = (lin_w.reshape(cin, fh, fw, output_dim)
                  .transpose(1, 2, 0, 3)
                  .reshape(hidden, output_dim))
    return {"convs": convs, "lin_w": lin_w, "lin_w_nhwc": lin_w_nhwc,
            "lin_b": lin_b}


def forward_ref(obs_nchw, params):
    """XLA reference with matching bf16-in / f32-accumulate numerics and the
    original PyTorch NCHW flatten ordering (validates the weight-fold)."""
    x = jnp.transpose(obs_nchw, (0, 2, 3, 1)).astype(MXU_DTYPE)
    for layer, (_, k, s) in zip(params["convs"], _CONV_CFG):
        y = lax.conv_general_dilated(
            x, layer["w"].astype(MXU_DTYPE), (s, s), "VALID",
            dimension_numbers=("NHWC", "HWIO", "NHWC"),
            preferred_element_type=jnp.float32)
        x = jnp.maximum(y + layer["b"], 0.0).astype(MXU_DTYPE)
    n = x.shape[0]
    feats = jnp.transpose(x, (0, 3, 1, 2)).reshape(n, -1)   # PyTorch NCHW flatten
    y = jnp.dot(feats.astype(MXU_DTYPE), params["lin_w"].astype(MXU_DTYPE),
                preferred_element_type=jnp.float32)
    return jnp.maximum(y + params["lin_b"], 0.0)


# ---------------------------------- main --------------------------------------


if __name__ == "__main__":
    key = jax.random.PRNGKey(0)
    kp, kx = jax.random.split(key)

    # Small-but-valid NatureCNN input: (H, W, C) obs space, NCHW batch.
    N, C, H, W = 2, 4, 52, 52            # conv stack: 52 -> 12 -> 5 -> 3
    output_dim = 512
    params = init_params(kp, (H, W, C), output_dim)

    obs = jax.random.normal(kx, (N, C, H, W), jnp.float32)

    out = jax.jit(nature_cnn_forward)(obs, params)
    out = jax.block_until_ready(out)
    assert out.shape == (N, output_dim), out.shape

    ref = forward_ref(obs, params)
    if not bool(jnp.allclose(out, ref, rtol=2e-2, atol=2e-2)):
        err = float(jnp.max(jnp.abs(out - ref)))
        raise AssertionError(f"Pallas output does not match reference (max err {err})")

    print("KERNEL_OK")
</pallas_src>

<mosaic_0001>
module attributes {stable_mosaic.version = 11 : i64} {
  func.func @_matmul_bias_relu_kernel(%arg0: i32, %arg1: memref<384x256xbf16, #tpu.memory_space<vmem>>, %arg2: memref<256x32xbf16, #tpu.memory_space<vmem>>, %arg3: memref<1x32xf32, #tpu.memory_space<vmem>>, %arg4: memref<384x32xbf16, #tpu.memory_space<vmem>>) attributes {dimension_semantics = [#tpu.dimension_semantics<parallel>], iteration_bounds = array<i64: 1>, scalar_prefetch = 0 : i64, scratch_operands = 0 : i64, tpu.core_type = #tpu.core_type<tc>, window_params = [{transform_indices = @transform_0, window_bounds = array<i64: 384, 256>}, {pipeline_mode = #tpu.pipeline_mode<synchronous>, transform_indices = @transform_1, window_bounds = array<i64: 256, 32>}, {pipeline_mode = #tpu.pipeline_mode<synchronous>, transform_indices = @transform_2, window_bounds = array<i64: 1, 32>}, {transform_indices = @transform_3, window_bounds = array<i64: 384, 32>}]} {
    %c0 = arith.constant 0 : index
    %c0_0 = arith.constant 0 : index
    %0 = vector.load %arg1[%c0, %c0_0] : memref<384x256xbf16, #tpu.memory_space<vmem>>, vector<384x256xbf16>
    %c0_1 = arith.constant 0 : index
    %c0_2 = arith.constant 0 : index
    %1 = vector.load %arg2[%c0_1, %c0_2] : memref<256x32xbf16, #tpu.memory_space<vmem>>, vector<256x32xbf16>
    %cst = arith.constant dense<0.000000e+00> : vector<384x32xf32>
    %2 = tpu.matmul %0, %1, %cst {dimension_numbers = #tpu.dot_dimension_numbers<[1], [0], [0], [1], [0, 0, 1, 1], [], []>} : vector<384x256xbf16>, vector<256x32xbf16>, vector<384x32xf32> -> vector<384x32xf32>
    %c0_3 = arith.constant 0 : index
    %c0_4 = arith.constant 0 : index
    %3 = vector.load %arg3[%c0_3, %c0_4] : memref<1x32xf32, #tpu.memory_space<vmem>>, vector<1x32xf32>
    %4 = vector.broadcast %3 : vector<1x32xf32> to vector<384x32xf32>
    %5 = arith.addf %2, %4 : vector<384x32xf32>
    %cst_5 = arith.constant 0.000000e+00 : f32
    %6 = vector.broadcast %cst_5 : f32 to vector<384x32xf32>
    %7 = arith.maximumf %5, %6 : vector<384x32xf32>
    %8 = arith.truncf %7 : vector<384x32xf32> to vector<384x32xbf16>
    %c0_6 = arith.constant 0 : index
    %c0_7 = arith.constant 0 : index
    %9 = vector.load %arg4[%c0_6, %c0_7] : memref<384x32xbf16, #tpu.memory_space<vmem>>, vector<384x32xbf16>
    tpu.vector_store %arg4[%c0_6, %c0_7], %8 {strides = array<i32>} : memref<384x32xbf16, #tpu.memory_space<vmem>>, vector<384x32xbf16>,
    return
  }
  func.func @transform_0(%arg0: i32) -> (i32, i32) {
    %c0_i32 = arith.constant 0 : i32
    %c0_i32_0 = arith.constant 0 : i32
    return %arg0, %c0_i32 : i32, i32
  }
  func.func @transform_1(%arg0: i32) -> (i32, i32) {
    %c0_i32 = arith.constant 0 : i32
    %c0_i32_0 = arith.constant 0 : i32
    %c0_i32_1 = arith.constant 0 : i32
    return %c0_i32, %c0_i32_0 : i32, i32
  }
  func.func @transform_2(%arg0: i32) -> (i32, i32) {
    %c0_i32 = arith.constant 0 : i32
    %c0_i32_0 = arith.constant 0 : i32
    %c0_i32_1 = arith.constant 0 : i32
    return %c0_i32, %c0_i32_0 : i32, i32
  }
  func.func @transform_3(%arg0: i32) -> (i32, i32) {
    %c0_i32 = arith.constant 0 : i32
    %c0_i32_0 = arith.constant 0 : i32
    return %arg0, %c0_i32 : i32, i32
  }
}

module attributes {stable_mosaic.version = 11 : i64} {
  func.func @_matmul_bias_relu_kernel(%arg0: i32, %arg1: memref<128x512xbf16, #tpu.memory_space<vmem>>, %arg2: memref<512x64xbf16, #tpu.memory_space<vmem>>, %arg3: memref<1x64xf32, #tpu.memory_space<vmem>>, %arg4: memref<128x64xbf16, #tpu.memory_space<vmem>>) attributes {dimension_semantics = [#tpu.dimension_semantics<parallel>], iteration_bounds = array<i64: 1>, scalar_prefetch = 0 : i64, scratch_operands = 0 : i64, tpu.core_type = #tpu.core_type<tc>, window_params = [{transform_indices = @transform_0, window_bounds = array<i64: 128, 512>}, {pipeline_mode = #tpu.pipeline_mode<synchronous>, transform_indices = @transform_1, window_bounds = array<i64: 512, 64>}, {pipeline_mode = #tpu.pipeline_mode<synchronous>, transform_indices = @transform_2, window_bounds = array<i64: 1, 64>}, {transform_indices = @transform_3, window_bounds = array<i64: 128, 64>}]} {
    %c0 = arith.constant 0 : index
    %c0_0 = arith.constant 0 : index
    %0 = vector.load %arg1[%c0, %c0_0] : memref<128x512xbf16, #tpu.memory_space<vmem>>, vector<128x512xbf16>
    %c0_1 = arith.constant 0 : index
    %c0_2 = arith.constant 0 : index
    %1 = vector.load %arg2[%c0_1, %c0_2] : memref<512x64xbf16, #tpu.memory_space<vmem>>, vector<512x64xbf16>
    %cst = arith.constant dense<0.000000e+00> : vector<128x64xf32>
    %2 = tpu.matmul %0, %1, %cst {dimension_numbers = #tpu.dot_dimension_numbers<[1], [0], [0], [1], [0, 0, 1, 1], [], []>} : vector<128x512xbf16>, vector<512x64xbf16>, vector<128x64xf32> -> vector<128x64xf32>
    %c0_3 = arith.constant 0 : index
    %c0_4 = arith.constant 0 : index
    %3 = vector.load %arg3[%c0_3, %c0_4] : memref<1x64xf32, #tpu.memory_space<vmem>>, vector<1x64xf32>
    %4 = vector.broadcast %3 : vector<1x64xf32> to vector<128x64xf32>
    %5 = arith.addf %2, %4 : vector<128x64xf32>
    %cst_5 = arith.constant 0.000000e+00 : f32
    %6 = vector.broadcast %cst_5 : f32 to vector<128x64xf32>
    %7 = arith.maximumf %5, %6 : vector<128x64xf32>
    %8 = arith.truncf %7 : vector<128x64xf32> to vector<128x64xbf16>
    %c0_6 = arith.constant 0 : index
    %c0_7 = arith.constant 0 : index
    %9 = vector.load %arg4[%c0_6, %c0_7] : memref<128x64xbf16, #tpu.memory_space<vmem>>, vector<128x64xbf16>
    tpu.vector_store %arg4[%c0_6, %c0_7], %8 {strides = array<i32>} : memref<128x64xbf16, #tpu.memory_space<vmem>>, vector<128x64xbf16>,
    return
  }
  func.func @transform_0(%arg0: i32) -> (i32, i32) {
    %c0_i32 = arith.constant 0 : i32
    %c0_i32_0 = arith.constant 0 : i32
    return %arg0, %c0_i32 : i32, i32
  }
  func.func @transform_1(%arg0: i32) -> (i32, i32) {
    %c0_i32 = arith.constant 0 : i32
    %c0_i32_0 = arith.constant 0 : i32
    %c0_i32_1 = arith.constant 0 : i32
    return %c0_i32, %c0_i32_0 : i32, i32
  }
  func.func @transform_2(%arg0: i32) -> (i32, i32) {
    %c0_i32 = arith.constant 0 : i32
    %c0_i32_0 = arith.constant 0 : i32
    %c0_i32_1 = arith.constant 0 : i32
    return %c0_i32, %c0_i32_0 : i32, i32
  }
  func.func @transform_3(%arg0: i32) -> (i32, i32) {
    %c0_i32 = arith.constant 0 : i32
    %c0_i32_0 = arith.constant 0 : i32
    return %arg0, %c0_i32 : i32, i32
  }
}

module attributes {stable_mosaic.version = 11 : i64} {
  func.func @_matmul_bias_relu_kernel(%arg0: i32, %arg1: memref<128x576xbf16, #tpu.memory_space<vmem>>, %arg2: memref<576x64xbf16, #tpu.memory_space<vmem>>, %arg3: memref<1x64xf32, #tpu.memory_space<vmem>>, %arg4: memref<128x64xbf16, #tpu.memory_space<vmem>>) attributes {dimension_semantics = [#tpu.dimension_semantics<parallel>], iteration_bounds = array<i64: 1>, scalar_prefetch = 0 : i64, scratch_operands = 0 : i64, tpu.core_type = #tpu.core_type<tc>, window_params = [{transform_indices = @transform_0, window_bounds = array<i64: 128, 576>}, {pipeline_mode = #tpu.pipeline_mode<synchronous>, transform_indices = @transform_1, window_bounds = array<i64: 576, 64>}, {pipeline_mode = #tpu.pipeline_mode<synchronous>, transform_indices = @transform_2, window_bounds = array<i64: 1, 64>}, {transform_indices = @transform_3, window_bounds = array<i64: 128, 64>}]} {
    %c0 = arith.constant 0 : index
    %c0_0 = arith.constant 0 : index
    %0 = vector.load %arg1[%c0, %c0_0] : memref<128x576xbf16, #tpu.memory_space<vmem>>, vector<128x576xbf16>
    %c0_1 = arith.constant 0 : index
    %c0_2 = arith.constant 0 : index
    %1 = vector.load %arg2[%c0_1, %c0_2] : memref<576x64xbf16, #tpu.memory_space<vmem>>, vector<576x64xbf16>
    %cst = arith.constant dense<0.000000e+00> : vector<128x64xf32>
    %2 = tpu.matmul %0, %1, %cst {dimension_numbers = #tpu.dot_dimension_numbers<[1], [0], [0], [1], [0, 0, 1, 1], [], []>} : vector<128x576xbf16>, vector<576x64xbf16>, vector<128x64xf32> -> vector<128x64xf32>
    %c0_3 = arith.constant 0 : index
    %c0_4 = arith.constant 0 : index
    %3 = vector.load %arg3[%c0_3, %c0_4] : memref<1x64xf32, #tpu.memory_space<vmem>>, vector<1x64xf32>
    %4 = vector.broadcast %3 : vector<1x64xf32> to vector<128x64xf32>
    %5 = arith.addf %2, %4 : vector<128x64xf32>
    %cst_5 = arith.constant 0.000000e+00 : f32
    %6 = vector.broadcast %cst_5 : f32 to vector<128x64xf32>
    %7 = arith.maximumf %5, %6 : vector<128x64xf32>
    %8 = arith.truncf %7 : vector<128x64xf32> to vector<128x64xbf16>
    %c0_6 = arith.constant 0 : index
    %c0_7 = arith.constant 0 : index
    %9 = vector.load %arg4[%c0_6, %c0_7] : memref<128x64xbf16, #tpu.memory_space<vmem>>, vector<128x64xbf16>
    tpu.vector_store %arg4[%c0_6, %c0_7], %8 {strides = array<i32>} : memref<128x64xbf16, #tpu.memory_space<vmem>>, vector<128x64xbf16>,
    return
  }
  func.func @transform_0(%arg0: i32) -> (i32, i32) {
    %c0_i32 = arith.constant 0 : i32
    %c0_i32_0 = arith.constant 0 : i32
    return %arg0, %c0_i32 : i32, i32
  }
  func.func @transform_1(%arg0: i32) -> (i32, i32) {
    %c0_i32 = arith.constant 0 : i32
    %c0_i32_0 = arith.constant 0 : i32
    %c0_i32_1 = arith.constant 0 : i32
    return %c0_i32, %c0_i32_0 : i32, i32
  }
  func.func @transform_2(%arg0: i32) -> (i32, i32) {
    %c0_i32 = arith.constant 0 : i32
    %c0_i32_0 = arith.constant 0 : i32
    %c0_i32_1 = arith.constant 0 : i32
    return %c0_i32, %c0_i32_0 : i32, i32
  }
  func.func @transform_3(%arg0: i32) -> (i32, i32) {
    %c0_i32 = arith.constant 0 : i32
    %c0_i32_0 = arith.constant 0 : i32
    return %arg0, %c0_i32 : i32, i32
  }
}

module attributes {stable_mosaic.version = 11 : i64} {
  func.func @_matmul_bias_relu_kernel(%arg0: i32, %arg1: memref<128x576xbf16, #tpu.memory_space<vmem>>, %arg2: memref<576x512xbf16, #tpu.memory_space<vmem>>, %arg3: memref<1x512xf32, #tpu.memory_space<vmem>>, %arg4: memref<128x512xf32, #tpu.memory_space<vmem>>) attributes {dimension_semantics = [#tpu.dimension_semantics<parallel>], iteration_bounds = array<i64: 1>, scalar_prefetch = 0 : i64, scratch_operands = 0 : i64, tpu.core_type = #tpu.core_type<tc>, window_params = [{transform_indices = @transform_0, window_bounds = array<i64: 128, 576>}, {pipeline_mode = #tpu.pipeline_mode<synchronous>, transform_indices = @transform_1, window_bounds = array<i64: 576, 512>}, {pipeline_mode = #tpu.pipeline_mode<synchronous>, transform_indices = @transform_2, window_bounds = array<i64: 1, 512>}, {transform_indices = @transform_3, window_bounds = array<i64: 128, 512>}]} {
    %c0 = arith.constant 0 : index
    %c0_0 = arith.constant 0 : index
    %0 = vector.load %arg1[%c0, %c0_0] : memref<128x576xbf16, #tpu.memory_space<vmem>>, vector<128x576xbf16>
    %c0_1 = arith.constant 0 : index
    %c0_2 = arith.constant 0 : index
    %1 = vector.load %arg2[%c0_1, %c0_2] : memref<576x512xbf16, #tpu.memory_space<vmem>>, vector<576x512xbf16>
    %cst = arith.constant dense<0.000000e+00> : vector<128x512xf32>
    %2 = tpu.matmul %0, %1, %cst {dimension_numbers = #tpu.dot_dimension_numbers<[1], [0], [0], [1], [0, 0, 1, 1], [], []>} : vector<128x576xbf16>, vector<576x512xbf16>, vector<128x512xf32> -> vector<128x512xf32>
    %c0_3 = arith.constant 0 : index
    %c0_4 = arith.constant 0 : index
    %3 = vector.load %arg3[%c0_3, %c0_4] : memref<1x512xf32, #tpu.memory_space<vmem>>, vector<1x512xf32>
    %4 = vector.broadcast %3 : vector<1x512xf32> to vector<128x512xf32>
    %5 = arith.addf %2, %4 : vector<128x512xf32>
    %cst_5 = arith.constant 0.000000e+00 : f32
    %6 = vector.broadcast %cst_5 : f32 to vector<128x512xf32>
    %7 = arith.maximumf %5, %6 : vector<128x512xf32>
    %c0_6 = arith.constant 0 : index
    %c0_7 = arith.constant 0 : index
    %8 = vector.load %arg4[%c0_6, %c0_7] : memref<128x512xf32, #tpu.memory_space<vmem>>, vector<128x512xf32>
    tpu.vector_store %arg4[%c0_6, %c0_7], %7 {strides = array<i32>} : memref<128x512xf32, #tpu.memory_space<vmem>>, vector<128x512xf32>,
    return
  }
  func.func @transform_0(%arg0: i32) -> (i32, i32) {
    %c0_i32 = arith.constant 0 : i32
    %c0_i32_0 = arith.constant 0 : i32
    return %arg0, %c0_i32 : i32, i32
  }
  func.func @transform_1(%arg0: i32) -> (i32, i32) {
    %c0_i32 = arith.constant 0 : i32
    %c0_i32_0 = arith.constant 0 : i32
    %c0_i32_1 = arith.constant 0 : i32
    return %c0_i32, %c0_i32_0 : i32, i32
  }
  func.func @transform_2(%arg0: i32) -> (i32, i32) {
    %c0_i32 = arith.constant 0 : i32
    %c0_i32_0 = arith.constant 0 : i32
    %c0_i32_1 = arith.constant 0 : i32
    return %c0_i32, %c0_i32_0 : i32, i32
  }
  func.func @transform_3(%arg0: i32) -> (i32, i32) {
    %c0_i32 = arith.constant 0 : i32
    %c0_i32_0 = arith.constant 0 : i32
    return %arg0, %c0_i32 : i32, i32
  }
}

</mosaic_0001>

<bundles_post_ra>
// kernel: nature_cnn_forward.4
= control target key start
LH: loop header
LB: loop body
LE: loop exit
PB: predicated region body
PF: predicated region fallthrough
CT: control target
= control target key end

     0   :  { %vm788_vm0 = vcmask 257024   ;;  %s1779_s1 = inlined_call_operand.vmem [shape: bf16[256,32], index: 1, kind: input, shape index: {}]   ;;  %s1780_s2 = inlined_call_operand.vmem [shape: f32[1,32], index: 2, kind: input, shape index: {}]   ;;  %s1781_s0 = inlined_call_operand.vmem [shape: bf16[384,256], index: 0, kind: input, shape index: {}]   ;;  %s1782_s3 = inlined_call_operand.vmem [shape: bf16[384,32], index: 3, kind: output, shape index: {}]  }
   0x1   :  { %v1152_v0 = vld [vmem:[%s1779_s1 + $0x38] sm:$0xff]  ;;  %v1151_v2 = vld [vmem:[%s1779_s1 + $0x30] sm:$0xff]  ;;  %v1150_v4 = vld [vmem:[%s1779_s1 + $0x28] sm:$0xff] }
   0x2   :  { %v1160_v1 = vld [vmem:[%s1779_s1 + $0x78] sm:$0xff]  ;;  %434 = vmatpush.bf16.msra.mxu0 %v1152_v0  ;;  %1161 = vmatpush.bf16.msra.mxu2 %v1152_v0  ;;  %v1159_v3 = vld [vmem:[%s1779_s1 + $0x70] sm:$0xff]  ;;  %v1158_v5 = vld [vmem:[%s1779_s1 + $0x68] sm:$0xff] }
   0x3   :  { %563 = vmatpush.bf16.msra.mxu1 %v1160_v1  ;;  %1169 = vmatpush.bf16.msra.mxu3 %v1160_v1  ;;  %v1149_v6 = vld [vmem:[%s1779_s1 + $0x20] sm:$0xff]  ;;  %v1148_v8 = vld [vmem:[%s1779_s1 + $0x18] sm:$0xff]  ;;  %v1147_v10 = vld [vmem:[%s1779_s1 + $0x10] sm:$0xff] }
   0x4   :  { %v1157_v7 = vld [vmem:[%s1779_s1 + $0x60] sm:$0xff]  ;;  %v1156_v9 = vld [vmem:[%s1779_s1 + $0x58] sm:$0xff]  ;;  %v1155_v11 = vld [vmem:[%s1779_s1 + $0x50] sm:$0xff] }
   0x5   :  { %v1146_v12 = vld [vmem:[%s1779_s1 + $0x8] sm:$0xff]  ;;  %v1145_v14 = vld [vmem:[%s1779_s1] sm:$0xff]  ;;  %v851_v28 = vld [vmem:[%s1781_s0 + $0x10] sm:$0xf] }
   0x6   :  { %435 = vmatpush.bf16.msra.mxu0 %v1151_v2  ;;  %1162 = vmatpush.bf16.msra.mxu2 %v1151_v2  ;;  %v1154_v13 = vld [vmem:[%s1779_s1 + $0x48] sm:$0xff]  ;;  %v1153_v15 = vld [vmem:[%s1779_s1 + $0x40] sm:$0xff]  ;;  %v1100_v29 = vld [vmem:[%s1781_s0 + $0x14] sm:$0xf0] }
   0x7   :  { %564 = vmatpush.bf16.msra.mxu1 %v1159_v3  ;;  %1170 = vmatpush.bf16.msra.mxu3 %v1159_v3  ;;  %v843_v16 = vld [vmem:[%s1781_s0] sm:$0xf]  ;;  %v1098_v17 = vld [vmem:[%s1781_s0 + $0x4] sm:$0xf0]  ;;  %v1097_v20 = vld [vmem:[%s1781_s0 + $0x4] sm:$0xf]  ;;  %v852_v36 = vor.u32 %v1100_v29, %v851_v28 }
   0x8   :  { %v939_v18 = vld [vmem:[%s1781_s0 + $0xc0] sm:$0xf]  ;;  %v1122_v19 = vld [vmem:[%s1781_s0 + $0xc4] sm:$0xf0]  ;;  %v845_v21 = vld [vmem:[%s1781_s0 + $0x8] sm:$0xf0]  ;;  %v844_v24 = vor.u32 %v1098_v17, %v843_v16 }
   0x9   :  { %v1121_v22 = vld [vmem:[%s1781_s0 + $0xc4] sm:$0xf]  ;;  %v941_v23 = vld [vmem:[%s1781_s0 + $0xc8] sm:$0xf0]  ;;  %v940_v25 = vor.u32 %v1122_v19, %v939_v18  ;;  %v848_v26 = vor.u32 %v1097_v20, %v845_v21  ;;  %v947_v30 = vld [vmem:[%s1781_s0 + $0xd0] sm:$0xf] }
   0xa   :  { %436 = vmatpush.bf16.msra.mxu0 %v1150_v4  ;;  %1163 = vmatpush.bf16.msra.mxu2 %v1150_v4  ;;  %v944_v27 = vor.u32 %v1121_v22, %v941_v23  ;;  %v1124_v31 = vld [vmem:[%s1781_s0 + $0xd4] sm:$0xf0]  ;;  %v1099_v32 = vld [vmem:[%s1781_s0 + $0x14] sm:$0xf]  ;;  %v853_v33 = vld [vmem:[%s1781_s0 + $0x18] sm:$0xf0] }
   0xb   :  { %565 = vmatpush.bf16.msra.mxu1 %v1158_v5  ;;  %1171 = vmatpush.bf16.msra.mxu3 %v1158_v5  ;;  %v1123_v34 = vld [vmem:[%s1781_s0 + $0xd4] sm:$0xf]  ;;  %v949_v35 = vld [vmem:[%s1781_s0 + $0xd8] sm:$0xf0]  ;;  %v948_v37 = vor.u32 %v1124_v31, %v947_v30  ;;  %v856_v38 = vor.u32 %v1099_v32, %v853_v33  ;;  %v859_v40 = vld [vmem:[%s1781_s0 + $0x20] sm:$0xf] }
   0xc   :  { %v952_v39 = vor.u32 %v1123_v34, %v949_v35  ;;  %v1102_v41 = vld [vmem:[%s1781_s0 + $0x24] sm:$0xf0]  ;;  %v955_v42 = vld [vmem:[%s1781_s0 + $0xe0] sm:$0xf]  ;;  %v1101_v44 = vld [vmem:[%s1781_s0 + $0x24] sm:$0xf] }
   0xd   :  { %v1126_v43 = vld [vmem:[%s1781_s0 + $0xe4] sm:$0xf0]  ;;  %v861_v45 = vld [vmem:[%s1781_s0 + $0x28] sm:$0xf0]  ;;  %v1125_v46 = vld [vmem:[%s1781_s0 + $0xe4] sm:$0xf]  ;;  %v860_v48 = vor.u32 %v1102_v41, %v859_v40 }
   0xe   :  { %437 = vmatpush.bf16.msra.mxu0 %v1149_v6  ;;  %1164 = vmatpush.bf16.msra.mxu2 %v1149_v6  ;;  %v957_v47 = vld [vmem:[%s1781_s0 + $0xe8] sm:$0xf0]  ;;  %v956_v49 = vor.u32 %v1126_v43, %v955_v42  ;;  %v864_v50 = vor.u32 %v1101_v44, %v861_v45  ;;  %v867_v52 = vld [vmem:[%s1781_s0 + $0x30] sm:$0xf]  ;;  %v1104_v53 = vld [vmem:[%s1781_s0 + $0x34] sm:$0xf0] }
   0xf   :  { %566 = vmatpush.bf16.msra.mxu1 %v1157_v7  ;;  %1172 = vmatpush.bf16.msra.mxu3 %v1157_v7  ;;  %v960_v51 = vor.u32 %v1125_v46, %v957_v47  ;;  %v963_v54 = vld [vmem:[%s1781_s0 + $0xf0] sm:$0xf]  ;;  %v1128_v55 = vld [vmem:[%s1781_s0 + $0xf4] sm:$0xf0]  ;;  %v1103_v56 = vld [vmem:[%s1781_s0 + $0x34] sm:$0xf]  ;;  %v868_v60 = vor.u32 %v1104_v53, %v867_v52 }
  0x10   :  { %v869_v57 = vld [vmem:[%s1781_s0 + $0x38] sm:$0xf0]  ;;  %v1127_v58 = vld [vmem:[%s1781_s0 + $0xf4] sm:$0xf]  ;;  %v964_v61 = vor.u32 %v1128_v55, %v963_v54  ;;  %v875_v0 = vld [vmem:[%s1781_s0 + $0x40] sm:$0xf] }
  0x11   :  { %v965_v59 = vld [vmem:[%s1781_s0 + $0xf8] sm:$0xf0]  ;;  %v872_v62 = vor.u32 %v1103_v56, %v869_v57  ;;  %v1106_v1 = vld [vmem:[%s1781_s0 + $0x44] sm:$0xf0]  ;;  %v971_v2 = vld [vmem:[%s1781_s0 + $0x100] sm:$0xf] }
  0x12   :  { %438 = vmatpush.bf16.msra.mxu0 %v1148_v8  ;;  %1165 = vmatpush.bf16.msra.mxu2 %v1148_v8  ;;  %v968_v63 = vor.u32 %v1127_v58, %v965_v59  ;;  %v1130_v3 = vld [vmem:[%s1781_s0 + $0x104] sm:$0xf0]  ;;  %v1105_v4 = vld [vmem:[%s1781_s0 + $0x44] sm:$0xf]  ;;  %v877_v5 = vld [vmem:[%s1781_s0 + $0x48] sm:$0xf0]  ;;  %v876_v8 = vor.u32 %v1106_v1, %v875_v0 }
  0x13   :  { %567 = vmatpush.bf16.msra.mxu1 %v1156_v9  ;;  %1173 = vmatpush.bf16.msra.mxu3 %v1156_v9  ;;  %v1129_v6 = vld [vmem:[%s1781_s0 + $0x104] sm:$0xf]  ;;  %v973_v7 = vld [vmem:[%s1781_s0 + $0x108] sm:$0xf0]  ;;  %v972_v9 = vor.u32 %v1130_v3, %v971_v2  ;;  %v1107_v16 = vld [vmem:[%s1781_s0 + $0x54] sm:$0xf] }
  0x14   :  { %v885_v17 = vld [vmem:[%s1781_s0 + $0x58] sm:$0xf0]  ;;  %v1131_v18 = vld [vmem:[%s1781_s0 + $0x114] sm:$0xf]  ;;  %v1109_v28 = vld [vmem:[%s1781_s0 + $0x64] sm:$0xf] }
  0x15   :  { %v981_v19 = vld [vmem:[%s1781_s0 + $0x118] sm:$0xf0]  ;;  %v888_v22 = vor.u32 %v1107_v16, %v885_v17  ;;  %v893_v29 = vld [vmem:[%s1781_s0 + $0x68] sm:$0xf0]  ;;  %v1133_v30 = vld [vmem:[%s1781_s0 + $0x124] sm:$0xf] }
  0x16   :  { %439 = vmatpush.bf16.msra.mxu0 %v1147_v10  ;;  %1166 = vmatpush.bf16.msra.mxu2 %v1147_v10  ;;  %v880_v10 = vor.u32 %v1105_v4, %v877_v5  ;;  %v984_v23 = vor.u32 %v1131_v18, %v981_v19  ;;  %v989_v31 = vld [vmem:[%s1781_s0 + $0x128] sm:$0xf0]  ;;  %v896_v34 = vor.u32 %v1109_v28, %v893_v29  ;;  %v1111_v40 = vld [vmem:[%s1781_s0 + $0x74] sm:$0xf]  ;;  %v901_v41 = vld [vmem:[%s1781_s0 + $0x78] sm:$0xf0] }
  0x17   :  { %568 = vmatpush.bf16.msra.mxu1 %v1155_v11  ;;  %1174 = vmatpush.bf16.msra.mxu3 %v1155_v11  ;;  %v976_v11 = vor.u32 %v1129_v6, %v973_v7  ;;  %v992_v35 = vor.u32 %v1133_v30, %v989_v31  ;;  %v1135_v42 = vld [vmem:[%s1781_s0 + $0x134] sm:$0xf]  ;;  %v997_v43 = vld [vmem:[%s1781_s0 + $0x138] sm:$0xf0]  ;;  %v904_v46 = vor.u32 %v1111_v40, %v901_v41  ;;  %v1138_v52 = vld [vmem:[%s1781_s0 + $0x144] sm:$0xf0] }
  0x18   :  { %v1000_v47 = vor.u32 %v1135_v42, %v997_v43  ;;  %v1113_v53 = vld [vmem:[%s1781_s0 + $0x84] sm:$0xf]  ;;  %v909_v54 = vld [vmem:[%s1781_s0 + $0x88] sm:$0xf0]  ;;  %v1115_v16 = vld [vmem:[%s1781_s0 + $0x94] sm:$0xf] }
  0x19   :  { %v1137_v55 = vld [vmem:[%s1781_s0 + $0x144] sm:$0xf]  ;;  %v1005_v56 = vld [vmem:[%s1781_s0 + $0x148] sm:$0xf0]  ;;  %v917_v17 = vld [vmem:[%s1781_s0 + $0x98] sm:$0xf0] }
  0x1a   :  { %440 = vmatpush.bf16.msra.mxu0 %v1146_v12  ;;  %1167 = vmatpush.bf16.msra.mxu2 %v1146_v12  ;;  %v883_v12 = vld [vmem:[%s1781_s0 + $0x50] sm:$0xf]  ;;  %v920_v29 = vor.u32 %v1115_v16, %v917_v17 }
  0x1b   :  { %569 = vmatpush.bf16.msra.mxu1 %v1154_v13  ;;  %1175 = vmatpush.bf16.msra.mxu3 %v1154_v13  ;;  %v1108_v13 = vld [vmem:[%s1781_s0 + $0x54] sm:$0xf0] }
  0x1c   :  { %v884_v20 = vor.u32 %v1108_v13, %v883_v12  ;;  %v1116_v13 = vld [vmem:[%s1781_s0 + $0x94] sm:$0xf0] }
  0x1e   :  { %441 = vmatpush.bf16.msra.mxu0 %v1145_v14  ;;  %1168 = vmatpush.bf16.msra.mxu2 %v1145_v14  ;;  %v979_v14 = vld [vmem:[%s1781_s0 + $0x110] sm:$0xf] }
  0x1f   :  { %570 = vmatpush.bf16.msra.mxu1 %v1153_v15  ;;  %1176 = vmatpush.bf16.msra.mxu3 %v1153_v15  ;;  %v1132_v15 = vld [vmem:[%s1781_s0 + $0x114] sm:$0xf0] }
  0x20   :  { %v980_v21 = vor.u32 %v1132_v15, %v979_v14  ;;  %v1011_v14 = vld [vmem:[%s1781_s0 + $0x150] sm:$0xf]  ;;  %v1140_v15 = vld [vmem:[%s1781_s0 + $0x154] sm:$0xf0] }
  0x21   :  { %442 = vmatmul.bf16.vlgmr.msra.gmra.mxu0 %v844_v24  ;;  %502 = vmatmul.bf16.vlgmr.msra.gmra.mxu2 %v940_v25  ;;  %v891_v24 = vld [vmem:[%s1781_s0 + $0x60] sm:$0xf]  ;;  %v1110_v25 = vld [vmem:[%s1781_s0 + $0x64] sm:$0xf0] }
  0x22   :  { %571 = vmatmul.bf16.vlgmr.msra.gmra.mxu1 %v848_v26  ;;  %631 = vmatmul.bf16.vlgmr.msra.gmra.mxu3 %v944_v27  ;;  %v987_v26 = vld [vmem:[%s1781_s0 + $0x120] sm:$0xf]  ;;  %v1134_v27 = vld [vmem:[%s1781_s0 + $0x124] sm:$0xf0]  ;;  %v892_v32 = vor.u32 %v1110_v25, %v891_v24 }
  0x23   :  { %v988_v33 = vor.u32 %v1134_v27, %v987_v26  ;;  %v1012_v27 = vor.u32 %v1140_v15, %v1011_v14 }
  0x31   :  { %447 = vmatmul.bf16.gmra.mxu0 %v852_v36  ;;  %507 = vmatmul.bf16.gmra.mxu2 %v948_v37  ;;  %v899_v36 = vld [vmem:[%s1781_s0 + $0x70] sm:$0xf]  ;;  %v1112_v37 = vld [vmem:[%s1781_s0 + $0x74] sm:$0xf0] }
  0x32   :  { %576 = vmatmul.bf16.gmra.mxu1 %v856_v38  ;;  %636 = vmatmul.bf16.gmra.mxu3 %v952_v39  ;;  %v995_v38 = vld [vmem:[%s1781_s0 + $0x130] sm:$0xf]  ;;  %v1136_v39 = vld [vmem:[%s1781_s0 + $0x134] sm:$0xf0]  ;;  %v900_v44 = vor.u32 %v1112_v37, %v899_v36 }
  0x33   :  { %v996_v45 = vor.u32 %v1136_v39, %v995_v38 }
  0x41   :  { %452 = vmatmul.bf16.gmra.mxu0 %v860_v48  ;;  %512 = vmatmul.bf16.gmra.mxu2 %v956_v49  ;;  %v1441_v48 = vld [vmem:[%s1780_s2] ss:$0 sm:$0xff] }
  0x42   :  { %581 = vmatmul.bf16.gmra.mxu1 %v864_v50  ;;  %641 = vmatmul.bf16.gmra.mxu3 %v960_v51  ;;  %v907_v49 = vld [vmem:[%s1781_s0 + $0x80] sm:$0xf]  ;;  %v1114_v50 = vld [vmem:[%s1781_s0 + $0x84] sm:$0xf0] }
  0x43   :  { %v1003_v51 = vld [vmem:[%s1781_s0 + $0x140] sm:$0xf]  ;;  %v908_v57 = vor.u32 %v1114_v50, %v907_v49  ;;  %v1118_v50 = vld [vmem:[%s1781_s0 + $0xa4] sm:$0xf0] }
  0x44   :  { %v1004_v58 = vor.u32 %v1138_v52, %v1003_v51  ;;  %v1019_v51 = vld [vmem:[%s1781_s0 + $0x160] sm:$0xf]  ;;  %v1142_v52 = vld [vmem:[%s1781_s0 + $0x164] sm:$0xf0] }
  0x51   :  { %457 = vmatmul.bf16.gmra.mxu0 %v868_v60  ;;  %517 = vmatmul.bf16.gmra.mxu2 %v964_v61  ;;  %v912_v60 = vor.u32 %v1113_v53, %v909_v54  ;;  %v1008_v61 = vor.u32 %v1137_v55, %v1005_v56  ;;  %v1117_v53 = vld [vmem:[%s1781_s0 + $0xa4] sm:$0xf]  ;;  %v925_v54 = vld [vmem:[%s1781_s0 + $0xa8] sm:$0xf0] }
  0x52   :  { %586 = vmatmul.bf16.gmra.mxu1 %v872_v62  ;;  %646 = vmatmul.bf16.gmra.mxu3 %v968_v63 }
  0x61   :  { %462 = vmatmul.bf16.gmra.mxu0 %v876_v8  ;;  %522 = vmatmul.bf16.gmra.mxu2 %v972_v9 }
  0x62   :  { %591 = vmatmul.bf16.gmra.mxu1 %v880_v10  ;;  %651 = vmatmul.bf16.gmra.mxu3 %v976_v11  ;;  %v915_v10 = vld [vmem:[%s1781_s0 + $0x90] sm:$0xf] }
  0x63   :  { %v916_v26 = vor.u32 %v1116_v13, %v915_v10 }
  0x71   :  { %467 = vmatmul.bf16.gmra.mxu0 %v884_v20  ;;  %527 = vmatmul.bf16.gmra.mxu2 %v980_v21  ;;  %v1139_v20 = vld [vmem:[%s1781_s0 + $0x154] sm:$0xf]  ;;  %v1013_v21 = vld [vmem:[%s1781_s0 + $0x158] sm:$0xf0] }
  0x72   :  { %596 = vmatmul.bf16.gmra.mxu1 %v888_v22  ;;  %656 = vmatmul.bf16.gmra.mxu3 %v984_v23  ;;  %v1016_v30 = vor.u32 %v1139_v20, %v1013_v21 }
  0x81   :  { %472 = vmatmul.bf16.gmra.mxu0 %v892_v32  ;;  %532 = vmatmul.bf16.gmra.mxu2 %v988_v33 }
  0x82   :  { %601 = vmatmul.bf16.gmra.mxu1 %v896_v34  ;;  %661 = vmatmul.bf16.gmra.mxu3 %v992_v35 }
  0x91   :  { %477 = vmatmul.bf16.gmra.mxu0 %v900_v44  ;;  %537 = vmatmul.bf16.gmra.mxu2 %v996_v45 }
  0x92   :  { %606 = vmatmul.bf16.gmra.mxu1 %v904_v46  ;;  %666 = vmatmul.bf16.gmra.mxu3 %v1000_v47  ;;  %v923_v46 = vld [vmem:[%s1781_s0 + $0xa0] sm:$0xf] }
  0x9e   :  { %v443_v59 = vpop.f32.mrf.mxu0 }
  0x9f   :  { %v444_v62 = vadd.f32 %v1441_v48, %v443_v59  ;;  %v572_v63 = vpop.f32.mrf.mxu1 }
  0xa1   :  { %v573_v0 = vadd.f32 %v572_v63, %v444_v62  ;;  %482 = vmatmul.bf16.gmra.mxu0 %v908_v57  ;;  %542 = vmatmul.bf16.gmra.mxu2 %v1004_v58  ;;  %v1141_v57 = vld [vmem:[%s1781_s0 + $0x164] sm:$0xf]  ;;  %v1021_v58 = vld [vmem:[%s1781_s0 + $0x168] sm:$0xf0]  ;;  %v924_v63 = vor.u32 %v1118_v50, %v923_v46 }
  0xa2   :  { %611 = vmatmul.bf16.gmra.mxu1 %v912_v60  ;;  %671 = vmatmul.bf16.gmra.mxu3 %v1008_v61 }
  0xa3   :  { %v692_v1 = vmax.f32 %v573_v0, 0.0  ;;  %v1020_v0 = vor.u32 %v1142_v52, %v1019_v51 }
  0xa4   :  { %v503_v2 = vpop.f32.mrf.mxu2 }
  0xa5   :  { %v740_v3 = vpack.c.bf16 %v692_v1, %v692_v1  ;;  %v504_v4 = vadd.f32 %v1441_v48, %v503_v2  ;;  %v632_v5 = vpop.f32.mrf.mxu3  ;;  %v928_v2 = vor.u32 %v1117_v53, %v925_v54 }
  0xa6   :  { %v445_v6 = vpop.f32.mrf.mxu0 }
  0xa7   :  { %789 = vst.msk [vmem:[%s1782_s3] sm:$0xf] %vm788_vm0, %v740_v3  ;;  %v633_v7 = vadd.f32 %v632_v5, %v504_v4  ;;  %v446_v8 = vadd.f32 %v1441_v48, %v445_v6  ;;  %v574_v9 = vpop.f32.mrf.mxu1  ;;  %v1024_v3 = vor.u32 %v1141_v57, %v1021_v58 }
  0xa9   :  { %v716_v11 = vmax.f32 %v633_v7, 0.0  ;;  %v575_v12 = vadd.f32 %v574_v9, %v446_v8 }
  0xab   :  { %v764_v18 = vpack.c.bf16 %v716_v11, %v716_v11  ;;  %v693_v19 = vmax.f32 %v575_v12, 0.0 }
  0xac   :  { %v505_v22 = vpop.f32.mrf.mxu2 }
  0xad   :  { %813 = vst.msk [vmem:[%s1782_s3 + $0x60] sm:$0xf] %vm788_vm0, %v764_v18  ;;  %v741_v23 = vpack.c.bf16 %v693_v19, %v693_v19  ;;  %v506_v24 = vadd.f32 %v1441_v48, %v505_v22  ;;  %v634_v25 = vpop.f32.mrf.mxu3  ;;  %v931_v19 = vld [vmem:[%s1781_s0 + $0xb0] sm:$0xf]  ;;  %v1120_v22 = vld [vmem:[%s1781_s0 + $0xb4] sm:$0xf0] }
  0xae   :  { %v448_v28 = vpop.f32.mrf.mxu0 }
  0xaf   :  { %790 = vst.msk [vmem:[%s1782_s3 + $0x4] sm:$0xf] %vm788_vm0, %v741_v23  ;;  %v635_v31 = vadd.f32 %v634_v25, %v506_v24  ;;  %v449_v32 = vadd.f32 %v1441_v48, %v448_v28  ;;  %v577_v33 = vpop.f32.mrf.mxu1  ;;  %v1027_v23 = vld [vmem:[%s1781_s0 + $0x170] sm:$0xf]  ;;  %v1144_v24 = vld [vmem:[%s1781_s0 + $0x174] sm:$0xf0] }
  0xb0   :  { %v1119_v25 = vld [vmem:[%s1781_s0 + $0xb4] sm:$0xf] }
  0xb1   :  { %v717_v34 = vmax.f32 %v635_v31, 0.0  ;;  %v578_v35 = vadd.f32 %v577_v33, %v449_v32  ;;  %487 = vmatmul.bf16.gmra.mxu0 %v916_v26  ;;  %547 = vmatmul.bf16.gmra.mxu2 %v1012_v27  ;;  %v933_v26 = vld [vmem:[%s1781_s0 + $0xb8] sm:$0xf0] }
  0xb2   :  { %616 = vmatmul.bf16.gmra.mxu1 %v920_v29  ;;  %676 = vmatmul.bf16.gmra.mxu3 %v1016_v30  ;;  %v1143_v29 = vld [vmem:[%s1781_s0 + $0x174] sm:$0xf]  ;;  %v1029_v30 = vld [vmem:[%s1781_s0 + $0x178] sm:$0xf0] }
  0xb3   :  { %v765_v36 = vpack.c.bf16 %v717_v34, %v717_v34  ;;  %v694_v37 = vmax.f32 %v578_v35, 0.0  ;;  %v932_v35 = vor.u32 %v1120_v22, %v931_v19 }
  0xb4   :  { %v508_v38 = vpop.f32.mrf.mxu2 }
  0xb5   :  { %814 = vst.msk [vmem:[%s1782_s3 + $0x64] sm:$0xf] %vm788_vm0, %v765_v36  ;;  %v742_v39 = vpack.c.bf16 %v694_v37, %v694_v37  ;;  %v509_v40 = vadd.f32 %v1441_v48, %v508_v38  ;;  %v637_v41 = vpop.f32.mrf.mxu3  ;;  %v1028_v36 = vor.u32 %v1144_v24, %v1027_v23  ;;  %v936_v38 = vor.u32 %v1119_v25, %v933_v26 }
  0xb6   :  { %v450_v42 = vpop.f32.mrf.mxu0 }
  0xb7   :  { %791 = vst.msk [vmem:[%s1782_s3 + $0x8] sm:$0xf] %vm788_vm0, %v742_v39  ;;  %v638_v43 = vadd.f32 %v637_v41, %v509_v40  ;;  %v451_v44 = vadd.f32 %v1441_v48, %v450_v42  ;;  %v579_v45 = vpop.f32.mrf.mxu1  ;;  %v1032_v39 = vor.u32 %v1143_v29, %v1029_v30 }
  0xb9   :  { %v718_v47 = vmax.f32 %v638_v43, 0.0  ;;  %v580_v49 = vadd.f32 %v579_v45, %v451_v44 }
  0xbb   :  { %v766_v55 = vpack.c.bf16 %v718_v47, %v718_v47  ;;  %v695_v56 = vmax.f32 %v580_v49, 0.0 }
  0xbc   :  { %v510_v59 = vpop.f32.mrf.mxu2 }
  0xbd   :  { %815 = vst.msk [vmem:[%s1782_s3 + $0x68] sm:$0xf] %vm788_vm0, %v766_v55  ;;  %v743_v60 = vpack.c.bf16 %v695_v56, %v695_v56  ;;  %v511_v61 = vadd.f32 %v1441_v48, %v510_v59  ;;  %v639_v62 = vpop.f32.mrf.mxu3 }
  0xbe   :  { %v453_v1 = vpop.f32.mrf.mxu0 }
  0xbf   :  { %792 = vst.msk [vmem:[%s1782_s3 + $0xc] sm:$0xf] %vm788_vm0, %v743_v60  ;;  %v640_v4 = vadd.f32 %v639_v62, %v511_v61  ;;  %v454_v5 = vadd.f32 %v1441_v48, %v453_v1  ;;  %v582_v6 = vpop.f32.mrf.mxu1 }
  0xc1   :  { %v719_v7 = vmax.f32 %v640_v4, 0.0  ;;  %v583_v8 = vadd.f32 %v582_v6, %v454_v5  ;;  %492 = vmatmul.bf16.gmra.mxu0 %v924_v63  ;;  %552 = vmatmul.bf16.gmra.mxu2 %v1020_v0 }
  0xc2   :  { %621 = vmatmul.bf16.gmra.mxu1 %v928_v2  ;;  %681 = vmatmul.bf16.gmra.mxu3 %v1024_v3 }
  0xc3   :  { %v767_v9 = vpack.c.bf16 %v719_v7, %v719_v7  ;;  %v696_v10 = vmax.f32 %v583_v8, 0.0 }
  0xc4   :  { %v513_v11 = vpop.f32.mrf.mxu2 }
  0xc5   :  { %816 = vst.msk [vmem:[%s1782_s3 + $0x6c] sm:$0xf] %vm788_vm0, %v767_v9  ;;  %v744_v12 = vpack.c.bf16 %v696_v10, %v696_v10  ;;  %v514_v13 = vadd.f32 %v1441_v48, %v513_v11  ;;  %v642_v14 = vpop.f32.mrf.mxu3 }
  0xc6   :  { %v455_v15 = vpop.f32.mrf.mxu0 }
  0xc7   :  { %793 = vst.msk [vmem:[%s1782_s3 + $0x10] sm:$0xf] %vm788_vm0, %v744_v12  ;;  %v643_v16 = vadd.f32 %v642_v14, %v514_v13  ;;  %v456_v17 = vadd.f32 %v1441_v48, %v455_v15  ;;  %v584_v18 = vpop.f32.mrf.mxu1 }
  0xc9   :  { %v720_v20 = vmax.f32 %v643_v16, 0.0  ;;  %v585_v21 = vadd.f32 %v584_v18, %v456_v17 }
  0xcb   :  { %v768_v27 = vpack.c.bf16 %v720_v20, %v720_v20  ;;  %v697_v28 = vmax.f32 %v585_v21, 0.0 }
  0xcc   :  { %v515_v31 = vpop.f32.mrf.mxu2 }
  0xcd   :  { %817 = vst.msk [vmem:[%s1782_s3 + $0x70] sm:$0xf] %vm788_vm0, %v768_v27  ;;  %v745_v32 = vpack.c.bf16 %v697_v28, %v697_v28  ;;  %v516_v33 = vadd.f32 %v1441_v48, %v515_v31  ;;  %v644_v34 = vpop.f32.mrf.mxu3 }
  0xce   :  { %v458_v37 = vpop.f32.mrf.mxu0 }
  0xcf   :  { %794 = vst.msk [vmem:[%s1782_s3 + $0x14] sm:$0xf] %vm788_vm0, %v745_v32  ;;  %v645_v40 = vadd.f32 %v644_v34, %v516_v33  ;;  %v459_v41 = vadd.f32 %v1441_v48, %v458_v37  ;;  %v587_v42 = vpop.f32.mrf.mxu1 }
  0xd1   :  { %v721_v43 = vmax.f32 %v645_v40, 0.0  ;;  %v588_v44 = vadd.f32 %v587_v42, %v459_v41  ;;  %497 = vmatmul.bf16.gmra.mxu0 %v932_v35  ;;  %557 = vmatmul.bf16.gmra.mxu2 %v1028_v36 }
  0xd2   :  { %626 = vmatmul.bf16.gmra.mxu1 %v936_v38  ;;  %686 = vmatmul.bf16.gmra.mxu3 %v1032_v39 }
  0xd3   :  { %v769_v45 = vpack.c.bf16 %v721_v43, %v721_v43  ;;  %v698_v46 = vmax.f32 %v588_v44, 0.0 }
  0xd4   :  { %v518_v47 = vpop.f32.mrf.mxu2 }
  0xd5   :  { %818 = vst.msk [vmem:[%s1782_s3 + $0x74] sm:$0xf] %vm788_vm0, %v769_v45  ;;  %v746_v49 = vpack.c.bf16 %v698_v46, %v698_v46  ;;  %v519_v50 = vadd.f32 %v1441_v48, %v518_v47  ;;  %v647_v51 = vpop.f32.mrf.mxu3 }
  0xd6   :  { %v460_v52 = vpop.f32.mrf.mxu0 }
  0xd7   :  { %795 = vst.msk [vmem:[%s1782_s3 + $0x18] sm:$0xf] %vm788_vm0, %v746_v49  ;;  %v648_v53 = vadd.f32 %v647_v51, %v519_v50  ;;  %v461_v54 = vadd.f32 %v1441_v48, %v460_v52  ;;  %v589_v55 = vpop.f32.mrf.mxu1 }
  0xd9   :  { %v722_v56 = vmax.f32 %v648_v53, 0.0  ;;  %v590_v57 = vadd.f32 %v589_v55, %v461_v54 }
  0xdb   :  { %v770_v58 = vpack.c.bf16 %v722_v56, %v722_v56  ;;  %v699_v59 = vmax.f32 %v590_v57, 0.0 }
  0xdc   :  { %v520_v60 = vpop.f32.mrf.mxu2 }
  0xdd   :  { %819 = vst.msk [vmem:[%s1782_s3 + $0x78] sm:$0xf] %vm788_vm0, %v770_v58  ;;  %v747_v61 = vpack.c.bf16 %v699_v59, %v699_v59  ;;  %v521_v62 = vadd.f32 %v1441_v48, %v520_v60  ;;  %v649_v63 = vpop.f32.mrf.mxu3 }
  0xde   :  { %v463_v0 = vpop.f32.mrf.mxu0 }
  0xdf   :  { %796 = vst.msk [vmem:[%s1782_s3 + $0x1c] sm:$0xf] %vm788_vm0, %v747_v61  ;;  %v650_v1 = vadd.f32 %v649_v63, %v521_v62  ;;  %v464_v2 = vadd.f32 %v1441_v48, %v463_v0  ;;  %v592_v3 = vpop.f32.mrf.mxu1 }
  0xe1   :  { %v723_v4 = vmax.f32 %v650_v1, 0.0  ;;  %v593_v5 = vadd.f32 %v592_v3, %v464_v2 }
  0xe3   :  { %v771_v6 = vpack.c.bf16 %v723_v4, %v723_v4  ;;  %v700_v7 = vmax.f32 %v593_v5, 0.0 }
  0xe4   :  { %v523_v8 = vpop.f32.mrf.mxu2 }
  0xe5   :  { %820 = vst.msk [vmem:[%s1782_s3 + $0x7c] sm:$0xf] %vm788_vm0, %v771_v6  ;;  %v748_v9 = vpack.c.bf16 %v700_v7, %v700_v7  ;;  %v524_v10 = vadd.f32 %v1441_v48, %v523_v8  ;;  %v652_v11 = vpop.f32.mrf.mxu3 }
  0xe6   :  { %v465_v12 = vpop.f32.mrf.mxu0 }
  0xe7   :  { %797 = vst.msk [vmem:[%s1782_s3 + $0x20] sm:$0xf] %vm788_vm0, %v748_v9  ;;  %v653_v13 = vadd.f32 %v652_v11, %v524_v10  ;;  %v466_v14 = vadd.f32 %v1441_v48, %v465_v12  ;;  %v594_v15 = vpop.f32.mrf.mxu1 }
  0xe9   :  { %v724_v16 = vmax.f32 %v653_v13, 0.0  ;;  %v595_v17 = vadd.f32 %v594_v15, %v466_v14 }
  0xeb   :  { %v772_v18 = vpack.c.bf16 %v724_v16, %v724_v16  ;;  %v701_v19 = vmax.f32 %v595_v17, 0.0 }
  0xec   :  { %v525_v20 = vpop.f32.mrf.mxu2 }
  0xed   :  { %821 = vst.msk [vmem:[%s1782_s3 + $0x80] sm:$0xf] %vm788_vm0, %v772_v18  ;;  %v749_v21 = vpack.c.bf16 %v701_v19, %v701_v19  ;;  %v526_v22 = vadd.f32 %v1441_v48, %v525_v20  ;;  %v654_v23 = vpop.f32.mrf.mxu3 }
  0xee   :  { %v468_v24 = vpop.f32.mrf.mxu0 }
  0xef   :  { %798 = vst.msk [vmem:[%s1782_s3 + $0x24] sm:$0xf] %vm788_vm0, %v749_v21  ;;  %v655_v25 = vadd.f32 %v654_v23, %v526_v22  ;;  %v469_v26 = vadd.f32 %v1441_v48, %v468_v24  ;;  %v597_v27 = vpop.f32.mrf.mxu1 }
  0xf1   :  { %v725_v28 = vmax.f32 %v655_v25, 0.0  ;;  %v598_v29 = vadd.f32 %v597_v27, %v469_v26 }
  0xf3   :  { %v773_v30 = vpack.c.bf16 %v725_v28, %v725_v28  ;;  %v702_v31 = vmax.f32 %v598_v29, 0.0 }
  0xf4   :  { %v528_v32 = vpop.f32.mrf.mxu2 }
  0xf5   :  { %822 = vst.msk [vmem:[%s1782_s3 + $0x84] sm:$0xf] %vm788_vm0, %v773_v30  ;;  %v750_v33 = vpack.c.bf16 %v702_v31, %v702_v31  ;;  %v529_v34 = vadd.f32 %v1441_v48, %v528_v32  ;;  %v657_v35 = vpop.f32.mrf.mxu3 }
  0xf6   :  { %v470_v36 = vpop.f32.mrf.mxu0 }
  0xf7   :  { %799 = vst.msk [vmem:[%s1782_s3 + $0x28] sm:$0xf] %vm788_vm0, %v750_v33  ;;  %v658_v37 = vadd.f32 %v657_v35, %v529_v34  ;;  %v471_v38 = vadd.f32 %v1441_v48, %v470_v36  ;;  %v599_v39 = vpop.f32.mrf.mxu1 }
  0xf9   :  { %v726_v40 = vmax.f32 %v658_v37, 0.0  ;;  %v600_v41 = vadd.f32 %v599_v39, %v471_v38 }
  0xfb   :  { %v774_v42 = vpack.c.bf16 %v726_v40, %v726_v40  ;;  %v703_v43 = vmax.f32 %v600_v41, 0.0 }
  0xfc   :  { %v530_v44 = vpop.f32.mrf.mxu2 }
  0xfd   :  { %823 = vst.msk [vmem:[%s1782_s3 + $0x88] sm:$0xf] %vm788_vm0, %v774_v42  ;;  %v751_v45 = vpack.c.bf16 %v703_v43, %v703_v43  ;;  %v531_v46 = vadd.f32 %v1441_v48, %v530_v44  ;;  %v659_v47 = vpop.f32.mrf.mxu3 }
  0xfe   :  { %v473_v49 = vpop.f32.mrf.mxu0 }
  0xff   :  { %800 = vst.msk [vmem:[%s1782_s3 + $0x2c] sm:$0xf] %vm788_vm0, %v751_v45  ;;  %v660_v50 = vadd.f32 %v659_v47, %v531_v46  ;;  %v474_v51 = vadd.f32 %v1441_v48, %v473_v49  ;;  %v602_v52 = vpop.f32.mrf.mxu1 }
 0x101   :  { %v727_v53 = vmax.f32 %v660_v50, 0.0  ;;  %v603_v54 = vadd.f32 %v602_v52, %v474_v51 }
 0x103   :  { %v775_v55 = vpack.c.bf16 %v727_v53, %v727_v53  ;;  %v704_v56 = vmax.f32 %v603_v54, 0.0 }
 0x104   :  { %v533_v57 = vpop.f32.mrf.mxu2 }
 0x105   :  { %824 = vst.msk [vmem:[%s1782_s3 + $0x8c] sm:$0xf] %vm788_vm0, %v775_v55  ;;  %v752_v58 = vpack.c.bf16 %v704_v56, %v704_v56  ;;  %v534_v59 = vadd.f32 %v1441_v48, %v533_v57  ;;  %v662_v60 = vpop.f32.mrf.mxu3 }
 0x106   :  { %v475_v61 = vpop.f32.mrf.mxu0 }
 0x107   :  { %801 = vst.msk [vmem:[%s1782_s3 + $0x30] sm:$0xf] %vm788_vm0, %v752_v58  ;;  %v663_v62 = vadd.f32 %v662_v60, %v534_v59  ;;  %v476_v63 = vadd.f32 %v1441_v48, %v475_v61  ;;  %v604_v0 = vpop.f32.mrf.mxu1 }
 0x109   :  { %v728_v1 = vmax.f32 %v663_v62, 0.0  ;;  %v605_v2 = vadd.f32 %v604_v0, %v476_v63 }
 0x10b   :  { %v776_v3 = vpack.c.bf16 %v728_v1, %v728_v1  ;;  %v705_v4 = vmax.f32 %v605_v2, 0.0 }
 0x10c   :  { %v535_v5 = vpop.f32.mrf.mxu2 }
 0x10d   :  { %825 = vst.msk [vmem:[%s1782_s3 + $0x90] sm:$0xf] %vm788_vm0, %v776_v3  ;;  %v753_v6 = vpack.c.bf16 %v705_v4, %v705_v4  ;;  %v536_v7 = vadd.f32 %v1441_v48, %v535_v5  ;;  %v664_v8 = vpop.f32.mrf.mxu3 }
 0x10e   :  { %v478_v9 = vpop.f32.mrf.mxu0 }
 0x10f   :  { %802 = vst.msk [vmem:[%s1782_s3 + $0x34] sm:$0xf] %vm788_vm0, %v753_v6  ;;  %v665_v10 = vadd.f32 %v664_v8, %v536_v7  ;;  %v479_v11 = vadd.f32 %v1441_v48, %v478_v9  ;;  %v607_v12 = vpop.f32.mrf.mxu1 }
 0x111   :  { %v729_v13 = vmax.f32 %v665_v10, 0.0  ;;  %v608_v14 = vadd.f32 %v607_v12, %v479_v11 }
 0x113   :  { %v777_v15 = vpack.c.bf16 %v729_v13, %v729_v13  ;;  %v706_v16 = vmax.f32 %v608_v14, 0.0 }
 0x114   :  { %v538_v17 = vpop.f32.mrf.mxu2 }
 0x115   :  { %826 = vst.msk [vmem:[%s1782_s3 + $0x94] sm:$0xf] %vm788_vm0, %v777_v15  ;;  %v754_v18 = vpack.c.bf16 %v706_v16, %v706_v16  ;;  %v539_v19 = vadd.f32 %v1441_v48, %v538_v17  ;;  %v667_v20 = vpop.f32.mrf.mxu3 }
 0x116   :  { %v480_v21 = vpop.f32.mrf.mxu0 }
 0x117   :  { %803 = vst.msk [vmem:[%s1782_s3 + $0x38] sm:$0xf] %vm788_vm0, %v754_v18  ;;  %v668_v22 = vadd.f32 %v667_v20, %v539_v19  ;;  %v481_v23 = vadd.f32 %v1441_v48, %v480_v21  ;;  %v609_v24 = vpop.f32.mrf.mxu1 }
 0x119   :  { %v730_v25 = vmax.f32 %v668_v22, 0.0  ;;  %v610_v26 = vadd.f32 %v609_v24, %v481_v23 }
 0x11b   :  { %v778_v27 = vpack.c.bf16 %v730_v25, %v730_v25  ;;  %v707_v28 = vmax.f32 %v610_v26, 0.0 }
 0x11c   :  { %v540_v29 = vpop.f32.mrf.mxu2 }
 0x11d   :  { %827 = vst.msk [vmem:[%s1782_s3 + $0x98] sm:$0xf] %vm788_vm0, %v778_v27  ;;  %v755_v30 = vpack.c.bf16 %v707_v28, %v707_v28  ;;  %v541_v31 = vadd.f32 %v1441_v48, %v540_v29  ;;  %v669_v32 = vpop.f32.mrf.mxu3 }
 0x11e   :  { %v483_v33 = vpop.f32.mrf.mxu0 }
 0x11f   :  { %804 = vst.msk [vmem:[%s1782_s3 + $0x3c] sm:$0xf] %vm788_vm0, %v755_v30  ;;  %v670_v34 = vadd.f32 %v669_v32, %v541_v31  ;;  %v484_v35 = vadd.f32 %v1441_v48, %v483_v33  ;;  %v612_v36 = vpop.f32.mrf.mxu1 }
 0x121   :  { %v731_v37 = vmax.f32 %v670_v34, 0.0  ;;  %v613_v38 = vadd.f32 %v612_v36, %v484_v35 }
 0x123   :  { %v779_v39 = vpack.c.bf16 %v731_v37, %v731_v37  ;;  %v708_v40 = vmax.f32 %v613_v38, 0.0 }
 0x124   :  { %v543_v41 = vpop.f32.mrf.mxu2 }
 0x125   :  { %828 = vst.msk [vmem:[%s1782_s3 + $0x9c] sm:$0xf] %vm788_vm0, %v779_v39  ;;  %v756_v42 = vpack.c.bf16 %v708_v40, %v708_v40  ;;  %v544_v43 = vadd.f32 %v1441_v48, %v543_v41  ;;  %v672_v44 = vpop.f32.mrf.mxu3 }
 0x126   :  { %v485_v45 = vpop.f32.mrf.mxu0 }
 0x127   :  { %805 = vst.msk [vmem:[%s1782_s3 + $0x40] sm:$0xf] %vm788_vm0, %v756_v42  ;;  %v673_v46 = vadd.f32 %v672_v44, %v544_v43  ;;  %v486_v47 = vadd.f32 %v1441_v48, %v485_v45  ;;  %v614_v49 = vpop.f32.mrf.mxu1 }
 0x129   :  { %v732_v50 = vmax.f32 %v673_v46, 0.0  ;;  %v615_v51 = vadd.f32 %v614_v49, %v486_v47 }
 0x12b   :  { %v780_v52 = vpack.c.bf16 %v732_v50, %v732_v50  ;;  %v709_v53 = vmax.f32 %v615_v51, 0.0 }
 0x12c   :  { %v545_v54 = vpop.f32.mrf.mxu2 }
 0x12d   :  { %829 = vst.msk [vmem:[%s1782_s3 + $0xa0] sm:$0xf] %vm788_vm0, %v780_v52  ;;  %v757_v55 = vpack.c.bf16 %v709_v53, %v709_v53  ;;  %v546_v56 = vadd.f32 %v1441_v48, %v545_v54  ;;  %v674_v57 = vpop.f32.mrf.mxu3 }
 0x12e   :  { %v488_v58 = vpop.f32.mrf.mxu0 }
 0x12f   :  { %806 = vst.msk [vmem:[%s1782_s3 + $0x44] sm:$0xf] %vm788_vm0, %v757_v55  ;;  %v675_v59 = vadd.f32 %v674_v57, %v546_v56  ;;  %v489_v60 = vadd.f32 %v1441_v48, %v488_v58  ;;  %v617_v61 = vpop.f32.mrf.mxu1 }
 0x131   :  { %v733_v62 = vmax.f32 %v675_v59, 0.0  ;;  %v618_v63 = vadd.f32 %v617_v61, %v489_v60 }
 0x133   :  { %v781_v0 = vpack.c.bf16 %v733_v62, %v733_v62  ;;  %v710_v1 = vmax.f32 %v618_v63, 0.0 }
 0x134   :  { %v548_v2 = vpop.f32.mrf.mxu2 }
 0x135   :  { %830 = vst.msk [vmem:[%s1782_s3 + $0xa4] sm:$0xf] %vm788_vm0, %v781_v0  ;;  %v758_v3 = vpack.c.bf16 %v710_v1, %v710_v1  ;;  %v549_v4 = vadd.f32 %v1441_v48, %v548_v2  ;;  %v677_v5 = vpop.f32.mrf.mxu3 }
 0x136   :  { %v490_v6 = vpop.f32.mrf.mxu0 }
 0x137   :  { %807 = vst.msk [vmem:[%s1782_s3 + $0x48] sm:$0xf] %vm788_vm0, %v758_v3  ;;  %v678_v7 = vadd.f32 %v677_v5, %v549_v4  ;;  %v491_v8 = vadd.f32 %v1441_v48, %v490_v6  ;;  %v619_v9 = vpop.f32.mrf.mxu1 }
 0x139   :  { %v734_v10 = vmax.f32 %v678_v7, 0.0  ;;  %v620_v11 = vadd.f32 %v619_v9, %v491_v8 }
 0x13b   :  { %v782_v12 = vpack.c.bf16 %v734_v10, %v734_v10  ;;  %v711_v13 = vmax.f32 %v620_v11, 0.0 }
 0x13c   :  { %v550_v14 = vpop.f32.mrf.mxu2 }
 0x13d   :  { %831 = vst.msk [vmem:[%s1782_s3 + $0xa8] sm:$0xf] %vm788_vm0, %v782_v12  ;;  %v759_v15 = vpack.c.bf16 %v711_v13, %v711_v13  ;;  %v551_v16 = vadd.f32 %v1441_v48, %v550_v14  ;;  %v679_v17 = vpop.f32.mrf.mxu3 }
 0x13e   :  { %v493_v18 = vpop.f32.mrf.mxu0 }
 0x13f   :  { %808 = vst.msk [vmem:[%s1782_s3 + $0x4c] sm:$0xf] %vm788_vm0, %v759_v15  ;;  %v680_v19 = vadd.f32 %v679_v17, %v551_v16  ;;  %v494_v20 = vadd.f32 %v1441_v48, %v493_v18  ;;  %v622_v21 = vpop.f32.mrf.mxu1 }
 0x141   :  { %v735_v22 = vmax.f32 %v680_v19, 0.0  ;;  %v623_v23 = vadd.f32 %v622_v21, %v494_v20 }
 0x143   :  { %v783_v24 = vpack.c.bf16 %v735_v22, %v735_v22  ;;  %v712_v25 = vmax.f32 %v623_v23, 0.0 }
 0x144   :  { %v553_v26 = vpop.f32.mrf.mxu2 }
 0x145   :  { %832 = vst.msk [vmem:[%s1782_s3 + $0xac] sm:$0xf] %vm788_vm0, %v783_v24  ;;  %v760_v27 = vpack.c.bf16 %v712_v25, %v712_v25  ;;  %v554_v28 = vadd.f32 %v1441_v48, %v553_v26  ;;  %v682_v29 = vpop.f32.mrf.mxu3 }
 0x146   :  { %v495_v30 = vpop.f32.mrf.mxu0 }
 0x147   :  { %809 = vst.msk [vmem:[%s1782_s3 + $0x50] sm:$0xf] %vm788_vm0, %v760_v27  ;;  %v683_v31 = vadd.f32 %v682_v29, %v554_v28  ;;  %v496_v32 = vadd.f32 %v1441_v48, %v495_v30  ;;  %v624_v33 = vpop.f32.mrf.mxu1 }
 0x149   :  { %v736_v34 = vmax.f32 %v683_v31, 0.0  ;;  %v625_v35 = vadd.f32 %v624_v33, %v496_v32 }
 0x14b   :  { %v784_v36 = vpack.c.bf16 %v736_v34, %v736_v34  ;;  %v713_v37 = vmax.f32 %v625_v35, 0.0 }
 0x14c   :  { %v555_v38 = vpop.f32.mrf.mxu2 }
 0x14d   :  { %833 = vst.msk [vmem:[%s1782_s3 + $0xb0] sm:$0xf] %vm788_vm0, %v784_v36  ;;  %v761_v39 = vpack.c.bf16 %v713_v37, %v713_v37  ;;  %v556_v40 = vadd.f32 %v1441_v48, %v555_v38  ;;  %v684_v41 = vpop.f32.mrf.mxu3 }
 0x14e   :  { %v498_v42 = vpop.f32.mrf.mxu0 }
 0x14f   :  { %810 = vst.msk [vmem:[%s1782_s3 + $0x54] sm:$0xf] %vm788_vm0, %v761_v39  ;;  %v685_v43 = vadd.f32 %v684_v41, %v556_v40  ;;  %v499_v44 = vadd.f32 %v1441_v48, %v498_v42  ;;  %v627_v45 = vpop.f32.mrf.mxu1 }
 0x151   :  { %v737_v46 = vmax.f32 %v685_v43, 0.0  ;;  %v628_v47 = vadd.f32 %v627_v45, %v499_v44 }
 0x153   :  { %v785_v49 = vpack.c.bf16 %v737_v46, %v737_v46  ;;  %v714_v50 = vmax.f32 %v628_v47, 0.0 }
 0x154   :  { %v558_v51 = vpop.f32.mrf.mxu2 }
 0x155   :  { %834 = vst.msk [vmem:[%s1782_s3 + $0xb4] sm:$0xf] %vm788_vm0, %v785_v49  ;;  %v762_v52 = vpack.c.bf16 %v714_v50, %v714_v50  ;;  %v559_v53 = vadd.f32 %v1441_v48, %v558_v51  ;;  %v687_v54 = vpop.f32.mrf.mxu3 }
 0x156   :  { %v500_v55 = vpop.f32.mrf.mxu0 }
 0x157   :  { %811 = vst.msk [vmem:[%s1782_s3 + $0x58] sm:$0xf] %vm788_vm0, %v762_v52  ;;  %v688_v56 = vadd.f32 %v687_v54, %v559_v53  ;;  %v501_v57 = vadd.f32 %v1441_v48, %v500_v55  ;;  %v629_v58 = vpop.f32.mrf.mxu1 }
 0x159   :  { %v738_v59 = vmax.f32 %v688_v56, 0.0  ;;  %v630_v60 = vadd.f32 %v629_v58, %v501_v57 }
 0x15b   :  { %v786_v61 = vpack.c.bf16 %v738_v59, %v738_v59  ;;  %v715_v62 = vmax.f32 %v630_v60, 0.0 }
 0x15c   :  { %v560_v63 = vpop.f32.mrf.mxu2 }
 0x15d   :  { %835 = vst.msk [vmem:[%s1782_s3 + $0xb8] sm:$0xf] %vm788_vm0, %v786_v61  ;;  %v763_v0 = vpack.c.bf16 %v715_v62, %v715_v62  ;;  %v561_v1 = vadd.f32 %v1441_v48, %v560_v63  ;;  %v689_v2 = vpop.f32.mrf.mxu3 }
 0x15f   :  { %812 = vst.msk [vmem:[%s1782_s3 + $0x5c] sm:$0xf] %vm788_vm0, %v763_v0  ;;  %v690_v3 = vadd.f32 %v689_v2, %v561_v1 }
 0x161   :  { %v739_v4 = vmax.f32 %v690_v3, 0.0 }
 0x163   :  { %v787_v5 = vpack.c.bf16 %v739_v4, %v739_v4 }
 0x165   :  { %836 = vst.msk [vmem:[%s1782_s3 + $0xbc] sm:$0xf] %vm788_vm0, %v787_v5 }

// kernel: nature_cnn_forward.5
= control target key start
LH: loop header
LB: loop body
LE: loop exit
PB: predicated region body
PF: predicated region fallthrough
CT: control target
= control target key end

     0   :  { %vm694_vm0 = vcmask 519168   ;;  %s1429_s1 = inlined_call_operand.vmem [shape: bf16[512,64], index: 1, kind: input, shape index: {}]   ;;  %s1430_s2 = inlined_call_operand.vmem [shape: f32[1,64], index: 2, kind: input, shape index: {}]   ;;  %s1431_s0 = inlined_call_operand.vmem [shape: bf16[128,512], index: 0, kind: input, shape index: {}]   ;;  %s1432_s3 = inlined_call_operand.vmem [shape: bf16[128,64], index: 3, kind: output, shape index: {}]  }
   0x1   :  { %v1010_v0 = vld [vmem:[%s1429_s1 + $0x38] sm:$0xff]  ;;  %v1009_v4 = vld [vmem:[%s1429_s1 + $0x30] sm:$0xff]  ;;  %v1008_v8 = vld [vmem:[%s1429_s1 + $0x28] sm:$0xff] }
   0x2   :  { %v1018_v1 = vld [vmem:[%s1429_s1 + $0x78] sm:$0xff]  ;;  %466 = vmatpush.bf16.msra.mxu0 %v1010_v0  ;;  %v1017_v5 = vld [vmem:[%s1429_s1 + $0x70] sm:$0xff]  ;;  %v1016_v9 = vld [vmem:[%s1429_s1 + $0x68] sm:$0xff] }
   0x3   :  { %v1026_v2 = vld [vmem:[%s1429_s1 + $0xb8] sm:$0xff]  ;;  %515 = vmatpush.bf16.msra.mxu1 %v1018_v1  ;;  %v1025_v6 = vld [vmem:[%s1429_s1 + $0xb0] sm:$0xff]  ;;  %v1024_v10 = vld [vmem:[%s1429_s1 + $0xa8] sm:$0xff] }
   0x4   :  { %v1034_v3 = vld [vmem:[%s1429_s1 + $0xf8] sm:$0xff]  ;;  %564 = vmatpush.bf16.msra.mxu2 %v1026_v2  ;;  %v1033_v7 = vld [vmem:[%s1429_s1 + $0xf0] sm:$0xff]  ;;  %v1032_v11 = vld [vmem:[%s1429_s1 + $0xe8] sm:$0xff] }
   0x5   :  { %613 = vmatpush.bf16.msra.mxu3 %v1034_v3  ;;  %v1007_v12 = vld [vmem:[%s1429_s1 + $0x20] sm:$0xff]  ;;  %v1006_v16 = vld [vmem:[%s1429_s1 + $0x18] sm:$0xff]  ;;  %v1005_v20 = vld [vmem:[%s1429_s1 + $0x10] sm:$0xff] }
   0x6   :  { %467 = vmatpush.bf16.msra.mxu0 %v1009_v4  ;;  %v1015_v13 = vld [vmem:[%s1429_s1 + $0x60] sm:$0xff]  ;;  %v1014_v17 = vld [vmem:[%s1429_s1 + $0x58] sm:$0xff]  ;;  %v1013_v21 = vld [vmem:[%s1429_s1 + $0x50] sm:$0xff] }
   0x7   :  { %516 = vmatpush.bf16.msra.mxu1 %v1017_v5  ;;  %v1023_v14 = vld [vmem:[%s1429_s1 + $0xa0] sm:$0xff]  ;;  %v1022_v18 = vld [vmem:[%s1429_s1 + $0x98] sm:$0xff]  ;;  %v1021_v22 = vld [vmem:[%s1429_s1 + $0x90] sm:$0xff] }
   0x8   :  { %565 = vmatpush.bf16.msra.mxu2 %v1025_v6  ;;  %v1031_v15 = vld [vmem:[%s1429_s1 + $0xe0] sm:$0xff]  ;;  %v1030_v19 = vld [vmem:[%s1429_s1 + $0xd8] sm:$0xff]  ;;  %v1029_v23 = vld [vmem:[%s1429_s1 + $0xd0] sm:$0xff] }
   0x9   :  { %614 = vmatpush.bf16.msra.mxu3 %v1033_v7  ;;  %v1004_v24 = vld [vmem:[%s1429_s1 + $0x8] sm:$0xff]  ;;  %v1003_v28 = vld [vmem:[%s1429_s1] sm:$0xff]  ;;  %v973_v33 = vld [vmem:[%s1431_s0 + $0xc] sm:$0xf0] }
   0xa   :  { %468 = vmatpush.bf16.msra.mxu0 %v1008_v8  ;;  %v1012_v25 = vld [vmem:[%s1429_s1 + $0x48] sm:$0xff]  ;;  %v1011_v29 = vld [vmem:[%s1429_s1 + $0x40] sm:$0xff]  ;;  %v719_v35 = vld [vmem:[%s1431_s0 + $0x10] sm:$0xf0] }
   0xb   :  { %517 = vmatpush.bf16.msra.mxu1 %v1016_v9  ;;  %v1020_v26 = vld [vmem:[%s1429_s1 + $0x88] sm:$0xff]  ;;  %v1019_v30 = vld [vmem:[%s1429_s1 + $0x80] sm:$0xff]  ;;  %v974_v37 = vld [vmem:[%s1431_s0 + $0x14] sm:$0xf0] }
   0xc   :  { %566 = vmatpush.bf16.msra.mxu2 %v1024_v10  ;;  %v1028_v27 = vld [vmem:[%s1429_s1 + $0xc8] sm:$0xff]  ;;  %v1027_v31 = vld [vmem:[%s1429_s1 + $0xc0] sm:$0xff]  ;;  %v727_v39 = vld [vmem:[%s1431_s0 + $0x18] sm:$0xf0] }
   0xd   :  { %615 = vmatpush.bf16.msra.mxu3 %v1032_v11  ;;  %v717_v32 = vld [vmem:[%s1431_s0] sm:$0xf]  ;;  %v971_v34 = vld [vmem:[%s1431_s0 + $0x4] sm:$0xf]  ;;  %v725_v36 = vld [vmem:[%s1431_s0 + $0x8] sm:$0xf] }
   0xe   :  { %469 = vmatpush.bf16.msra.mxu0 %v1007_v12  ;;  %v972_v38 = vld [vmem:[%s1431_s0 + $0xc] sm:$0xf]  ;;  %v718_v40 = vor.u32 %v973_v33, %v717_v32  ;;  %v722_v41 = vor.u32 %v971_v34, %v719_v35  ;;  %v726_v42 = vor.u32 %v974_v37, %v725_v36  ;;  %v733_v44 = vld [vmem:[%s1431_s0 + $0x20] sm:$0xf]  ;;  %v977_v45 = vld [vmem:[%s1431_s0 + $0x2c] sm:$0xf0] }
   0xf   :  { %518 = vmatpush.bf16.msra.mxu1 %v1015_v13  ;;  %v730_v43 = vor.u32 %v972_v38, %v727_v39  ;;  %v975_v46 = vld [vmem:[%s1431_s0 + $0x24] sm:$0xf]  ;;  %v735_v47 = vld [vmem:[%s1431_s0 + $0x30] sm:$0xf0]  ;;  %v741_v48 = vld [vmem:[%s1431_s0 + $0x28] sm:$0xf]  ;;  %v734_v52 = vor.u32 %v977_v45, %v733_v44 }
  0x10   :  { %567 = vmatpush.bf16.msra.mxu2 %v1023_v14  ;;  %v978_v49 = vld [vmem:[%s1431_s0 + $0x34] sm:$0xf0]  ;;  %v976_v50 = vld [vmem:[%s1431_s0 + $0x2c] sm:$0xf]  ;;  %v743_v51 = vld [vmem:[%s1431_s0 + $0x38] sm:$0xf0]  ;;  %v738_v53 = vor.u32 %v975_v46, %v735_v47 }
  0x11   :  { %616 = vmatpush.bf16.msra.mxu3 %v1031_v15  ;;  %v742_v54 = vor.u32 %v978_v49, %v741_v48  ;;  %v746_v55 = vor.u32 %v976_v50, %v743_v51  ;;  %v749_v56 = vld [vmem:[%s1431_s0 + $0x40] sm:$0xf]  ;;  %v981_v57 = vld [vmem:[%s1431_s0 + $0x4c] sm:$0xf0]  ;;  %v979_v58 = vld [vmem:[%s1431_s0 + $0x44] sm:$0xf] }
  0x12   :  { %470 = vmatpush.bf16.msra.mxu0 %v1006_v16  ;;  %v751_v59 = vld [vmem:[%s1431_s0 + $0x50] sm:$0xf0]  ;;  %v757_v60 = vld [vmem:[%s1431_s0 + $0x48] sm:$0xf]  ;;  %v982_v61 = vld [vmem:[%s1431_s0 + $0x54] sm:$0xf0]  ;;  %v750_v0 = vor.u32 %v981_v57, %v749_v56 }
  0x13   :  { %519 = vmatpush.bf16.msra.mxu1 %v1014_v17  ;;  %v980_v62 = vld [vmem:[%s1431_s0 + $0x4c] sm:$0xf]  ;;  %v759_v63 = vld [vmem:[%s1431_s0 + $0x58] sm:$0xf0]  ;;  %v754_v1 = vor.u32 %v979_v58, %v751_v59  ;;  %v758_v2 = vor.u32 %v982_v61, %v757_v60  ;;  %v765_v4 = vld [vmem:[%s1431_s0 + $0x60] sm:$0xf] }
  0x14   :  { %568 = vmatpush.bf16.msra.mxu2 %v1022_v18  ;;  %v762_v3 = vor.u32 %v980_v62, %v759_v63  ;;  %v985_v5 = vld [vmem:[%s1431_s0 + $0x6c] sm:$0xf0]  ;;  %v983_v6 = vld [vmem:[%s1431_s0 + $0x64] sm:$0xf]  ;;  %v767_v7 = vld [vmem:[%s1431_s0 + $0x70] sm:$0xf0] }
  0x15   :  { %617 = vmatpush.bf16.msra.mxu3 %v1030_v19  ;;  %v773_v8 = vld [vmem:[%s1431_s0 + $0x68] sm:$0xf]  ;;  %v986_v9 = vld [vmem:[%s1431_s0 + $0x74] sm:$0xf0]  ;;  %v984_v10 = vld [vmem:[%s1431_s0 + $0x6c] sm:$0xf]  ;;  %v766_v12 = vor.u32 %v985_v5, %v765_v4  ;;  %v770_v13 = vor.u32 %v983_v6, %v767_v7 }
  0x16   :  { %471 = vmatpush.bf16.msra.mxu0 %v1005_v20  ;;  %v775_v11 = vld [vmem:[%s1431_s0 + $0x78] sm:$0xf0]  ;;  %v774_v14 = vor.u32 %v986_v9, %v773_v8  ;;  %v781_v16 = vld [vmem:[%s1431_s0 + $0x80] sm:$0xf]  ;;  %v989_v17 = vld [vmem:[%s1431_s0 + $0x8c] sm:$0xf0] }
  0x17   :  { %520 = vmatpush.bf16.msra.mxu1 %v1013_v21  ;;  %v778_v15 = vor.u32 %v984_v10, %v775_v11  ;;  %v987_v18 = vld [vmem:[%s1431_s0 + $0x84] sm:$0xf]  ;;  %v783_v19 = vld [vmem:[%s1431_s0 + $0x90] sm:$0xf0]  ;;  %v789_v20 = vld [vmem:[%s1431_s0 + $0x88] sm:$0xf] }
  0x18   :  { %569 = vmatpush.bf16.msra.mxu2 %v1021_v22  ;;  %v990_v21 = vld [vmem:[%s1431_s0 + $0x94] sm:$0xf0]  ;;  %v988_v22 = vld [vmem:[%s1431_s0 + $0x8c] sm:$0xf]  ;;  %v805_v32 = vld [vmem:[%s1431_s0 + $0xa8] sm:$0xf] }
  0x19   :  { %618 = vmatpush.bf16.msra.mxu3 %v1029_v23  ;;  %v791_v23 = vld [vmem:[%s1431_s0 + $0x98] sm:$0xf0]  ;;  %v994_v33 = vld [vmem:[%s1431_s0 + $0xb4] sm:$0xf0]  ;;  %v992_v34 = vld [vmem:[%s1431_s0 + $0xac] sm:$0xf] }
  0x1a   :  { %472 = vmatpush.bf16.msra.mxu0 %v1004_v24  ;;  %v782_v24 = vor.u32 %v989_v17, %v781_v16  ;;  %v807_v35 = vld [vmem:[%s1431_s0 + $0xb8] sm:$0xf0]  ;;  %v806_v38 = vor.u32 %v994_v33, %v805_v32  ;;  %v821_v44 = vld [vmem:[%s1431_s0 + $0xc8] sm:$0xf]  ;;  %v998_v45 = vld [vmem:[%s1431_s0 + $0xd4] sm:$0xf0] }
  0x1b   :  { %521 = vmatpush.bf16.msra.mxu1 %v1012_v25  ;;  %v786_v25 = vor.u32 %v987_v18, %v783_v19  ;;  %v810_v39 = vor.u32 %v992_v34, %v807_v35  ;;  %v996_v46 = vld [vmem:[%s1431_s0 + $0xcc] sm:$0xf]  ;;  %v823_v47 = vld [vmem:[%s1431_s0 + $0xd8] sm:$0xf0]  ;;  %v822_v50 = vor.u32 %v998_v45, %v821_v44  ;;  %v837_v56 = vld [vmem:[%s1431_s0 + $0xe8] sm:$0xf] }
  0x1c   :  { %570 = vmatpush.bf16.msra.mxu2 %v1020_v26  ;;  %v790_v26 = vor.u32 %v990_v21, %v789_v20  ;;  %v826_v51 = vor.u32 %v996_v46, %v823_v47  ;;  %v1002_v57 = vld [vmem:[%s1431_s0 + $0xf4] sm:$0xf0]  ;;  %v1000_v58 = vld [vmem:[%s1431_s0 + $0xec] sm:$0xf]  ;;  %v839_v59 = vld [vmem:[%s1431_s0 + $0xf8] sm:$0xf0] }
  0x1d   :  { %619 = vmatpush.bf16.msra.mxu3 %v1028_v27  ;;  %v794_v27 = vor.u32 %v988_v22, %v791_v23  ;;  %v838_v62 = vor.u32 %v1002_v57, %v837_v56  ;;  %v842_v63 = vor.u32 %v1000_v58, %v839_v59 }
  0x1e   :  { %473 = vmatpush.bf16.msra.mxu0 %v1003_v28  ;;  %v797_v28 = vld [vmem:[%s1431_s0 + $0xa0] sm:$0xf] }
  0x1f   :  { %522 = vmatpush.bf16.msra.mxu1 %v1011_v29  ;;  %v993_v29 = vld [vmem:[%s1431_s0 + $0xac] sm:$0xf0] }
  0x20   :  { %571 = vmatpush.bf16.msra.mxu2 %v1019_v30  ;;  %v991_v30 = vld [vmem:[%s1431_s0 + $0xa4] sm:$0xf]  ;;  %v798_v36 = vor.u32 %v993_v29, %v797_v28 }
  0x21   :  { %620 = vmatpush.bf16.msra.mxu3 %v1027_v31  ;;  %474 = vmatmul.bf16.vlgmr.msra.gmra.mxu0 %v718_v40  ;;  %v799_v31 = vld [vmem:[%s1431_s0 + $0xb0] sm:$0xf0]  ;;  %v813_v40 = vld [vmem:[%s1431_s0 + $0xc0] sm:$0xf] }
  0x22   :  { %523 = vmatmul.bf16.vlgmr.msra.gmra.mxu1 %v722_v41  ;;  %v802_v37 = vor.u32 %v991_v30, %v799_v31  ;;  %v997_v41 = vld [vmem:[%s1431_s0 + $0xcc] sm:$0xf0] }
  0x23   :  { %572 = vmatmul.bf16.vlgmr.msra.gmra.mxu2 %v726_v42  ;;  %v995_v42 = vld [vmem:[%s1431_s0 + $0xc4] sm:$0xf]  ;;  %v814_v48 = vor.u32 %v997_v41, %v813_v40 }
  0x24   :  { %621 = vmatmul.bf16.vlgmr.msra.gmra.mxu3 %v730_v43  ;;  %v815_v43 = vld [vmem:[%s1431_s0 + $0xd0] sm:$0xf0] }
  0x25   :  { %v818_v49 = vor.u32 %v995_v42, %v815_v43 }
  0x31   :  { %479 = vmatmul.bf16.gmra.mxu0 %v734_v52  ;;  %v829_v52 = vld [vmem:[%s1431_s0 + $0xe0] sm:$0xf] }
  0x32   :  { %528 = vmatmul.bf16.gmra.mxu1 %v738_v53  ;;  %v1001_v53 = vld [vmem:[%s1431_s0 + $0xec] sm:$0xf0] }
  0x33   :  { %577 = vmatmul.bf16.gmra.mxu2 %v742_v54  ;;  %v999_v54 = vld [vmem:[%s1431_s0 + $0xe4] sm:$0xf]  ;;  %v830_v60 = vor.u32 %v1001_v53, %v829_v52 }
  0x34   :  { %626 = vmatmul.bf16.gmra.mxu3 %v746_v55  ;;  %v831_v55 = vld [vmem:[%s1431_s0 + $0xf0] sm:$0xf0] }
  0x35   :  { %v834_v61 = vor.u32 %v999_v54, %v831_v55 }
  0x41   :  { %484 = vmatmul.bf16.gmra.mxu0 %v750_v0  ;;  %v1347_v0 = vld [vmem:[%s1430_s2] ss:$0 sm:$0xff] }
  0x42   :  { %533 = vmatmul.bf16.gmra.mxu1 %v754_v1 }
  0x43   :  { %582 = vmatmul.bf16.gmra.mxu2 %v758_v2 }
  0x44   :  { %631 = vmatmul.bf16.gmra.mxu3 %v762_v3 }
  0x51   :  { %489 = vmatmul.bf16.gmra.mxu0 %v766_v12 }
  0x52   :  { %538 = vmatmul.bf16.gmra.mxu1 %v770_v13 }
  0x53   :  { %587 = vmatmul.bf16.gmra.mxu2 %v774_v14 }
  0x54   :  { %636 = vmatmul.bf16.gmra.mxu3 %v778_v15 }
  0x61   :  { %494 = vmatmul.bf16.gmra.mxu0 %v782_v24 }
  0x62   :  { %543 = vmatmul.bf16.gmra.mxu1 %v786_v25 }
  0x63   :  { %592 = vmatmul.bf16.gmra.mxu2 %v790_v26 }
  0x64   :  { %641 = vmatmul.bf16.gmra.mxu3 %v794_v27 }
  0x71   :  { %499 = vmatmul.bf16.gmra.mxu0 %v798_v36 }
  0x72   :  { %548 = vmatmul.bf16.gmra.mxu1 %v802_v37 }
  0x73   :  { %597 = vmatmul.bf16.gmra.mxu2 %v806_v38 }
  0x74   :  { %646 = vmatmul.bf16.gmra.mxu3 %v810_v39 }
  0x81   :  { %504 = vmatmul.bf16.gmra.mxu0 %v814_v48 }
  0x82   :  { %553 = vmatmul.bf16.gmra.mxu1 %v818_v49 }
  0x83   :  { %602 = vmatmul.bf16.gmra.mxu2 %v822_v50 }
  0x84   :  { %651 = vmatmul.bf16.gmra.mxu3 %v826_v51 }
  0x91   :  { %509 = vmatmul.bf16.gmra.mxu0 %v830_v60 }
  0x92   :  { %558 = vmatmul.bf16.gmra.mxu1 %v834_v61 }
  0x93   :  { %607 = vmatmul.bf16.gmra.mxu2 %v838_v62 }
  0x94   :  { %656 = vmatmul.bf16.gmra.mxu3 %v842_v63 }
  0x9e   :  { %v475_v1 = vpop.f32.mrf.mxu0 }
  0x9f   :  { %v524_v2 = vpop.f32.mrf.mxu1  ;;  %v476_v3 = vadd.f32 %v1347_v0, %v475_v1 }
  0xa1   :  { %v525_v4 = vadd.f32 %v524_v2, %v476_v3 }
  0xa6   :  { %v573_v5 = vpop.f32.mrf.mxu2  ;;  %v477_v8 = vpop.f32.mrf.mxu0 }
  0xa7   :  { %v622_v6 = vpop.f32.mrf.mxu3  ;;  %v574_v7 = vadd.f32 %v573_v5, %v525_v4  ;;  %v526_v9 = vpop.f32.mrf.mxu1  ;;  %v478_v11 = vadd.f32 %v1347_v0, %v477_v8 }
  0xa9   :  { %v623_v10 = vadd.f32 %v622_v6, %v574_v7  ;;  %v527_v14 = vadd.f32 %v526_v9, %v478_v11 }
  0xab   :  { %v662_v12 = vmax.f32 %v623_v10, 0.0 }
  0xad   :  { %v678_v13 = vpack.c.bf16 %v662_v12, %v662_v12 }
  0xae   :  { %v575_v15 = vpop.f32.mrf.mxu2  ;;  %v480_v18 = vpop.f32.mrf.mxu0 }
  0xaf   :  { %v624_v16 = vpop.f32.mrf.mxu3  ;;  %695 = vst.msk [vmem:[%s1432_s3] sm:$0xf] %vm694_vm0, %v678_v13  ;;  %v576_v17 = vadd.f32 %v575_v15, %v527_v14  ;;  %v529_v19 = vpop.f32.mrf.mxu1  ;;  %v481_v20 = vadd.f32 %v1347_v0, %v480_v18 }
  0xb1   :  { %v625_v21 = vadd.f32 %v624_v16, %v576_v17  ;;  %v530_v23 = vadd.f32 %v529_v19, %v481_v20 }
  0xb3   :  { %v663_v22 = vmax.f32 %v625_v21, 0.0 }
  0xb5   :  { %v679_v24 = vpack.c.bf16 %v663_v22, %v663_v22 }
  0xb6   :  { %v578_v25 = vpop.f32.mrf.mxu2  ;;  %v482_v28 = vpop.f32.mrf.mxu0 }
  0xb7   :  { %v627_v26 = vpop.f32.mrf.mxu3  ;;  %696 = vst.msk [vmem:[%s1432_s3 + $0x4] sm:$0xf] %vm694_vm0, %v679_v24  ;;  %v579_v27 = vadd.f32 %v578_v25, %v530_v23  ;;  %v531_v29 = vpop.f32.mrf.mxu1  ;;  %v483_v31 = vadd.f32 %v1347_v0, %v482_v28 }
  0xb9   :  { %v628_v30 = vadd.f32 %v627_v26, %v579_v27  ;;  %v532_v34 = vadd.f32 %v531_v29, %v483_v31 }
  0xbb   :  { %v664_v32 = vmax.f32 %v628_v30, 0.0 }
  0xbd   :  { %v680_v33 = vpack.c.bf16 %v664_v32, %v664_v32 }
  0xbe   :  { %v580_v35 = vpop.f32.mrf.mxu2  ;;  %v485_v38 = vpop.f32.mrf.mxu0 }
  0xbf   :  { %v629_v36 = vpop.f32.mrf.mxu3  ;;  %697 = vst.msk [vmem:[%s1432_s3 + $0x8] sm:$0xf] %vm694_vm0, %v680_v33  ;;  %v581_v37 = vadd.f32 %v580_v35, %v532_v34  ;;  %v534_v39 = vpop.f32.mrf.mxu1  ;;  %v486_v40 = vadd.f32 %v1347_v0, %v485_v38 }
  0xc1   :  { %v630_v41 = vadd.f32 %v629_v36, %v581_v37  ;;  %v535_v43 = vadd.f32 %v534_v39, %v486_v40 }
  0xc3   :  { %v665_v42 = vmax.f32 %v630_v41, 0.0 }
  0xc5   :  { %v681_v44 = vpack.c.bf16 %v665_v42, %v665_v42 }
  0xc6   :  { %v583_v45 = vpop.f32.mrf.mxu2  ;;  %v487_v48 = vpop.f32.mrf.mxu0 }
  0xc7   :  { %v632_v46 = vpop.f32.mrf.mxu3  ;;  %698 = vst.msk [vmem:[%s1432_s3 + $0xc] sm:$0xf] %vm694_vm0, %v681_v44  ;;  %v584_v47 = vadd.f32 %v583_v45, %v535_v43  ;;  %v536_v49 = vpop.f32.mrf.mxu1  ;;  %v488_v51 = vadd.f32 %v1347_v0, %v487_v48 }
  0xc9   :  { %v633_v50 = vadd.f32 %v632_v46, %v584_v47  ;;  %v537_v54 = vadd.f32 %v536_v49, %v488_v51 }
  0xcb   :  { %v666_v52 = vmax.f32 %v633_v50, 0.0 }
  0xcd   :  { %v682_v53 = vpack.c.bf16 %v666_v52, %v666_v52 }
  0xce   :  { %v585_v55 = vpop.f32.mrf.mxu2  ;;  %v490_v58 = vpop.f32.mrf.mxu0 }
  0xcf   :  { %v634_v56 = vpop.f32.mrf.mxu3  ;;  %699 = vst.msk [vmem:[%s1432_s3 + $0x10] sm:$0xf] %vm694_vm0, %v682_v53  ;;  %v586_v57 = vadd.f32 %v585_v55, %v537_v54  ;;  %v539_v59 = vpop.f32.mrf.mxu1  ;;  %v491_v60 = vadd.f32 %v1347_v0, %v490_v58 }
  0xd1   :  { %v635_v61 = vadd.f32 %v634_v56, %v586_v57  ;;  %v540_v63 = vadd.f32 %v539_v59, %v491_v60 }
  0xd3   :  { %v667_v62 = vmax.f32 %v635_v61, 0.0 }
  0xd5   :  { %v683_v1 = vpack.c.bf16 %v667_v62, %v667_v62 }
  0xd6   :  { %v588_v2 = vpop.f32.mrf.mxu2  ;;  %v492_v5 = vpop.f32.mrf.mxu0 }
  0xd7   :  { %v637_v3 = vpop.f32.mrf.mxu3  ;;  %700 = vst.msk [vmem:[%s1432_s3 + $0x14] sm:$0xf] %vm694_vm0, %v683_v1  ;;  %v589_v4 = vadd.f32 %v588_v2, %v540_v63  ;;  %v541_v6 = vpop.f32.mrf.mxu1  ;;  %v493_v8 = vadd.f32 %v1347_v0, %v492_v5 }
  0xd9   :  { %v638_v7 = vadd.f32 %v637_v3, %v589_v4  ;;  %v542_v11 = vadd.f32 %v541_v6, %v493_v8 }
  0xdb   :  { %v668_v9 = vmax.f32 %v638_v7, 0.0 }
  0xdd   :  { %v684_v10 = vpack.c.bf16 %v668_v9, %v668_v9 }
  0xde   :  { %v590_v12 = vpop.f32.mrf.mxu2  ;;  %v495_v15 = vpop.f32.mrf.mxu0 }
  0xdf   :  { %v639_v13 = vpop.f32.mrf.mxu3  ;;  %701 = vst.msk [vmem:[%s1432_s3 + $0x18] sm:$0xf] %vm694_vm0, %v684_v10  ;;  %v591_v14 = vadd.f32 %v590_v12, %v542_v11  ;;  %v544_v16 = vpop.f32.mrf.mxu1  ;;  %v496_v17 = vadd.f32 %v1347_v0, %v495_v15 }
  0xe1   :  { %v640_v18 = vadd.f32 %v639_v13, %v591_v14  ;;  %v545_v20 = vadd.f32 %v544_v16, %v496_v17 }
  0xe3   :  { %v669_v19 = vmax.f32 %v640_v18, 0.0 }
  0xe5   :  { %v685_v21 = vpack.c.bf16 %v669_v19, %v669_v19 }
  0xe6   :  { %v593_v22 = vpop.f32.mrf.mxu2  ;;  %v497_v25 = vpop.f32.mrf.mxu0 }
  0xe7   :  { %v642_v23 = vpop.f32.mrf.mxu3  ;;  %702 = vst.msk [vmem:[%s1432_s3 + $0x1c] sm:$0xf] %vm694_vm0, %v685_v21  ;;  %v594_v24 = vadd.f32 %v593_v22, %v545_v20  ;;  %v546_v26 = vpop.f32.mrf.mxu1  ;;  %v498_v28 = vadd.f32 %v1347_v0, %v497_v25 }
  0xe9   :  { %v643_v27 = vadd.f32 %v642_v23, %v594_v24  ;;  %v547_v31 = vadd.f32 %v546_v26, %v498_v28 }
  0xeb   :  { %v670_v29 = vmax.f32 %v643_v27, 0.0 }
  0xed   :  { %v686_v30 = vpack.c.bf16 %v670_v29, %v670_v29 }
  0xee   :  { %v595_v32 = vpop.f32.mrf.mxu2  ;;  %v500_v35 = vpop.f32.mrf.mxu0 }
  0xef   :  { %v644_v33 = vpop.f32.mrf.mxu3  ;;  %703 = vst.msk [vmem:[%s1432_s3 + $0x20] sm:$0xf] %vm694_vm0, %v686_v30  ;;  %v596_v34 = vadd.f32 %v595_v32, %v547_v31  ;;  %v549_v36 = vpop.f32.mrf.mxu1  ;;  %v501_v37 = vadd.f32 %v1347_v0, %v500_v35 }
  0xf1   :  { %v645_v38 = vadd.f32 %v644_v33, %v596_v34  ;;  %v550_v40 = vadd.f32 %v549_v36, %v501_v37 }
  0xf3   :  { %v671_v39 = vmax.f32 %v645_v38, 0.0 }
  0xf5   :  { %v687_v41 = vpack.c.bf16 %v671_v39, %v671_v39 }
  0xf6   :  { %v598_v42 = vpop.f32.mrf.mxu2  ;;  %v502_v45 = vpop.f32.mrf.mxu0 }
  0xf7   :  { %v647_v43 = vpop.f32.mrf.mxu3  ;;  %704 = vst.msk [vmem:[%s1432_s3 + $0x24] sm:$0xf] %vm694_vm0, %v687_v41  ;;  %v599_v44 = vadd.f32 %v598_v42, %v550_v40  ;;  %v551_v46 = vpop.f32.mrf.mxu1  ;;  %v503_v48 = vadd.f32 %v1347_v0, %v502_v45 }
  0xf9   :  { %v648_v47 = vadd.f32 %v647_v43, %v599_v44  ;;  %v552_v51 = vadd.f32 %v551_v46, %v503_v48 }
  0xfb   :  { %v672_v49 = vmax.f32 %v648_v47, 0.0 }
  0xfd   :  { %v688_v50 = vpack.c.bf16 %v672_v49, %v672_v49 }
  0xfe   :  { %v600_v52 = vpop.f32.mrf.mxu2  ;;  %v505_v55 = vpop.f32.mrf.mxu0 }
  0xff   :  { %v649_v53 = vpop.f32.mrf.mxu3  ;;  %705 = vst.msk [vmem:[%s1432_s3 + $0x28] sm:$0xf] %vm694_vm0, %v688_v50  ;;  %v601_v54 = vadd.f32 %v600_v52, %v552_v51  ;;  %v554_v56 = vpop.f32.mrf.mxu1  ;;  %v506_v57 = vadd.f32 %v1347_v0, %v505_v55 }
 0x101   :  { %v650_v58 = vadd.f32 %v649_v53, %v601_v54  ;;  %v555_v60 = vadd.f32 %v554_v56, %v506_v57 }
 0x103   :  { %v673_v59 = vmax.f32 %v650_v58, 0.0 }
 0x105   :  { %v689_v61 = vpack.c.bf16 %v673_v59, %v673_v59 }
 0x106   :  { %v603_v62 = vpop.f32.mrf.mxu2  ;;  %v507_v2 = vpop.f32.mrf.mxu0 }
 0x107   :  { %v652_v63 = vpop.f32.mrf.mxu3  ;;  %706 = vst.msk [vmem:[%s1432_s3 + $0x2c] sm:$0xf] %vm694_vm0, %v689_v61  ;;  %v604_v1 = vadd.f32 %v603_v62, %v555_v60  ;;  %v556_v3 = vpop.f32.mrf.mxu1  ;;  %v508_v5 = vadd.f32 %v1347_v0, %v507_v2 }
 0x109   :  { %v653_v4 = vadd.f32 %v652_v63, %v604_v1  ;;  %v557_v8 = vadd.f32 %v556_v3, %v508_v5 }
 0x10b   :  { %v674_v6 = vmax.f32 %v653_v4, 0.0 }
 0x10d   :  { %v690_v7 = vpack.c.bf16 %v674_v6, %v674_v6 }
 0x10e   :  { %v605_v9 = vpop.f32.mrf.mxu2  ;;  %v510_v12 = vpop.f32.mrf.mxu0 }
 0x10f   :  { %v654_v10 = vpop.f32.mrf.mxu3  ;;  %707 = vst.msk [vmem:[%s1432_s3 + $0x30] sm:$0xf] %vm694_vm0, %v690_v7  ;;  %v606_v11 = vadd.f32 %v605_v9, %v557_v8  ;;  %v511_v13 = vadd.f32 %v1347_v0, %v510_v12  ;;  %v559_v15 = vpop.f32.mrf.mxu1 }
 0x111   :  { %v655_v14 = vadd.f32 %v654_v10, %v606_v11  ;;  %v560_v17 = vadd.f32 %v559_v15, %v511_v13 }
 0x113   :  { %v675_v16 = vmax.f32 %v655_v14, 0.0 }
 0x115   :  { %v691_v18 = vpack.c.bf16 %v675_v16, %v675_v16 }
 0x116   :  { %v608_v19 = vpop.f32.mrf.mxu2  ;;  %v512_v22 = vpop.f32.mrf.mxu0 }
 0x117   :  { %v657_v20 = vpop.f32.mrf.mxu3  ;;  %708 = vst.msk [vmem:[%s1432_s3 + $0x34] sm:$0xf] %vm694_vm0, %v691_v18  ;;  %v609_v21 = vadd.f32 %v608_v19, %v560_v17  ;;  %v513_v24 = vadd.f32 %v1347_v0, %v512_v22  ;;  %v561_v26 = vpop.f32.mrf.mxu1 }
 0x119   :  { %v658_v23 = vadd.f32 %v657_v20, %v609_v21  ;;  %v562_v28 = vadd.f32 %v561_v26, %v513_v24 }
 0x11b   :  { %v676_v25 = vmax.f32 %v658_v23, 0.0 }
 0x11d   :  { %v692_v27 = vpack.c.bf16 %v676_v25, %v676_v25 }
 0x11e   :  { %v610_v29 = vpop.f32.mrf.mxu2 }
 0x11f   :  { %709 = vst.msk [vmem:[%s1432_s3 + $0x38] sm:$0xf] %vm694_vm0, %v692_v27  ;;  %v611_v30 = vadd.f32 %v610_v29, %v562_v28  ;;  %v659_v31 = vpop.f32.mrf.mxu3 }
 0x121   :  { %v660_v32 = vadd.f32 %v659_v31, %v611_v30 }
 0x123   :  { %v677_v33 = vmax.f32 %v660_v32, 0.0 }
 0x125   :  { %v693_v34 = vpack.c.bf16 %v677_v33, %v677_v33 }
 0x127   :  { %710 = vst.msk [vmem:[%s1432_s3 + $0x3c] sm:$0xf] %vm694_vm0, %v693_v34 }

// kernel: nature_cnn_forward.6
= control target key start
LH: loop header
LB: loop body
LE: loop exit
PB: predicated region body
PF: predicated region fallthrough
CT: control target
= control target key end

     0   :  { %vm555_vm0 = vcmask 523264   ;;  %vm857_vm1 = vcmask 519168   ;;  %s1788_s1 = inlined_call_operand.vmem [shape: bf16[576,64], index: 1, kind: input, shape index: {}]   ;;  %s1789_s2 = inlined_call_operand.vmem [shape: f32[1,64], index: 2, kind: input, shape index: {}]   ;;  %s1790_s0 = inlined_call_operand.vmem [shape: bf16[128,576], index: 0, kind: input, shape index: {}]   ;;  %s1791_s3 = inlined_call_operand.vmem [shape: bf16[128,64], index: 3, kind: output, shape index: {}]  }
   0x1   :  { %v1237_v0 = vld [vmem:[%s1788_s1 + $0x38] sm:$0xff]  ;;  %v1236_v1 = vld [vmem:[%s1788_s1 + $0x30] sm:$0xff]  ;;  %v1235_v2 = vld [vmem:[%s1788_s1 + $0x28] sm:$0xff] }
   0x2   :  { %1266 = vmatpush.bf16.msra.mxu1 %v1237_v0  ;;  %1267 = vmatpush.bf16.msra.mxu2 %v1237_v0  ;;  %v1234_v3 = vld [vmem:[%s1788_s1 + $0x20] sm:$0xff]  ;;  %v1233_v4 = vld [vmem:[%s1788_s1 + $0x18] sm:$0xff]  ;;  %v1232_v5 = vld [vmem:[%s1788_s1 + $0x10] sm:$0xff] }
   0x3   :  { %1268 = vmatpush.bf16.msra.mxu3 %v1237_v0  ;;  %580 = vmatpush.bf16.msra.mxu0 %v1237_v0  ;;  %v1231_v6 = vld [vmem:[%s1788_s1 + $0x8] sm:$0xff]  ;;  %v1230_v7 = vld [vmem:[%s1788_s1] sm:$0xff]  ;;  %v920_v8 = vld [vmem:[%s1790_s0 + $0x50] sm:$0xf] }
   0x4   :  { %v1202_v9 = vld [vmem:[%s1790_s0 + $0x60] sm:$0xf0]  ;;  %v960_v10 = vld [vmem:[%s1790_s0 + $0xa0] sm:$0xf]  ;;  %v1212_v11 = vld [vmem:[%s1790_s0 + $0xb0] sm:$0xf0] }
   0x5   :  { %v1000_v12 = vld [vmem:[%s1790_s0 + $0xf0] sm:$0xf]  ;;  %v1222_v13 = vld [vmem:[%s1790_s0 + $0x100] sm:$0xf0]  ;;  %v880_v14 = vld [vmem:[%s1790_s0] sm:$0xf]  ;;  %v921_v18 = vor.u32 %v1202_v9, %v920_v8  ;;  %v961_v19 = vor.u32 %v1212_v11, %v960_v10 }
   0x6   :  { %1269 = vmatpush.bf16.msra.mxu1 %v1236_v1  ;;  %1270 = vmatpush.bf16.msra.mxu2 %v1236_v1  ;;  %v1192_v15 = vld [vmem:[%s1790_s0 + $0x10] sm:$0xf0]  ;;  %v1253_v16 = vld [vmem:[%s1788_s1 + $0xb8] sm:$0xff]  ;;  %v1001_v20 = vor.u32 %v1222_v13, %v1000_v12  ;;  %v1251_v28 = vld [vmem:[%s1788_s1 + $0xa8] sm:$0xff] }
   0x7   :  { %1271 = vmatpush.bf16.msra.mxu3 %v1236_v1  ;;  %581 = vmatpush.bf16.msra.mxu0 %v1236_v1  ;;  %v1245_v17 = vld [vmem:[%s1788_s1 + $0x78] sm:$0xff]  ;;  %v881_v21 = vor.u32 %v1192_v15, %v880_v14  ;;  %v1252_v24 = vld [vmem:[%s1788_s1 + $0xb0] sm:$0xff]  ;;  %v1243_v29 = vld [vmem:[%s1788_s1 + $0x68] sm:$0xff] }
   0x8   :  { %v1261_v22 = vld [vmem:[%s1788_s1 + $0xf8] sm:$0xff]  ;;  %v1244_v25 = vld [vmem:[%s1788_s1 + $0x70] sm:$0xff]  ;;  %v1259_v30 = vld [vmem:[%s1788_s1 + $0xe8] sm:$0xff] }
   0x9   :  { %v1265_v23 = vld [vmem:[%s1788_s1 + $0x118] sm:$0xff]  ;;  %v1260_v26 = vld [vmem:[%s1788_s1 + $0xf0] sm:$0xff]  ;;  %v1263_v31 = vld [vmem:[%s1788_s1 + $0x108] sm:$0xff] }
   0xa   :  { %1272 = vmatpush.bf16.msra.mxu1 %v1235_v2  ;;  %1273 = vmatpush.bf16.msra.mxu2 %v1235_v2  ;;  %v1264_v27 = vld [vmem:[%s1788_s1 + $0x110] sm:$0xff]  ;;  %v1250_v32 = vld [vmem:[%s1788_s1 + $0xa0] sm:$0xff]  ;;  %v940_v35 = vld [vmem:[%s1790_s0 + $0x78] sm:$0xf] }
   0xb   :  { %1274 = vmatpush.bf16.msra.mxu3 %v1235_v2  ;;  %582 = vmatpush.bf16.msra.mxu0 %v1235_v2  ;;  %v1242_v33 = vld [vmem:[%s1788_s1 + $0x60] sm:$0xff]  ;;  %v1207_v36 = vld [vmem:[%s1790_s0 + $0x88] sm:$0xf0]  ;;  %v980_v37 = vld [vmem:[%s1790_s0 + $0xc8] sm:$0xf] }
   0xc   :  { %v1258_v34 = vld [vmem:[%s1788_s1 + $0xe0] sm:$0xff]  ;;  %v1217_v38 = vld [vmem:[%s1790_s0 + $0xd8] sm:$0xf0]  ;;  %v1020_v39 = vld [vmem:[%s1790_s0 + $0x118] sm:$0xf]  ;;  %v941_v46 = vor.u32 %v1207_v36, %v940_v35 }
   0xd   :  { %v1227_v40 = vld [vmem:[%s1790_s0 + $0x128] sm:$0xf0]  ;;  %v900_v41 = vld [vmem:[%s1790_s0 + $0x28] sm:$0xf]  ;;  %v1197_v42 = vld [vmem:[%s1790_s0 + $0x38] sm:$0xf0]  ;;  %v981_v47 = vor.u32 %v1217_v38, %v980_v37 }
   0xe   :  { %1275 = vmatpush.bf16.msra.mxu1 %v1234_v3  ;;  %1276 = vmatpush.bf16.msra.mxu2 %v1234_v3  ;;  %v1262_v43 = vld [vmem:[%s1788_s1 + $0x100] sm:$0xff]  ;;  %v1249_v44 = vld [vmem:[%s1788_s1 + $0x98] sm:$0xff]  ;;  %v1021_v48 = vor.u32 %v1227_v40, %v1020_v39  ;;  %v901_v49 = vor.u32 %v1197_v42, %v900_v41  ;;  %v1248_v51 = vld [vmem:[%s1788_s1 + $0x90] sm:$0xff] }
   0xf   :  { %1277 = vmatpush.bf16.msra.mxu3 %v1234_v3  ;;  %583 = vmatpush.bf16.msra.mxu0 %v1234_v3  ;;  %v1241_v45 = vld [vmem:[%s1788_s1 + $0x58] sm:$0xff]  ;;  %v1240_v52 = vld [vmem:[%s1788_s1 + $0x50] sm:$0xff]  ;;  %v1247_v54 = vld [vmem:[%s1788_s1 + $0x88] sm:$0xff] }
  0x10   :  { %v1257_v50 = vld [vmem:[%s1788_s1 + $0xd8] sm:$0xff]  ;;  %v1256_v53 = vld [vmem:[%s1788_s1 + $0xd0] sm:$0xff]  ;;  %v1239_v55 = vld [vmem:[%s1788_s1 + $0x48] sm:$0xff] }
  0x11   :  { %v1255_v56 = vld [vmem:[%s1788_s1 + $0xc8] sm:$0xff]  ;;  %v1246_v57 = vld [vmem:[%s1788_s1 + $0x80] sm:$0xff]  ;;  %v882_v61 = vld [vmem:[%s1790_s0 + $0x14] sm:$0xf0] }
  0x12   :  { %1278 = vmatpush.bf16.msra.mxu1 %v1233_v4  ;;  %1279 = vmatpush.bf16.msra.mxu2 %v1233_v4  ;;  %v1238_v58 = vld [vmem:[%s1788_s1 + $0x40] sm:$0xff]  ;;  %v888_v62 = vld [vmem:[%s1790_s0 + $0x8] sm:$0xf]  ;;  %v1193_v63 = vld [vmem:[%s1790_s0 + $0x18] sm:$0xf0] }
  0x13   :  { %1280 = vmatpush.bf16.msra.mxu3 %v1233_v4  ;;  %584 = vmatpush.bf16.msra.mxu0 %v1233_v4  ;;  %v1254_v59 = vld [vmem:[%s1788_s1 + $0xc0] sm:$0xff]  ;;  %v1191_v0 = vld [vmem:[%s1790_s0 + $0xc] sm:$0xf]  ;;  %v896_v2 = vld [vmem:[%s1790_s0 + $0x10] sm:$0xf] }
  0x14   :  { %v1190_v60 = vld [vmem:[%s1790_s0 + $0x4] sm:$0xf]  ;;  %v890_v1 = vld [vmem:[%s1790_s0 + $0x1c] sm:$0xf0]  ;;  %v1195_v8 = vld [vmem:[%s1790_s0 + $0x2c] sm:$0xf] }
  0x15   :  { %v1194_v3 = vld [vmem:[%s1790_s0 + $0x20] sm:$0xf0]  ;;  %v885_v4 = vor.u32 %v1190_v60, %v882_v61  ;;  %v902_v9 = vld [vmem:[%s1790_s0 + $0x3c] sm:$0xf0]  ;;  %v908_v10 = vld [vmem:[%s1790_s0 + $0x30] sm:$0xf] }
  0x16   :  { %1281 = vmatpush.bf16.msra.mxu1 %v1232_v5  ;;  %1282 = vmatpush.bf16.msra.mxu2 %v1232_v5  ;;  %v1198_v11 = vld [vmem:[%s1790_s0 + $0x40] sm:$0xf0]  ;;  %v1196_v12 = vld [vmem:[%s1790_s0 + $0x34] sm:$0xf]  ;;  %v910_v13 = vld [vmem:[%s1790_s0 + $0x44] sm:$0xf0] }
  0x17   :  { %1283 = vmatpush.bf16.msra.mxu3 %v1232_v5  ;;  %585 = vmatpush.bf16.msra.mxu0 %v1232_v5  ;;  %v889_v5 = vor.u32 %v1193_v63, %v888_v62  ;;  %v916_v14 = vld [vmem:[%s1790_s0 + $0x38] sm:$0xf]  ;;  %v1199_v15 = vld [vmem:[%s1790_s0 + $0x48] sm:$0xf0]  ;;  %v1208_v35 = vld [vmem:[%s1790_s0 + $0x90] sm:$0xf0] }
  0x18   :  { %v1206_v36 = vld [vmem:[%s1790_s0 + $0x84] sm:$0xf]  ;;  %v950_v37 = vld [vmem:[%s1790_s0 + $0x94] sm:$0xf0]  ;;  %v956_v38 = vld [vmem:[%s1790_s0 + $0x88] sm:$0xf] }
  0x19   :  { %v1209_v39 = vld [vmem:[%s1790_s0 + $0x98] sm:$0xf0]  ;;  %v953_v42 = vor.u32 %v1206_v36, %v950_v37  ;;  %v1216_v60 = vld [vmem:[%s1790_s0 + $0xd4] sm:$0xf]  ;;  %v990_v61 = vld [vmem:[%s1790_s0 + $0xe4] sm:$0xf0] }
  0x1a   :  { %1284 = vmatpush.bf16.msra.mxu1 %v1231_v6  ;;  %1285 = vmatpush.bf16.msra.mxu2 %v1231_v6  ;;  %v996_v62 = vld [vmem:[%s1790_s0 + $0xd8] sm:$0xf]  ;;  %v1219_v63 = vld [vmem:[%s1790_s0 + $0xe8] sm:$0xf0] }
  0x1b   :  { %1286 = vmatpush.bf16.msra.mxu3 %v1231_v6  ;;  %586 = vmatpush.bf16.msra.mxu0 %v1231_v6  ;;  %v893_v6 = vor.u32 %v1191_v0, %v890_v1 }
  0x1e   :  { %1287 = vmatpush.bf16.msra.mxu1 %v1230_v7  ;;  %1288 = vmatpush.bf16.msra.mxu2 %v1230_v7 }
  0x1f   :  { %1289 = vmatpush.bf16.msra.mxu3 %v1230_v7  ;;  %587 = vmatpush.bf16.msra.mxu0 %v1230_v7  ;;  %v897_v7 = vor.u32 %v1194_v3, %v896_v2  ;;  %v993_v2 = vor.u32 %v1216_v60, %v990_v61  ;;  %v997_v3 = vor.u32 %v1219_v63, %v996_v62 }
  0x21   :  { %598 = vmatmul.bf16.vlgmr.msra.gmra.mxu1 %v921_v18  ;;  %608 = vmatmul.bf16.vlgmr.msra.gmra.mxu2 %v961_v19  ;;  %v913_v18 = vor.u32 %v1196_v12, %v910_v13  ;;  %v917_v19 = vor.u32 %v1199_v15, %v916_v14 }
  0x22   :  { %678 = vmatpush.bf16.msrb.mxu2 %v1253_v16  ;;  %629 = vmatpush.bf16.msrb.mxu1 %v1245_v17  ;;  %v905_v16 = vor.u32 %v1195_v8, %v902_v9  ;;  %v909_v17 = vor.u32 %v1198_v11, %v908_v10  ;;  %v1221_v8 = vld [vmem:[%s1790_s0 + $0xfc] sm:$0xf]  ;;  %v1010_v9 = vld [vmem:[%s1790_s0 + $0x10c] sm:$0xf0]  ;;  %v1016_v10 = vld [vmem:[%s1790_s0 + $0x100] sm:$0xf] }
  0x23   :  { %618 = vmatmul.bf16.vlgmr.msra.gmra.mxu3 %v1001_v20  ;;  %588 = vmatmul.bf16.vlgmr.msra.gmra.mxu0 %v881_v21  ;;  %v1200_v20 = vld [vmem:[%s1790_s0 + $0x54] sm:$0xf]  ;;  %v922_v21 = vld [vmem:[%s1790_s0 + $0x64] sm:$0xf0]  ;;  %v1013_v15 = vor.u32 %v1221_v8, %v1010_v9 }
  0x24   :  { %727 = vmatpush.bf16.msrb.mxu3 %v1261_v22  ;;  %780 = vmatpush.bf16.msrb.mxu0 %v1265_v23  ;;  %v928_v22 = vld [vmem:[%s1790_s0 + $0x58] sm:$0xf]  ;;  %v1203_v23 = vld [vmem:[%s1790_s0 + $0x68] sm:$0xf0]  ;;  %v1224_v11 = vld [vmem:[%s1790_s0 + $0x110] sm:$0xf0] }
  0x26   :  { %679 = vmatpush.bf16.msrb.mxu2 %v1252_v24  ;;  %630 = vmatpush.bf16.msrb.mxu1 %v1244_v25  ;;  %v1201_v24 = vld [vmem:[%s1790_s0 + $0x5c] sm:$0xf]  ;;  %v930_v25 = vld [vmem:[%s1790_s0 + $0x6c] sm:$0xf0] }
  0x28   :  { %728 = vmatpush.bf16.msrb.mxu3 %v1260_v26  ;;  %781 = vmatpush.bf16.msrb.mxu0 %v1264_v27  ;;  %v936_v26 = vld [vmem:[%s1790_s0 + $0x60] sm:$0xf]  ;;  %v1204_v27 = vld [vmem:[%s1790_s0 + $0x70] sm:$0xf0] }
  0x2a   :  { %680 = vmatpush.bf16.msrb.mxu2 %v1251_v28  ;;  %631 = vmatpush.bf16.msrb.mxu1 %v1243_v29  ;;  %v925_v28 = vor.u32 %v1200_v20, %v922_v21  ;;  %v929_v29 = vor.u32 %v1203_v23, %v928_v22 }
  0x2c   :  { %729 = vmatpush.bf16.msrb.mxu3 %v1259_v30  ;;  %782 = vmatpush.bf16.msrb.mxu0 %v1263_v31  ;;  %v933_v30 = vor.u32 %v1201_v24, %v930_v25  ;;  %v937_v31 = vor.u32 %v1204_v27, %v936_v26  ;;  %v1225_v25 = vld [vmem:[%s1790_s0 + $0x11c] sm:$0xf]  ;;  %v1022_v26 = vld [vmem:[%s1790_s0 + $0x12c] sm:$0xf0]  ;;  %v1028_v27 = vld [vmem:[%s1790_s0 + $0x120] sm:$0xf] }
  0x2d   :  { %v1025_v36 = vor.u32 %v1225_v25, %v1022_v26 }
  0x2e   :  { %681 = vmatpush.bf16.msrb.mxu2 %v1250_v32  ;;  %632 = vmatpush.bf16.msrb.mxu1 %v1242_v33  ;;  %v1205_v32 = vld [vmem:[%s1790_s0 + $0x7c] sm:$0xf]  ;;  %v942_v33 = vld [vmem:[%s1790_s0 + $0x8c] sm:$0xf0] }
  0x2f   :  { %v945_v40 = vor.u32 %v1205_v32, %v942_v33  ;;  %v1229_v32 = vld [vmem:[%s1790_s0 + $0x138] sm:$0xf0] }
  0x30   :  { %730 = vmatpush.bf16.msrb.mxu3 %v1258_v34  ;;  %783 = vmatpush.bf16.msrb.mxu0 %v1262_v43  ;;  %v948_v34 = vld [vmem:[%s1790_s0 + $0x80] sm:$0xf]  ;;  %v957_v43 = vor.u32 %v1209_v39, %v956_v38 }
  0x31   :  { %603 = vmatmul.bf16.gmra.mxu1 %v941_v46  ;;  %613 = vmatmul.bf16.gmra.mxu2 %v981_v47  ;;  %v949_v41 = vor.u32 %v1208_v35, %v948_v34  ;;  %v968_v46 = vld [vmem:[%s1790_s0 + $0xa8] sm:$0xf]  ;;  %v1213_v47 = vld [vmem:[%s1790_s0 + $0xb8] sm:$0xf0] }
  0x32   :  { %682 = vmatpush.bf16.msrb.mxu2 %v1249_v44  ;;  %633 = vmatpush.bf16.msrb.mxu1 %v1241_v45  ;;  %v1210_v44 = vld [vmem:[%s1790_s0 + $0xa4] sm:$0xf]  ;;  %v962_v45 = vld [vmem:[%s1790_s0 + $0xb4] sm:$0xf0] }
  0x33   :  { %623 = vmatmul.bf16.gmra.mxu3 %v1021_v48  ;;  %593 = vmatmul.bf16.gmra.mxu0 %v901_v49  ;;  %v1211_v48 = vld [vmem:[%s1790_s0 + $0xac] sm:$0xf]  ;;  %v970_v49 = vld [vmem:[%s1790_s0 + $0xbc] sm:$0xf0] }
  0x34   :  { %731 = vmatpush.bf16.msrb.mxu3 %v1257_v50  ;;  %v976_v50 = vld [vmem:[%s1790_s0 + $0xb0] sm:$0xf] }
  0x36   :  { %683 = vmatpush.bf16.msrb.mxu2 %v1248_v51  ;;  %634 = vmatpush.bf16.msrb.mxu1 %v1240_v52  ;;  %v1214_v51 = vld [vmem:[%s1790_s0 + $0xc0] sm:$0xf0]  ;;  %v965_v52 = vor.u32 %v1210_v44, %v962_v45 }
  0x38   :  { %732 = vmatpush.bf16.msrb.mxu3 %v1256_v53  ;;  %v969_v53 = vor.u32 %v1213_v47, %v968_v46 }
  0x3a   :  { %684 = vmatpush.bf16.msrb.mxu2 %v1247_v54  ;;  %635 = vmatpush.bf16.msrb.mxu1 %v1239_v55  ;;  %v973_v54 = vor.u32 %v1211_v48, %v970_v49  ;;  %v977_v55 = vor.u32 %v1214_v51, %v976_v50 }
  0x3c   :  { %733 = vmatpush.bf16.msrb.mxu3 %v1255_v56  ;;  %v1215_v56 = vld [vmem:[%s1790_s0 + $0xcc] sm:$0xf] }
  0x3e   :  { %685 = vmatpush.bf16.msrb.mxu2 %v1246_v57  ;;  %636 = vmatpush.bf16.msrb.mxu1 %v1238_v58  ;;  %v982_v57 = vld [vmem:[%s1790_s0 + $0xdc] sm:$0xf0]  ;;  %v988_v58 = vld [vmem:[%s1790_s0 + $0xd0] sm:$0xf] }
  0x3f   :  { %v985_v0 = vor.u32 %v1215_v56, %v982_v57 }
  0x40   :  { %734 = vmatpush.bf16.msrb.mxu3 %v1254_v59  ;;  %v1218_v59 = vld [vmem:[%s1790_s0 + $0xe0] sm:$0xf0] }
  0x41   :  { %637 = vmatmul.bf16.vlgmr.msrb.gmra.mxu1 %v885_v4  ;;  %686 = vmatmul.bf16.vlgmr.msrb.gmra.mxu2 %v889_v5  ;;  %v989_v1 = vor.u32 %v1218_v59, %v988_v58  ;;  %v1220_v4 = vld [vmem:[%s1790_s0 + $0xf4] sm:$0xf]  ;;  %v1002_v5 = vld [vmem:[%s1790_s0 + $0x104] sm:$0xf0] }
  0x42   :  { %v1005_v12 = vor.u32 %v1220_v4, %v1002_v5 }
  0x43   :  { %735 = vmatmul.bf16.vlgmr.msrb.gmra.mxu3 %v893_v6  ;;  %1182 = vmatmul.msk.bf16.vlgmr.msrb.gmra.mxu0 %vm555_vm0, %v897_v7  ;;  %v1008_v6 = vld [vmem:[%s1790_s0 + $0xf8] sm:$0xf]  ;;  %v1223_v7 = vld [vmem:[%s1790_s0 + $0x108] sm:$0xf0] }
  0x44   :  { %v1009_v13 = vor.u32 %v1223_v7, %v1008_v6 }
  0x51   :  { %642 = vmatmul.bf16.gmra.mxu1 %v905_v16  ;;  %691 = vmatmul.bf16.gmra.mxu2 %v909_v17  ;;  %v1017_v16 = vor.u32 %v1224_v11, %v1016_v10 }
  0x53   :  { %740 = vmatmul.bf16.gmra.mxu3 %v913_v18  ;;  %1183 = vmatmul.msk.bf16.gmra.mxu0 %vm555_vm0, %v917_v19  ;;  %v1647_v18 = vld [vmem:[%s1789_s2] ss:$0 sm:$0xff] }
  0x61   :  { %647 = vmatmul.bf16.gmra.mxu1 %v925_v28  ;;  %696 = vmatmul.bf16.gmra.mxu2 %v929_v29  ;;  %v1228_v28 = vld [vmem:[%s1790_s0 + $0x130] sm:$0xf0]  ;;  %v1226_v29 = vld [vmem:[%s1790_s0 + $0x124] sm:$0xf] }
  0x62   :  { %v1029_v37 = vor.u32 %v1228_v28, %v1028_v27 }
  0x63   :  { %745 = vmatmul.bf16.gmra.mxu3 %v933_v30  ;;  %1184 = vmatmul.msk.bf16.gmra.mxu0 %vm555_vm0, %v937_v31  ;;  %v1030_v30 = vld [vmem:[%s1790_s0 + $0x134] sm:$0xf0]  ;;  %v1036_v31 = vld [vmem:[%s1790_s0 + $0x128] sm:$0xf] }
  0x71   :  { %652 = vmatmul.bf16.gmra.mxu1 %v945_v40  ;;  %701 = vmatmul.bf16.gmra.mxu2 %v949_v41  ;;  %v1033_v40 = vor.u32 %v1226_v29, %v1030_v30  ;;  %v1037_v41 = vor.u32 %v1229_v32, %v1036_v31 }
  0x73   :  { %750 = vmatmul.bf16.gmra.mxu3 %v953_v42  ;;  %1185 = vmatmul.msk.bf16.gmra.mxu0 %vm555_vm0, %v957_v43 }
  0x81   :  { %657 = vmatmul.bf16.gmra.mxu1 %v965_v52  ;;  %706 = vmatmul.bf16.gmra.mxu2 %v969_v53 }
  0x83   :  { %755 = vmatmul.bf16.gmra.mxu3 %v973_v54  ;;  %1186 = vmatmul.msk.bf16.gmra.mxu0 %vm555_vm0, %v977_v55 }
  0x91   :  { %662 = vmatmul.bf16.gmra.mxu1 %v985_v0  ;;  %711 = vmatmul.bf16.gmra.mxu2 %v989_v1 }
  0x93   :  { %760 = vmatmul.bf16.gmra.mxu3 %v993_v2  ;;  %1187 = vmatmul.msk.bf16.gmra.mxu0 %vm555_vm0, %v997_v3 }
  0x9e   :  { %v1641_v14 = vpop.f32.mrf.mxu1 }
  0xa0   :  { %v589_v17 = vpop.f32.mrf.mxu0 }
  0xa1   :  { %667 = vmatmul.bf16.gmra.mxu1 %v1005_v12  ;;  %716 = vmatmul.bf16.gmra.mxu2 %v1009_v13  ;;  %v590_v55 = vadd.f32 %v1647_v18, %v589_v17 }
  0xa3   :  { %765 = vmatmul.bf16.gmra.mxu3 %v1013_v15  ;;  %1188 = vmatmul.msk.bf16.gmra.mxu0 %vm555_vm0, %v1017_v16 }
  0xa4   :  { %v609_v19 = vpop.f32.mrf.mxu2 }
  0xa5   :  { %v1650_v20 = vadd.f32 %v1647_v18, %v609_v19 }
  0xa6   :  { %v619_v21 = vpop.f32.mrf.mxu3  ;;  %v1655_v23 = vpop.f32.mrf.mxu1 }
  0xa7   :  { %v1653_v22 = vadd.f32 %v1647_v18, %v619_v21 }
  0xa8   :  { %v591_v24 = vpop.f32.mrf.mxu0 }
  0xa9   :  { %v592_v63 = vadd.f32 %v1647_v18, %v591_v24 }
  0xac   :  { %v611_v33 = vpop.f32.mrf.mxu2 }
  0xad   :  { %v1682_v34 = vadd.f32 %v1647_v18, %v611_v33 }
  0xae   :  { %v621_v35 = vpop.f32.mrf.mxu3  ;;  %v1687_v39 = vpop.f32.mrf.mxu1 }
  0xaf   :  { %v1685_v38 = vadd.f32 %v1647_v18, %v621_v35 }
  0xb0   :  { %v594_v42 = vpop.f32.mrf.mxu0 }
  0xb1   :  { %672 = vmatmul.bf16.gmra.mxu1 %v1025_v36  ;;  %721 = vmatmul.bf16.gmra.mxu2 %v1029_v37  ;;  %v595_v10 = vadd.f32 %v1647_v18, %v594_v42 }
  0xb3   :  { %770 = vmatmul.bf16.gmra.mxu3 %v1033_v40  ;;  %1189 = vmatmul.msk.bf16.gmra.mxu0 %vm555_vm0, %v1037_v41  ;;  %v600_v40 = vadd.f32 %v1647_v18, %v1641_v14 }
  0xb4   :  { %v614_v43 = vpop.f32.mrf.mxu2 }
  0xb5   :  { %v1691_v44 = vadd.f32 %v1647_v18, %v614_v43 }
  0xb6   :  { %v624_v45 = vpop.f32.mrf.mxu3  ;;  %v1696_v47 = vpop.f32.mrf.mxu1 }
  0xb7   :  { %v1694_v46 = vadd.f32 %v1647_v18, %v624_v45 }
  0xb8   :  { %v596_v48 = vpop.f32.mrf.mxu0 }
  0xb9   :  { %v597_v26 = vadd.f32 %v1647_v18, %v596_v48 }
  0xbc   :  { %v616_v49 = vpop.f32.mrf.mxu2 }
  0xbd   :  { %v1699_v50 = vadd.f32 %v1647_v18, %v616_v49 }
  0xbe   :  { %v626_v51 = vpop.f32.mrf.mxu3  ;;  %v638_v53 = vpop.f32.mrf.mxu1 }
  0xbf   :  { %v1702_v52 = vadd.f32 %v1647_v18, %v626_v51  ;;  %v639_v56 = vadd.f32 %v638_v53, %v590_v55 }
  0xc0   :  { %v785_v54 = vpop.f32.mrf.mxu0 }
  0xc4   :  { %v687_v57 = vpop.f32.mrf.mxu2 }
  0xc5   :  { %v688_v58 = vadd.f32 %v687_v57, %v639_v56  ;;  %v602_v56 = vadd.f32 %v1647_v18, %v1655_v23 }
  0xc6   :  { %v736_v59 = vpop.f32.mrf.mxu3  ;;  %v640_v60 = vpop.f32.mrf.mxu1 }
  0xc7   :  { %v737_v61 = vadd.f32 %v736_v59, %v688_v58  ;;  %v641_v2 = vadd.f32 %v640_v60, %v592_v63 }
  0xc8   :  { %v787_v62 = vpop.f32.mrf.mxu0 }
  0xc9   :  { %v786_v0 = vadd.f32 %v785_v54, %v737_v61 }
  0xcb   :  { %v825_v1 = vmax.f32 %v786_v0, 0.0 }
  0xcc   :  { %v689_v3 = vpop.f32.mrf.mxu2 }
  0xcd   :  { %v841_v4 = vpack.c.bf16 %v825_v1, %v825_v1  ;;  %v690_v5 = vadd.f32 %v689_v3, %v641_v2  ;;  %v605_v2 = vadd.f32 %v1647_v18, %v1687_v39 }
  0xce   :  { %v738_v6 = vpop.f32.mrf.mxu3  ;;  %v643_v7 = vpop.f32.mrf.mxu1 }
  0xcf   :  { %858 = vst.msk [vmem:[%s1791_s3] sm:$0xf] %vm857_vm1, %v841_v4  ;;  %v739_v8 = vadd.f32 %v738_v6, %v690_v5  ;;  %v644_v13 = vadd.f32 %v643_v7, %v595_v10 }
  0xd0   :  { %v790_v9 = vpop.f32.mrf.mxu0 }
  0xd1   :  { %v788_v11 = vadd.f32 %v787_v62, %v739_v8 }
  0xd3   :  { %v826_v12 = vmax.f32 %v788_v11, 0.0 }
  0xd4   :  { %v692_v15 = vpop.f32.mrf.mxu2 }
  0xd5   :  { %v842_v16 = vpack.c.bf16 %v826_v12, %v826_v12  ;;  %v693_v17 = vadd.f32 %v692_v15, %v644_v13  ;;  %v607_v12 = vadd.f32 %v1647_v18, %v1696_v47 }
  0xd6   :  { %v741_v19 = vpop.f32.mrf.mxu3  ;;  %v645_v21 = vpop.f32.mrf.mxu1 }
  0xd7   :  { %859 = vst.msk [vmem:[%s1791_s3 + $0x4] sm:$0xf] %vm857_vm1, %v842_v16  ;;  %v742_v24 = vadd.f32 %v741_v19, %v693_v17  ;;  %v646_v29 = vadd.f32 %v645_v21, %v597_v26 }
  0xd8   :  { %v792_v25 = vpop.f32.mrf.mxu0 }
  0xd9   :  { %v791_v27 = vadd.f32 %v790_v9, %v742_v24 }
  0xdb   :  { %v827_v28 = vmax.f32 %v791_v27, 0.0 }
  0xdc   :  { %v694_v30 = vpop.f32.mrf.mxu2 }
  0xdd   :  { %v843_v31 = vpack.c.bf16 %v827_v28, %v827_v28  ;;  %v695_v32 = vadd.f32 %v694_v30, %v646_v29 }
  0xde   :  { %v743_v33 = vpop.f32.mrf.mxu3  ;;  %v648_v35 = vpop.f32.mrf.mxu1 }
  0xdf   :  { %860 = vst.msk [vmem:[%s1791_s3 + $0x8] sm:$0xf] %vm857_vm1, %v843_v31  ;;  %v744_v36 = vadd.f32 %v743_v33, %v695_v32  ;;  %v649_v43 = vadd.f32 %v648_v35, %v600_v40 }
  0xe0   :  { %v795_v37 = vpop.f32.mrf.mxu0 }
  0xe1   :  { %v793_v41 = vadd.f32 %v792_v25, %v744_v36 }
  0xe3   :  { %v828_v42 = vmax.f32 %v793_v41, 0.0 }
  0xe4   :  { %v697_v45 = vpop.f32.mrf.mxu2 }
  0xe5   :  { %v844_v48 = vpack.c.bf16 %v828_v42, %v828_v42  ;;  %v698_v49 = vadd.f32 %v697_v45, %v649_v43 }
  0xe6   :  { %v746_v51 = vpop.f32.mrf.mxu3  ;;  %v650_v53 = vpop.f32.mrf.mxu1 }
  0xe7   :  { %861 = vst.msk [vmem:[%s1791_s3 + $0xc] sm:$0xf] %vm857_vm1, %v844_v48  ;;  %v747_v54 = vadd.f32 %v746_v51, %v698_v49  ;;  %v651_v58 = vadd.f32 %v650_v53, %v602_v56 }
  0xe8   :  { %v797_v55 = vpop.f32.mrf.mxu0 }
  0xe9   :  { %v796_v57 = vadd.f32 %v795_v37, %v747_v54 }
  0xeb   :  { %v829_v14 = vmax.f32 %v796_v57, 0.0 }
  0xec   :  { %v699_v59 = vpop.f32.mrf.mxu2 }
  0xed   :  { %v845_v60 = vpack.c.bf16 %v829_v14, %v829_v14  ;;  %v700_v61 = vadd.f32 %v699_v59, %v651_v58 }
  0xee   :  { %v748_v62 = vpop.f32.mrf.mxu3  ;;  %v653_v63 = vpop.f32.mrf.mxu1 }
  0xef   :  { %862 = vst.msk [vmem:[%s1791_s3 + $0x10] sm:$0xf] %vm857_vm1, %v845_v60  ;;  %v749_v0 = vadd.f32 %v748_v62, %v700_v61  ;;  %v654_v4 = vadd.f32 %v653_v63, %v605_v2 }
  0xf0   :  { %v800_v1 = vpop.f32.mrf.mxu0 }
  0xf1   :  { %v798_v3 = vadd.f32 %v797_v55, %v749_v0 }
  0xf3   :  { %v830_v23 = vmax.f32 %v798_v3, 0.0 }
  0xf4   :  { %v702_v5 = vpop.f32.mrf.mxu2 }
  0xf5   :  { %v846_v6 = vpack.c.bf16 %v830_v23, %v830_v23  ;;  %v703_v7 = vadd.f32 %v702_v5, %v654_v4 }
  0xf6   :  { %v751_v8 = vpop.f32.mrf.mxu3  ;;  %v655_v9 = vpop.f32.mrf.mxu1 }
  0xf7   :  { %863 = vst.msk [vmem:[%s1791_s3 + $0x14] sm:$0xf] %vm857_vm1, %v846_v6  ;;  %v752_v10 = vadd.f32 %v751_v8, %v703_v7  ;;  %v656_v15 = vadd.f32 %v655_v9, %v607_v12 }
  0xf8   :  { %v802_v11 = vpop.f32.mrf.mxu0 }
  0xf9   :  { %v801_v13 = vadd.f32 %v800_v1, %v752_v10 }
  0xfb   :  { %v831_v39 = vmax.f32 %v801_v13, 0.0 }
  0xfc   :  { %v704_v16 = vpop.f32.mrf.mxu2 }
  0xfd   :  { %v847_v17 = vpack.c.bf16 %v831_v39, %v831_v39  ;;  %v705_v19 = vadd.f32 %v704_v16, %v656_v15 }
  0xfe   :  { %v753_v21 = vpop.f32.mrf.mxu3  ;;  %v658_v24 = vpop.f32.mrf.mxu1 }
  0xff   :  { %864 = vst.msk [vmem:[%s1791_s3 + $0x18] sm:$0xf] %vm857_vm1, %v847_v17  ;;  %v754_v25 = vadd.f32 %v753_v21, %v705_v19  ;;  %v659_v29 = vadd.f32 %v658_v24, %v1650_v20 }
 0x100   :  { %v805_v26 = vpop.f32.mrf.mxu0 }
 0x101   :  { %v803_v27 = vadd.f32 %v802_v11, %v754_v25 }
 0x103   :  { %v832_v28 = vmax.f32 %v803_v27, 0.0 }
 0x104   :  { %v707_v18 = vpop.f32.mrf.mxu2 }
 0x105   :  { %v848_v47 = vpack.c.bf16 %v832_v28, %v832_v28  ;;  %v708_v30 = vadd.f32 %v707_v18, %v659_v29 }
 0x106   :  { %v756_v31 = vpop.f32.mrf.mxu3  ;;  %v660_v32 = vpop.f32.mrf.mxu1 }
 0x107   :  { %865 = vst.msk [vmem:[%s1791_s3 + $0x1c] sm:$0xf] %vm857_vm1, %v848_v47  ;;  %v757_v33 = vadd.f32 %v756_v31, %v708_v30  ;;  %v661_v40 = vadd.f32 %v660_v32, %v1682_v34 }
 0x108   :  { %v807_v35 = vpop.f32.mrf.mxu0 }
 0x109   :  { %v806_v36 = vadd.f32 %v805_v26, %v757_v33 }
 0x10b   :  { %v833_v37 = vmax.f32 %v806_v36, 0.0 }
 0x10c   :  { %v709_v41 = vpop.f32.mrf.mxu2 }
 0x10d   :  { %v849_v42 = vpack.c.bf16 %v833_v37, %v833_v37  ;;  %v710_v43 = vadd.f32 %v709_v41, %v661_v40 }
 0x10e   :  { %v758_v20 = vpop.f32.mrf.mxu3  ;;  %v663_v45 = vpop.f32.mrf.mxu1 }
 0x10f   :  { %866 = vst.msk [vmem:[%s1791_s3 + $0x20] sm:$0xf] %vm857_vm1, %v849_v42  ;;  %v759_v48 = vadd.f32 %v758_v20, %v710_v43  ;;  %v664_v54 = vadd.f32 %v663_v45, %v1691_v44 }
 0x110   :  { %v810_v49 = vpop.f32.mrf.mxu0 }
 0x111   :  { %v808_v51 = vadd.f32 %v807_v35, %v759_v48 }
 0x113   :  { %v834_v53 = vmax.f32 %v808_v51, 0.0 }
 0x114   :  { %v712_v55 = vpop.f32.mrf.mxu2 }
 0x115   :  { %v850_v56 = vpack.c.bf16 %v834_v53, %v834_v53  ;;  %v713_v57 = vadd.f32 %v712_v55, %v664_v54 }
 0x116   :  { %v761_v34 = vpop.f32.mrf.mxu3  ;;  %v665_v14 = vpop.f32.mrf.mxu1 }
 0x117   :  { %867 = vst.msk [vmem:[%s1791_s3 + $0x24] sm:$0xf] %vm857_vm1, %v850_v56  ;;  %v762_v58 = vadd.f32 %v761_v34, %v713_v57  ;;  %v666_v62 = vadd.f32 %v665_v14, %v1699_v50 }
 0x118   :  { %v812_v59 = vpop.f32.mrf.mxu0 }
 0x119   :  { %v811_v60 = vadd.f32 %v810_v49, %v762_v58 }
 0x11b   :  { %v835_v61 = vmax.f32 %v811_v60, 0.0 }
 0x11c   :  { %v714_v63 = vpop.f32.mrf.mxu2 }
 0x11d   :  { %v851_v0 = vpack.c.bf16 %v835_v61, %v835_v61  ;;  %v715_v1 = vadd.f32 %v714_v63, %v666_v62 }
 0x11e   :  { %v763_v44 = vpop.f32.mrf.mxu3  ;;  %v668_v2 = vpop.f32.mrf.mxu1 }
 0x11f   :  { %868 = vst.msk [vmem:[%s1791_s3 + $0x28] sm:$0xf] %vm857_vm1, %v851_v0  ;;  %v764_v3 = vadd.f32 %v763_v44, %v715_v1  ;;  %v669_v6 = vadd.f32 %v668_v2, %v1653_v22 }
 0x120   :  { %v815_v4 = vpop.f32.mrf.mxu0 }
 0x121   :  { %v813_v23 = vadd.f32 %v812_v59, %v764_v3 }
 0x123   :  { %v836_v5 = vmax.f32 %v813_v23, 0.0 }
 0x124   :  { %v717_v7 = vpop.f32.mrf.mxu2 }
 0x125   :  { %v852_v8 = vpack.c.bf16 %v836_v5, %v836_v5  ;;  %v718_v9 = vadd.f32 %v717_v7, %v669_v6 }
 0x126   :  { %v766_v50 = vpop.f32.mrf.mxu3  ;;  %v670_v10 = vpop.f32.mrf.mxu1 }
 0x127   :  { %869 = vst.msk [vmem:[%s1791_s3 + $0x2c] sm:$0xf] %vm857_vm1, %v852_v8  ;;  %v767_v11 = vadd.f32 %v766_v50, %v718_v9  ;;  %v671_v39 = vadd.f32 %v670_v10, %v1685_v38 }
 0x128   :  { %v817_v15 = vpop.f32.mrf.mxu0 }
 0x129   :  { %v816_v12 = vadd.f32 %v815_v4, %v767_v11 }
 0x12b   :  { %v837_v13 = vmax.f32 %v816_v12, 0.0 }
 0x12c   :  { %v719_v16 = vpop.f32.mrf.mxu2 }
 0x12d   :  { %v853_v17 = vpack.c.bf16 %v837_v13, %v837_v13  ;;  %v720_v19 = vadd.f32 %v719_v16, %v671_v39 }
 0x12e   :  { %v768_v22 = vpop.f32.mrf.mxu3  ;;  %v673_v21 = vpop.f32.mrf.mxu1 }
 0x12f   :  { %870 = vst.msk [vmem:[%s1791_s3 + $0x30] sm:$0xf] %vm857_vm1, %v853_v17  ;;  %v769_v24 = vadd.f32 %v768_v22, %v720_v19  ;;  %v674_v27 = vadd.f32 %v673_v21, %v1694_v46 }
 0x130   :  { %v820_v47 = vpop.f32.mrf.mxu0 }
 0x131   :  { %v818_v25 = vadd.f32 %v817_v15, %v769_v24 }
 0x133   :  { %v838_v26 = vmax.f32 %v818_v25, 0.0 }
 0x134   :  { %v722_v28 = vpop.f32.mrf.mxu2 }
 0x135   :  { %v854_v29 = vpack.c.bf16 %v838_v26, %v838_v26  ;;  %v723_v18 = vadd.f32 %v722_v28, %v674_v27 }
 0x136   :  { %v771_v38 = vpop.f32.mrf.mxu3  ;;  %v675_v31 = vpop.f32.mrf.mxu1 }
 0x137   :  { %871 = vst.msk [vmem:[%s1791_s3 + $0x34] sm:$0xf] %vm857_vm1, %v854_v29  ;;  %v772_v30 = vadd.f32 %v771_v38, %v723_v18  ;;  %v676_v35 = vadd.f32 %v675_v31, %v1702_v52 }
 0x138   :  { %v822_v42 = vpop.f32.mrf.mxu0 }
 0x139   :  { %v821_v32 = vadd.f32 %v820_v47, %v772_v30 }
 0x13b   :  { %v839_v33 = vmax.f32 %v821_v32, 0.0 }
 0x13c   :  { %v724_v36 = vpop.f32.mrf.mxu2 }
 0x13d   :  { %v855_v37 = vpack.c.bf16 %v839_v33, %v839_v33  ;;  %v725_v40 = vadd.f32 %v724_v36, %v676_v35 }
 0x13e   :  { %v773_v46 = vpop.f32.mrf.mxu3 }
 0x13f   :  { %872 = vst.msk [vmem:[%s1791_s3 + $0x38] sm:$0xf] %vm857_vm1, %v855_v37  ;;  %v774_v41 = vadd.f32 %v773_v46, %v725_v40 }
 0x141   :  { %v823_v43 = vadd.f32 %v822_v42, %v774_v41 }
 0x143   :  { %v840_v20 = vmax.f32 %v823_v43, 0.0 }
 0x145   :  { %v856_v45 = vpack.c.bf16 %v840_v20, %v840_v20 }
 0x147   :  { %873 = vst.msk [vmem:[%s1791_s3 + $0x3c] sm:$0xf] %vm857_vm1, %v856_v45 }

// kernel: nature_cnn_forward.7
= control target key start
LH: loop header
LB: loop body
LE: loop exit
PB: predicated region body
PF: predicated region fallthrough
CT: control target
= control target key end

     0   :  { %vm1137_vm0 = vcmask 523264   ;;  %s5093_s1 = inlined_call_operand.vmem [shape: bf16[576,512], index: 1, kind: input, shape index: {}]   ;;  %s5094_s0 = inlined_call_operand.vmem [shape: bf16[128,576], index: 0, kind: input, shape index: {}]   ;;  %s5095_s2 = inlined_call_operand.vmem [shape: f32[1,512], index: 2, kind: input, shape index: {}]   ;;  %s5096_s3 = inlined_call_operand.vmem [shape: f32[128,512], index: 3, kind: output, shape index: {}]  }
   0x1   :  { %v2548_v0 = vld [vmem:[%s5093_s1 + $0xe0] sm:$0xf]  ;;  %v3112_v1 = vld [vmem:[%s5093_s1 + $0xec] sm:$0xf0] }
   0x2   :  { %v2676_v2 = vld [vmem:[%s5093_s1 + $0x1e0] sm:$0xf]  ;;  %v2549_v3 = vor.u32 %v3112_v1, %v2548_v0  ;;  %v3144_v4 = vld [vmem:[%s5093_s1 + $0x1ec] sm:$0xf0] }
   0x3   :  { %v2804_v5 = vld [vmem:[%s5093_s1 + $0x2e0] sm:$0xf]  ;;  %v3176_v6 = vld [vmem:[%s5093_s1 + $0x2ec] sm:$0xf0]  ;;  %v2677_v7 = vor.u32 %v3144_v4, %v2676_v2 }
   0x4   :  { %v2805_v8 = vor.u32 %v3176_v6, %v2804_v5  ;;  %v2932_v9 = vld [vmem:[%s5093_s1 + $0x3e0] sm:$0xf]  ;;  %v3208_v10 = vld [vmem:[%s5093_s1 + $0x3ec] sm:$0xf0]  ;;  %1162 = vmatpush.bf16.msra.mxu0 %v2549_v3 }
   0x5   :  { %v2532_v11 = vld [vmem:[%s5093_s1 + $0xc0] sm:$0xf]  ;;  %v2933_v12 = vor.u32 %v3208_v10, %v2932_v9  ;;  %v3108_v13 = vld [vmem:[%s5093_s1 + $0xcc] sm:$0xf0]  ;;  %1211 = vmatpush.bf16.msra.mxu1 %v2677_v7 }
   0x6   :  { %v2660_v14 = vld [vmem:[%s5093_s1 + $0x1c0] sm:$0xf]  ;;  %v3140_v15 = vld [vmem:[%s5093_s1 + $0x1cc] sm:$0xf0]  ;;  %1260 = vmatpush.bf16.msra.mxu2 %v2805_v8  ;;  %v2533_v16 = vor.u32 %v3108_v13, %v2532_v11 }
   0x7   :  { %v2661_v17 = vor.u32 %v3140_v15, %v2660_v14  ;;  %v2788_v18 = vld [vmem:[%s5093_s1 + $0x2c0] sm:$0xf]  ;;  %v3172_v19 = vld [vmem:[%s5093_s1 + $0x2cc] sm:$0xf0]  ;;  %1309 = vmatpush.bf16.msra.mxu3 %v2933_v12 }
   0x8   :  { %v2916_v20 = vld [vmem:[%s5093_s1 + $0x3c0] sm:$0xf]  ;;  %v2789_v21 = vor.u32 %v3172_v19, %v2788_v18  ;;  %v3204_v22 = vld [vmem:[%s5093_s1 + $0x3cc] sm:$0xf0]  ;;  %1163 = vmatpush.bf16.msra.mxu0 %v2533_v16 }
   0x9   :  { %v2516_v23 = vld [vmem:[%s5093_s1 + $0xa0] sm:$0xf]  ;;  %v3104_v24 = vld [vmem:[%s5093_s1 + $0xac] sm:$0xf0]  ;;  %v2917_v25 = vor.u32 %v3204_v22, %v2916_v20  ;;  %1212 = vmatpush.bf16.msra.mxu1 %v2661_v17 }
   0xa   :  { %v2644_v26 = vld [vmem:[%s5093_s1 + $0x1a0] sm:$0xf]  ;;  %v3136_v27 = vld [vmem:[%s5093_s1 + $0x1ac] sm:$0xf0]  ;;  %v2517_v29 = vor.u32 %v3104_v24, %v2516_v23  ;;  %1261 = vmatpush.bf16.msra.mxu2 %v2789_v21 }
   0xb   :  { %v2772_v28 = vld [vmem:[%s5093_s1 + $0x2a0] sm:$0xf]  ;;  %v3168_v30 = vld [vmem:[%s5093_s1 + $0x2ac] sm:$0xf0]  ;;  %v2645_v33 = vor.u32 %v3136_v27, %v2644_v26  ;;  %1310 = vmatpush.bf16.msra.mxu3 %v2917_v25 }
   0xc   :  { %v2900_v31 = vld [vmem:[%s5093_s1 + $0x3a0] sm:$0xf]  ;;  %v3200_v32 = vld [vmem:[%s5093_s1 + $0x3ac] sm:$0xf0]  ;;  %v2773_v34 = vor.u32 %v3168_v30, %v2772_v28  ;;  %1164 = vmatpush.bf16.msra.mxu0 %v2517_v29  ;;  %v3044_v29 = vld [vmem:[%s5094_s0 + $0x10] sm:$0xf0] }
   0xd   :  { %v2500_v35 = vld [vmem:[%s5093_s1 + $0x80] sm:$0xf]  ;;  %v3100_v36 = vld [vmem:[%s5093_s1 + $0x8c] sm:$0xf0]  ;;  %v2901_v38 = vor.u32 %v3200_v32, %v2900_v31  ;;  %1213 = vmatpush.bf16.msra.mxu1 %v2645_v33  ;;  %v3042_v30 = vld [vmem:[%s5094_s0 + $0x4] sm:$0xf] }
   0xe   :  { %v2628_v37 = vld [vmem:[%s5093_s1 + $0x180] sm:$0xf]  ;;  %v3132_v39 = vld [vmem:[%s5093_s1 + $0x18c] sm:$0xf0]  ;;  %v2501_v44 = vor.u32 %v3100_v36, %v2500_v35  ;;  %1262 = vmatpush.bf16.msra.mxu2 %v2773_v34  ;;  %v2278_v31 = vld [vmem:[%s5094_s0 + $0x14] sm:$0xf0] }
   0xf   :  { %v2756_v40 = vld [vmem:[%s5093_s1 + $0x280] sm:$0xf]  ;;  %v3164_v41 = vld [vmem:[%s5093_s1 + $0x28c] sm:$0xf0]  ;;  %v2629_v45 = vor.u32 %v3132_v39, %v2628_v37  ;;  %1311 = vmatpush.bf16.msra.mxu3 %v2901_v38  ;;  %v3142_v32 = vld [vmem:[%s5093_s1 + $0x1e4] sm:$0xf] }
  0x10   :  { %v2884_v42 = vld [vmem:[%s5093_s1 + $0x380] sm:$0xf]  ;;  %v3196_v43 = vld [vmem:[%s5093_s1 + $0x38c] sm:$0xf0]  ;;  %v2757_v46 = vor.u32 %v3164_v41, %v2756_v40  ;;  %1165 = vmatpush.bf16.msra.mxu0 %v2501_v44  ;;  %v2678_v33 = vld [vmem:[%s5093_s1 + $0x1f0] sm:$0xf0] }
  0x11   :  { %v2484_v47 = vld [vmem:[%s5093_s1 + $0x60] sm:$0xf]  ;;  %v3096_v48 = vld [vmem:[%s5093_s1 + $0x6c] sm:$0xf0]  ;;  %v2885_v50 = vor.u32 %v3196_v43, %v2884_v42  ;;  %1214 = vmatpush.bf16.msra.mxu1 %v2629_v45  ;;  %v2284_v35 = vld [vmem:[%s5094_s0 + $0x8] sm:$0xf]  ;;  %v2681_v44 = vor.u32 %v3142_v32, %v2678_v33 }
  0x12   :  { %v2612_v49 = vld [vmem:[%s5093_s1 + $0x160] sm:$0xf]  ;;  %v3128_v51 = vld [vmem:[%s5093_s1 + $0x16c] sm:$0xf0]  ;;  %v2485_v56 = vor.u32 %v3096_v48, %v2484_v47  ;;  %1263 = vmatpush.bf16.msra.mxu2 %v2757_v46  ;;  %v3174_v36 = vld [vmem:[%s5093_s1 + $0x2e4] sm:$0xf] }
  0x13   :  { %v2740_v52 = vld [vmem:[%s5093_s1 + $0x260] sm:$0xf]  ;;  %v3160_v53 = vld [vmem:[%s5093_s1 + $0x26c] sm:$0xf0]  ;;  %v2613_v57 = vor.u32 %v3128_v51, %v2612_v49  ;;  %1312 = vmatpush.bf16.msra.mxu3 %v2885_v50  ;;  %v2806_v37 = vld [vmem:[%s5093_s1 + $0x2f0] sm:$0xf0] }
  0x14   :  { %v2868_v54 = vld [vmem:[%s5093_s1 + $0x360] sm:$0xf]  ;;  %v3192_v55 = vld [vmem:[%s5093_s1 + $0x36c] sm:$0xf0]  ;;  %v2741_v58 = vor.u32 %v3160_v53, %v2740_v52  ;;  %1166 = vmatpush.bf16.msra.mxu0 %v2485_v56  ;;  %v3045_v40 = vld [vmem:[%s5094_s0 + $0x18] sm:$0xf0]  ;;  %v2809_v49 = vor.u32 %v3174_v36, %v2806_v37  ;;  %v3495_v53 = vor.u32 %v3042_v30, %v2278_v31 }
  0x15   :  { %v2468_v59 = vld [vmem:[%s5093_s1 + $0x40] sm:$0xf]  ;;  %v3092_v60 = vld [vmem:[%s5093_s1 + $0x4c] sm:$0xf0]  ;;  %v2869_v62 = vor.u32 %v3192_v55, %v2868_v54  ;;  %1215 = vmatpush.bf16.msra.mxu1 %v2613_v57  ;;  %v3043_v41 = vld [vmem:[%s5094_s0 + $0xc] sm:$0xf]  ;;  %v3497_v54 = vor.u32 %v3045_v40, %v2284_v35 }
  0x16   :  { %v2596_v61 = vld [vmem:[%s5093_s1 + $0x140] sm:$0xf]  ;;  %v3124_v63 = vld [vmem:[%s5093_s1 + $0x14c] sm:$0xf0]  ;;  %v2469_v4 = vor.u32 %v3092_v60, %v2468_v59  ;;  %1264 = vmatpush.bf16.msra.mxu2 %v2741_v58  ;;  %v3110_v47 = vld [vmem:[%s5093_s1 + $0xe4] sm:$0xf] }
  0x17   :  { %v2724_v0 = vld [vmem:[%s5093_s1 + $0x240] sm:$0xf]  ;;  %v3156_v1 = vld [vmem:[%s5093_s1 + $0x24c] sm:$0xf0]  ;;  %v2597_v5 = vor.u32 %v3124_v63, %v2596_v61  ;;  %1313 = vmatpush.bf16.msra.mxu3 %v2869_v62  ;;  %v2550_v50 = vld [vmem:[%s5093_s1 + $0xf0] sm:$0xf0] }
  0x18   :  { %v2852_v2 = vld [vmem:[%s5093_s1 + $0x340] sm:$0xf]  ;;  %v3188_v3 = vld [vmem:[%s5093_s1 + $0x34c] sm:$0xf0]  ;;  %v2725_v6 = vor.u32 %v3156_v1, %v2724_v0  ;;  %1167 = vmatpush.bf16.msra.mxu0 %v2469_v4  ;;  %v3138_v51 = vld [vmem:[%s5093_s1 + $0x1c4] sm:$0xf]  ;;  %v2553_v59 = vor.u32 %v3110_v47, %v2550_v50 }
  0x19   :  { %v2452_v7 = vld [vmem:[%s5093_s1 + $0x20] sm:$0xf]  ;;  %v3088_v8 = vld [vmem:[%s5093_s1 + $0x2c] sm:$0xf0]  ;;  %v2853_v10 = vor.u32 %v3188_v3, %v2852_v2  ;;  %1216 = vmatpush.bf16.msra.mxu1 %v2597_v5  ;;  %v2662_v52 = vld [vmem:[%s5093_s1 + $0x1d0] sm:$0xf0] }
  0x1a   :  { %v2580_v9 = vld [vmem:[%s5093_s1 + $0x120] sm:$0xf]  ;;  %v3120_v11 = vld [vmem:[%s5093_s1 + $0x12c] sm:$0xf0]  ;;  %v2453_v17 = vor.u32 %v3088_v8, %v2452_v7  ;;  %1265 = vmatpush.bf16.msra.mxu2 %v2725_v6  ;;  %5114 = vst [vmem:[#allocation2_spill] sm:$0xff] %v3497_v54  ;;  %v2665_v60 = vor.u32 %v3138_v51, %v2662_v52 }
  0x1b   :  { %v2708_v12 = vld [vmem:[%s5093_s1 + $0x220] sm:$0xf]  ;;  %v3152_v13 = vld [vmem:[%s5093_s1 + $0x22c] sm:$0xf0]  ;;  %v2581_v21 = vor.u32 %v3120_v11, %v2580_v9  ;;  %1314 = vmatpush.bf16.msra.mxu3 %v2853_v10  ;;  %v3170_v55 = vld [vmem:[%s5093_s1 + $0x2c4] sm:$0xf] }
  0x1c   :  { %v2836_v14 = vld [vmem:[%s5093_s1 + $0x320] sm:$0xf]  ;;  %v3184_v15 = vld [vmem:[%s5093_s1 + $0x32c] sm:$0xf0]  ;;  %v2709_v22 = vor.u32 %v3152_v13, %v2708_v12  ;;  %1168 = vmatpush.bf16.msra.mxu0 %v2453_v17  ;;  %v2790_v56 = vld [vmem:[%s5093_s1 + $0x2d0] sm:$0xf0] }
  0x1d   :  { %v2436_v16 = vld [vmem:[%s5093_s1] sm:$0xf]  ;;  %v3084_v18 = vld [vmem:[%s5093_s1 + $0xc] sm:$0xf0]  ;;  %v2837_v26 = vor.u32 %v3184_v15, %v2836_v14  ;;  %1217 = vmatpush.bf16.msra.mxu1 %v2581_v21  ;;  %v2793_v61 = vor.u32 %v3170_v55, %v2790_v56  ;;  %v3106_v62 = vld [vmem:[%s5093_s1 + $0xc4] sm:$0xf] }
  0x1e   :  { %v2564_v19 = vld [vmem:[%s5093_s1 + $0x100] sm:$0xf]  ;;  %v3116_v20 = vld [vmem:[%s5093_s1 + $0x10c] sm:$0xf0]  ;;  %v2437_v34 = vor.u32 %v3084_v18, %v2436_v16  ;;  %1266 = vmatpush.bf16.msra.mxu2 %v2709_v22  ;;  %v2534_v63 = vld [vmem:[%s5093_s1 + $0xd0] sm:$0xf0] }
  0x1f   :  { %v2692_v23 = vld [vmem:[%s5093_s1 + $0x200] sm:$0xf]  ;;  %v3148_v24 = vld [vmem:[%s5093_s1 + $0x20c] sm:$0xf0]  ;;  %v2565_v38 = vor.u32 %v3116_v20, %v2564_v19  ;;  %1315 = vmatpush.bf16.msra.mxu3 %v2837_v26  ;;  %v3134_v0 = vld [vmem:[%s5093_s1 + $0x1a4] sm:$0xf]  ;;  %v2537_v3 = vor.u32 %v3106_v62, %v2534_v63 }
  0x20   :  { %v2820_v25 = vld [vmem:[%s5093_s1 + $0x300] sm:$0xf]  ;;  %v3180_v27 = vld [vmem:[%s5093_s1 + $0x30c] sm:$0xf0]  ;;  %v2693_v39 = vor.u32 %v3148_v24, %v2692_v23  ;;  %1169 = vmatpush.bf16.msra.mxu0 %v2437_v34  ;;  %v2646_v1 = vld [vmem:[%s5093_s1 + $0x1b0] sm:$0xf0] }
  0x21   :  { %v2276_v28 = vld [vmem:[%s5094_s0] sm:$0xf]  ;;  %v2821_v43 = vor.u32 %v3180_v27, %v2820_v25  ;;  %v3224_v46 = vld [vmem:[%s5093_s1 + $0x46c] sm:$0xf0]  ;;  %1218 = vmatpush.bf16.msra.mxu1 %v2565_v38  ;;  %v2649_v4 = vor.u32 %v3134_v0, %v2646_v1  ;;  %v3166_v6 = vld [vmem:[%s5093_s1 + $0x2a4] sm:$0xf] }
  0x22   :  { %v2286_v42 = vld [vmem:[%s5094_s0 + $0x1c] sm:$0xf0]  ;;  %v3484_v48 = vor.u32 %v3044_v29, %v2276_v28  ;;  %1267 = vmatpush.bf16.msra.mxu2 %v2693_v39  ;;  %v3220_v5 = vld [vmem:[%s5093_s1 + $0x44c] sm:$0xf0]  ;;  %v2774_v7 = vld [vmem:[%s5093_s1 + $0x2b0] sm:$0xf0] }
  0x23   :  { %v2996_v45 = vld [vmem:[%s5093_s1 + $0x460] sm:$0xf]  ;;  %v3505_v57 = vor.u32 %v3043_v41, %v2286_v42  ;;  %1316 = vmatpush.bf16.msra.mxu3 %v2821_v43  ;;  %v2777_v9 = vor.u32 %v3166_v6, %v2774_v7  ;;  %v3102_v10 = vld [vmem:[%s5093_s1 + $0xa4] sm:$0xf]  ;;  %v2518_v11 = vld [vmem:[%s5093_s1 + $0xb0] sm:$0xf0] }
  0x24   :  { %v2997_v58 = vor.u32 %v3224_v46, %v2996_v45  ;;  %1170 = vmatmul.bf16.vlgmr.msra.gmra.mxu0 %v3484_v48  ;;  %1219 = vmatmul.bf16.vlgmr.msra.gmra.mxu1 %v3495_v53  ;;  %v2980_v2 = vld [vmem:[%s5093_s1 + $0x440] sm:$0xf]  ;;  %v2521_v12 = vor.u32 %v3102_v10, %v2518_v11  ;;  %v2296_v13 = vld [vmem:[%s5094_s0 + $0x28] sm:$0xf]  ;;  %v3049_v14 = vld [vmem:[%s5094_s0 + $0x38] sm:$0xf0] }
  0x25   :  { %1268 = vmatmul.bf16.vlgmr.msra.gmra.mxu2 %v3497_v54  ;;  %1407 = vmatpush.bf16.msrb.mxu1 %v2553_v59  ;;  %v2981_v8 = vor.u32 %v3220_v5, %v2980_v2  ;;  %v3047_v15 = vld [vmem:[%s5094_s0 + $0x2c] sm:$0xf]  ;;  %v2298_v16 = vld [vmem:[%s5094_s0 + $0x3c] sm:$0xf0]  ;;  %v2304_v17 = vld [vmem:[%s5094_s0 + $0x30] sm:$0xf]  ;;  %v3565_v21 = vor.u32 %v3049_v14, %v2296_v13 }
  0x26   :  { %1456 = vmatpush.bf16.msrb.mxu2 %v2681_v44  ;;  %1317 = vmatmul.bf16.vlgmr.msra.gmra.mxu3 %v3505_v57  ;;  %v3050_v18 = vld [vmem:[%s5094_s0 + $0x40] sm:$0xf0]  ;;  %v3048_v19 = vld [vmem:[%s5094_s0 + $0x34] sm:$0xf]  ;;  %v2306_v20 = vld [vmem:[%s5094_s0 + $0x44] sm:$0xf0]  ;;  %v3567_v22 = vor.u32 %v3047_v15, %v2298_v16 }
  0x27   :  { %1505 = vmatpush.bf16.msrb.mxu3 %v2809_v49  ;;  %1362 = vmatpush.bf16.msrb.mxu0 %v2997_v58  ;;  %v3569_v23 = vor.u32 %v3050_v18, %v2304_v17  ;;  %v3571_v24 = vor.u32 %v3048_v19, %v2306_v20  ;;  %v3130_v25 = vld [vmem:[%s5093_s1 + $0x184] sm:$0xf]  ;;  %v2630_v26 = vld [vmem:[%s5093_s1 + $0x190] sm:$0xf0]  ;;  %v2316_v34 = vld [vmem:[%s5094_s0 + $0x50] sm:$0xf] }
  0x28   :  { %v3162_v27 = vld [vmem:[%s5093_s1 + $0x284] sm:$0xf]  ;;  %v2633_v28 = vor.u32 %v3130_v25, %v2630_v26  ;;  %v2758_v29 = vld [vmem:[%s5093_s1 + $0x290] sm:$0xf0]  ;;  %v2318_v37 = vld [vmem:[%s5094_s0 + $0x64] sm:$0xf0] }
  0x29   :  { %1408 = vmatpush.bf16.msrb.mxu1 %v2537_v3  ;;  %5115 = vst [vmem:[#allocation3_spill] sm:$0xff] %v3569_v23  ;;  %v3098_v30 = vld [vmem:[%s5093_s1 + $0x84] sm:$0xf]  ;;  %v2502_v31 = vld [vmem:[%s5093_s1 + $0x90] sm:$0xf0]  ;;  %v2761_v32 = vor.u32 %v3162_v27, %v2758_v29 }
  0x2a   :  { %1457 = vmatpush.bf16.msrb.mxu2 %v2665_v60  ;;  %v2505_v33 = vor.u32 %v3098_v30, %v2502_v31  ;;  %v3054_v35 = vld [vmem:[%s5094_s0 + $0x60] sm:$0xf0]  ;;  %v3052_v36 = vld [vmem:[%s5094_s0 + $0x54] sm:$0xf]  ;;  %v2324_v38 = vld [vmem:[%s5094_s0 + $0x58] sm:$0xf] }
  0x2b   :  { %1506 = vmatpush.bf16.msrb.mxu3 %v2793_v61  ;;  %1363 = vmatpush.bf16.msrb.mxu0 %v2981_v8  ;;  %v3055_v39 = vld [vmem:[%s5094_s0 + $0x68] sm:$0xf0]  ;;  %v3053_v40 = vld [vmem:[%s5094_s0 + $0x5c] sm:$0xf]  ;;  %v2326_v41 = vld [vmem:[%s5094_s0 + $0x6c] sm:$0xf0]  ;;  %v3619_v42 = vor.u32 %v3054_v35, %v2316_v34  ;;  %v3621_v43 = vor.u32 %v3052_v36, %v2318_v37 }
  0x2c   :  { %v3623_v44 = vor.u32 %v3055_v39, %v2324_v38  ;;  %v3625_v45 = vor.u32 %v3053_v40, %v2326_v41  ;;  %v3126_v46 = vld [vmem:[%s5093_s1 + $0x164] sm:$0xf]  ;;  %v2614_v47 = vld [vmem:[%s5093_s1 + $0x170] sm:$0xf0]  ;;  %v2964_v49 = vld [vmem:[%s5093_s1 + $0x420] sm:$0xf] }
  0x2d   :  { %1409 = vmatpush.bf16.msrb.mxu1 %v2521_v12  ;;  %v2617_v50 = vor.u32 %v3126_v46, %v2614_v47  ;;  %v3216_v51 = vld [vmem:[%s5093_s1 + $0x42c] sm:$0xf0]  ;;  %v3158_v52 = vld [vmem:[%s5093_s1 + $0x264] sm:$0xf]  ;;  %v2742_v55 = vld [vmem:[%s5093_s1 + $0x270] sm:$0xf0] }
  0x2e   :  { %1458 = vmatpush.bf16.msrb.mxu2 %v2649_v4  ;;  %5116 = vst [vmem:[#allocation4_spill] sm:$0xff] %v3623_v44  ;;  %v2965_v56 = vor.u32 %v3216_v51, %v2964_v49  ;;  %v2745_v58 = vor.u32 %v3158_v52, %v2742_v55  ;;  %v3094_v59 = vld [vmem:[%s5093_s1 + $0x64] sm:$0xf]  ;;  %v2486_v60 = vld [vmem:[%s5093_s1 + $0x70] sm:$0xf0] }
  0x2f   :  { %1507 = vmatpush.bf16.msrb.mxu3 %v2777_v9  ;;  %v2489_v61 = vor.u32 %v3094_v59, %v2486_v60  ;;  %v2336_v62 = vld [vmem:[%s5094_s0 + $0x78] sm:$0xf]  ;;  %v3059_v63 = vld [vmem:[%s5094_s0 + $0x88] sm:$0xf0]  ;;  %v3057_v0 = vld [vmem:[%s5094_s0 + $0x7c] sm:$0xf] }
  0x30   :  { %1364 = vmatpush.bf16.msrb.mxu0 %v2965_v56  ;;  %v2338_v1 = vld [vmem:[%s5094_s0 + $0x8c] sm:$0xf0]  ;;  %v2344_v2 = vld [vmem:[%s5094_s0 + $0x80] sm:$0xf]  ;;  %v3060_v3 = vld [vmem:[%s5094_s0 + $0x90] sm:$0xf0]  ;;  %v3679_v6 = vor.u32 %v3059_v63, %v2336_v62 }
  0x31   :  { %1410 = vmatpush.bf16.msrb.mxu1 %v2505_v33  ;;  %v3058_v4 = vld [vmem:[%s5094_s0 + $0x84] sm:$0xf]  ;;  %v2346_v5 = vld [vmem:[%s5094_s0 + $0x94] sm:$0xf0]  ;;  %v3681_v7 = vor.u32 %v3057_v0, %v2338_v1  ;;  %v3683_v8 = vor.u32 %v3060_v3, %v2344_v2  ;;  %v2598_v11 = vld [vmem:[%s5093_s1 + $0x150] sm:$0xf0] }
  0x32   :  { %1459 = vmatpush.bf16.msrb.mxu2 %v2633_v28  ;;  %v3685_v9 = vor.u32 %v3058_v4, %v2346_v5  ;;  %v3122_v10 = vld [vmem:[%s5093_s1 + $0x144] sm:$0xf]  ;;  %v2726_v14 = vld [vmem:[%s5093_s1 + $0x250] sm:$0xf0]  ;;  %v2356_v19 = vld [vmem:[%s5094_s0 + $0xa0] sm:$0xf] }
  0x33   :  { %1508 = vmatpush.bf16.msrb.mxu3 %v2761_v32  ;;  %5117 = vst [vmem:[#allocation5_spill] sm:$0xff] %v3683_v8  ;;  %v3154_v12 = vld [vmem:[%s5093_s1 + $0x244] sm:$0xf]  ;;  %v2601_v13 = vor.u32 %v3122_v10, %v2598_v11  ;;  %v2470_v16 = vld [vmem:[%s5093_s1 + $0x50] sm:$0xf0] }
  0x34   :  { %1175 = vmatmul.bf16.gmra.mxu0 %v3565_v21  ;;  %1224 = vmatmul.bf16.gmra.mxu1 %v3567_v22  ;;  %v3090_v15 = vld [vmem:[%s5093_s1 + $0x44] sm:$0xf]  ;;  %v2729_v17 = vor.u32 %v3154_v12, %v2726_v14  ;;  %v3064_v20 = vld [vmem:[%s5094_s0 + $0xb0] sm:$0xf0]  ;;  %v2358_v26 = vld [vmem:[%s5094_s0 + $0xb4] sm:$0xf0] }
  0x35   :  { %1273 = vmatmul.bf16.gmra.mxu2 %v3569_v23  ;;  %1411 = vmatpush.bf16.msrb.mxu1 %v2489_v61  ;;  %v2473_v18 = vor.u32 %v3090_v15, %v2470_v16  ;;  %v3062_v25 = vld [vmem:[%s5094_s0 + $0xa4] sm:$0xf]  ;;  %v2364_v27 = vld [vmem:[%s5094_s0 + $0xa8] sm:$0xf]  ;;  %v3065_v28 = vld [vmem:[%s5094_s0 + $0xb8] sm:$0xf0]  ;;  %v3733_v31 = vor.u32 %v3064_v20, %v2356_v19 }
  0x36   :  { %1322 = vmatmul.bf16.gmra.mxu3 %v3571_v24  ;;  %1460 = vmatpush.bf16.msrb.mxu2 %v2617_v50  ;;  %v3063_v29 = vld [vmem:[%s5094_s0 + $0xac] sm:$0xf]  ;;  %v2366_v30 = vld [vmem:[%s5094_s0 + $0xbc] sm:$0xf0]  ;;  %v3735_v32 = vor.u32 %v3062_v25, %v2358_v26  ;;  %v3737_v33 = vor.u32 %v3065_v28, %v2364_v27  ;;  %v3118_v35 = vld [vmem:[%s5093_s1 + $0x124] sm:$0xf] }
  0x37   :  { %1509 = vmatpush.bf16.msrb.mxu3 %v2745_v58  ;;  %v3739_v34 = vor.u32 %v3063_v29, %v2366_v30  ;;  %v2582_v36 = vld [vmem:[%s5093_s1 + $0x130] sm:$0xf0]  ;;  %v2948_v37 = vld [vmem:[%s5093_s1 + $0x400] sm:$0xf]  ;;  %v3212_v39 = vld [vmem:[%s5093_s1 + $0x40c] sm:$0xf0] }
  0x38   :  { %5118 = vst [vmem:[#allocation6_spill] sm:$0xff] %v3737_v33  ;;  %v2585_v38 = vor.u32 %v3118_v35, %v2582_v36  ;;  %v3150_v40 = vld [vmem:[%s5093_s1 + $0x224] sm:$0xf]  ;;  %v2710_v41 = vld [vmem:[%s5093_s1 + $0x230] sm:$0xf0]  ;;  %v2949_v46 = vor.u32 %v3212_v39, %v2948_v37 }
  0x39   :  { %1412 = vmatpush.bf16.msrb.mxu1 %v2473_v18  ;;  %v2713_v47 = vor.u32 %v3150_v40, %v2710_v41  ;;  %v3086_v49 = vld [vmem:[%s5093_s1 + $0x24] sm:$0xf]  ;;  %v2454_v50 = vld [vmem:[%s5093_s1 + $0x30] sm:$0xf0]  ;;  %v2376_v52 = vld [vmem:[%s5094_s0 + $0xc8] sm:$0xf] }
  0x3a   :  { %1461 = vmatpush.bf16.msrb.mxu2 %v2601_v13  ;;  %v2457_v51 = vor.u32 %v3086_v49, %v2454_v50  ;;  %1365 = vmatpush.bf16.msrb.mxu0 %v2949_v46  ;;  %v3069_v55 = vld [vmem:[%s5094_s0 + $0xd8] sm:$0xf0]  ;;  %v3067_v56 = vld [vmem:[%s5094_s0 + $0xcc] sm:$0xf]  ;;  %v2378_v58 = vld [vmem:[%s5094_s0 + $0xdc] sm:$0xf0] }
  0x3b   :  { %1510 = vmatpush.bf16.msrb.mxu3 %v2729_v17  ;;  %v2384_v59 = vld [vmem:[%s5094_s0 + $0xd0] sm:$0xf]  ;;  %v3070_v60 = vld [vmem:[%s5094_s0 + $0xe0] sm:$0xf0]  ;;  %v3068_v61 = vld [vmem:[%s5094_s0 + $0xd4] sm:$0xf]  ;;  %v3793_v63 = vor.u32 %v3069_v55, %v2376_v52  ;;  %v3795_v0 = vor.u32 %v3067_v56, %v2378_v58 }
  0x3c   :  { %v2386_v62 = vld [vmem:[%s5094_s0 + $0xe4] sm:$0xf0]  ;;  %v3797_v1 = vor.u32 %v3070_v60, %v2384_v59  ;;  %v3114_v3 = vld [vmem:[%s5093_s1 + $0x104] sm:$0xf]  ;;  %v2566_v4 = vld [vmem:[%s5093_s1 + $0x110] sm:$0xf0] }
  0x3d   :  { %1413 = vmatpush.bf16.msrb.mxu1 %v2457_v51  ;;  %v3799_v2 = vor.u32 %v3068_v61, %v2386_v62  ;;  %v3146_v5 = vld [vmem:[%s5093_s1 + $0x204] sm:$0xf]  ;;  %v2569_v10 = vor.u32 %v3114_v3, %v2566_v4  ;;  %v2694_v11 = vld [vmem:[%s5093_s1 + $0x210] sm:$0xf0]  ;;  %v2396_v16 = vld [vmem:[%s5094_s0 + $0xf0] sm:$0xf] }
  0x3e   :  { %1462 = vmatpush.bf16.msrb.mxu2 %v2585_v38  ;;  %5119 = vst [vmem:[#allocation7_spill] sm:$0xff] %v3797_v1  ;;  %v3082_v12 = vld [vmem:[%s5093_s1 + $0x4] sm:$0xf]  ;;  %v2438_v13 = vld [vmem:[%s5093_s1 + $0x10] sm:$0xf0]  ;;  %v2697_v14 = vor.u32 %v3146_v5, %v2694_v11 }
  0x3f   :  { %1511 = vmatpush.bf16.msrb.mxu3 %v2713_v47  ;;  %v2441_v15 = vor.u32 %v3082_v12, %v2438_v13  ;;  %v3074_v17 = vld [vmem:[%s5094_s0 + $0x100] sm:$0xf0]  ;;  %v3072_v18 = vld [vmem:[%s5094_s0 + $0xf4] sm:$0xf]  ;;  %v2398_v19 = vld [vmem:[%s5094_s0 + $0x104] sm:$0xf0] }
  0x40   :  { %v2404_v20 = vld [vmem:[%s5094_s0 + $0xf8] sm:$0xf]  ;;  %v3075_v25 = vld [vmem:[%s5094_s0 + $0x108] sm:$0xf0]  ;;  %v3073_v26 = vld [vmem:[%s5094_s0 + $0xfc] sm:$0xf]  ;;  %v3847_v28 = vor.u32 %v3074_v17, %v2396_v16  ;;  %v3849_v29 = vor.u32 %v3072_v18, %v2398_v19 }
  0x41   :  { %1414 = vmatpush.bf16.msrb.mxu1 %v2441_v15  ;;  %v2406_v27 = vld [vmem:[%s5094_s0 + $0x10c] sm:$0xf0]  ;;  %v3851_v30 = vor.u32 %v3075_v25, %v2404_v20  ;;  %v2556_v36 = vld [vmem:[%s5093_s1 + $0xe8] sm:$0xf]  ;;  %v3113_v37 = vld [vmem:[%s5093_s1 + $0xf4] sm:$0xf0] }
  0x42   :  { %1463 = vmatpush.bf16.msrb.mxu2 %v2569_v10  ;;  %5120 = vst [vmem:[#allocation8_spill] sm:$0xff] %v3849_v29  ;;  %v3853_v35 = vor.u32 %v3073_v26, %v2406_v27  ;;  %v3206_v38 = vld [vmem:[%s5093_s1 + $0x3e4] sm:$0xf]  ;;  %v2557_v39 = vor.u32 %v3113_v37, %v2556_v36  ;;  %v2934_v40 = vld [vmem:[%s5093_s1 + $0x3f0] sm:$0xf0] }
  0x43   :  { %1512 = vmatpush.bf16.msrb.mxu3 %v2697_v14  ;;  %5121 = vst [vmem:[#allocation9_spill] sm:$0xff] %v3851_v30  ;;  %v2684_v41 = vld [vmem:[%s5093_s1 + $0x1e8] sm:$0xf]  ;;  %v3145_v46 = vld [vmem:[%s5093_s1 + $0x1f4] sm:$0xf0]  ;;  %v2937_v47 = vor.u32 %v3206_v38, %v2934_v40 }
  0x44   :  { %1180 = vmatmul.bf16.gmra.mxu0 %v3619_v42  ;;  %1229 = vmatmul.bf16.gmra.mxu1 %v3621_v43  ;;  %v2685_v49 = vor.u32 %v3145_v46, %v2684_v41  ;;  %v3222_v50 = vld [vmem:[%s5093_s1 + $0x464] sm:$0xf]  ;;  %v2998_v51 = vld [vmem:[%s5093_s1 + $0x470] sm:$0xf0]  ;;  %v2416_v55 = vld [vmem:[%s5094_s0 + $0x118] sm:$0xf] }
  0x45   :  { %1278 = vmatmul.bf16.gmra.mxu2 %v3623_v44  ;;  %1554 = vmatpush.bf16.msra.mxu0 %v2937_v47  ;;  %v3001_v52 = vor.u32 %v3222_v50, %v2998_v51  ;;  %v3079_v56 = vld [vmem:[%s5094_s0 + $0x128] sm:$0xf0]  ;;  %v3077_v58 = vld [vmem:[%s5094_s0 + $0x11c] sm:$0xf]  ;;  %v2418_v59 = vld [vmem:[%s5094_s0 + $0x12c] sm:$0xf0] }
  0x46   :  { %1327 = vmatmul.bf16.gmra.mxu3 %v3625_v45  ;;  %1652 = vmatpush.bf16.msra.mxu2 %v2557_v39  ;;  %v2424_v60 = vld [vmem:[%s5094_s0 + $0x120] sm:$0xf]  ;;  %v3080_v61 = vld [vmem:[%s5094_s0 + $0x130] sm:$0xf0]  ;;  %v3078_v62 = vld [vmem:[%s5094_s0 + $0x124] sm:$0xf]  ;;  %v3907_v4 = vor.u32 %v3079_v56, %v2416_v55  ;;  %v3909_v5 = vor.u32 %v3077_v58, %v2418_v59 }
  0x47   :  { %1701 = vmatpush.bf16.msra.mxu3 %v2685_v49  ;;  %1607 = vmatpush.bf16.msra.mxu1 %v3001_v52  ;;  %v2426_v3 = vld [vmem:[%s5094_s0 + $0x134] sm:$0xf0]  ;;  %v3911_v10 = vor.u32 %v3080_v61, %v2424_v60  ;;  %v2540_v12 = vld [vmem:[%s5093_s1 + $0xc8] sm:$0xf]  ;;  %v3202_v14 = vld [vmem:[%s5093_s1 + $0x3c4] sm:$0xf] }
  0x48   :  { %v3913_v11 = vor.u32 %v3078_v62, %v2426_v3  ;;  %v3109_v13 = vld [vmem:[%s5093_s1 + $0xd4] sm:$0xf0]  ;;  %v2918_v16 = vld [vmem:[%s5093_s1 + $0x3d0] sm:$0xf0]  ;;  %v2668_v17 = vld [vmem:[%s5093_s1 + $0x1c8] sm:$0xf] }
  0x49   :  { %5122 = vst [vmem:[#allocation10_spill] sm:$0xff] %v3911_v10  ;;  %v2541_v15 = vor.u32 %v3109_v13, %v2540_v12  ;;  %v3141_v18 = vld [vmem:[%s5093_s1 + $0x1d4] sm:$0xf0]  ;;  %v2921_v19 = vor.u32 %v3202_v14, %v2918_v16  ;;  %v3940_v25 = vld [vmem:[%s5095_s2] sm:$0xf] }
  0x4a   :  { %v2669_v20 = vor.u32 %v3141_v18, %v2668_v17  ;;  %v2292_v26 = vld [vmem:[%s5094_s0 + $0x10] sm:$0xf]  ;;  %v3046_v27 = vld [vmem:[%s5094_s0 + $0x20] sm:$0xf0]  ;;  %v3949_v36 = vperm.slane %v3940_v25, 0 }
  0x4b   :  { %1653 = vmatpush.bf16.msra.mxu2 %v2541_v15  ;;  %1555 = vmatpush.bf16.msra.mxu0 %v2921_v19  ;;  %v3951_v37 = vor.u32 %v3046_v27, %v2292_v26  ;;  %v2524_v46 = vld [vmem:[%s5093_s1 + $0xa8] sm:$0xf]  ;;  %v3105_v47 = vld [vmem:[%s5093_s1 + $0xb4] sm:$0xf0]  ;;  %v3198_v49 = vld [vmem:[%s5093_s1 + $0x3a4] sm:$0xf] }
  0x4c   :  { %1702 = vmatpush.bf16.msra.mxu3 %v2669_v20  ;;  %v2525_v50 = vor.u32 %v3105_v47, %v2524_v46  ;;  %v2902_v51 = vld [vmem:[%s5093_s1 + $0x3b0] sm:$0xf0]  ;;  %v2652_v52 = vld [vmem:[%s5093_s1 + $0x1a8] sm:$0xf]  ;;  %v3137_v55 = vld [vmem:[%s5093_s1 + $0x1b4] sm:$0xf0] }
  0x4d   :  { %v2905_v58 = vor.u32 %v3198_v49, %v2902_v51  ;;  %v2653_v59 = vor.u32 %v3137_v55, %v2652_v52  ;;  %v3218_v14 = vld [vmem:[%s5093_s1 + $0x444] sm:$0xf]  ;;  %v2982_v15 = vld [vmem:[%s5093_s1 + $0x450] sm:$0xf0]  ;;  %v2312_v18 = vld [vmem:[%s5094_s0 + $0x38] sm:$0xf] }
  0x4e   :  { %v2985_v17 = vor.u32 %v3218_v14, %v2982_v15  ;;  %v3051_v19 = vld [vmem:[%s5094_s0 + $0x48] sm:$0xf0]  ;;  %v2508_v49 = vld [vmem:[%s5093_s1 + $0x88] sm:$0xf]  ;;  %v3194_v51 = vld [vmem:[%s5093_s1 + $0x384] sm:$0xf] }
  0x4f   :  { %1654 = vmatpush.bf16.msra.mxu2 %v2525_v50  ;;  %1556 = vmatpush.bf16.msra.mxu0 %v2905_v58  ;;  %v3992_v26 = vor.u32 %v3051_v19, %v2312_v18  ;;  %v3101_v50 = vld [vmem:[%s5093_s1 + $0x94] sm:$0xf0]  ;;  %v2886_v55 = vld [vmem:[%s5093_s1 + $0x390] sm:$0xf0]  ;;  %v2332_v18 = vld [vmem:[%s5094_s0 + $0x60] sm:$0xf] }
  0x50   :  { %1703 = vmatpush.bf16.msra.mxu3 %v2653_v59  ;;  %1608 = vmatpush.bf16.msra.mxu1 %v2985_v17  ;;  %v2509_v52 = vor.u32 %v3101_v50, %v2508_v49  ;;  %v3133_v58 = vld [vmem:[%s5093_s1 + $0x194] sm:$0xf0]  ;;  %v3056_v19 = vld [vmem:[%s5094_s0 + $0x70] sm:$0xf0] }
  0x53   :  { %1655 = vmatpush.bf16.msra.mxu2 %v2509_v52  ;;  %v3097_v52 = vld [vmem:[%s5093_s1 + $0x74] sm:$0xf0] }
  0x54   :  { %1185 = vmatmul.bf16.gmra.mxu0 %v3679_v6  ;;  %1234 = vmatmul.bf16.gmra.mxu1 %v3681_v7 }
  0x55   :  { %1283 = vmatmul.bf16.gmra.mxu2 %v3683_v8 }
  0x56   :  { %1332 = vmatmul.bf16.gmra.mxu3 %v3685_v9 }
  0x64   :  { %1190 = vmatmul.bf16.gmra.mxu0 %v3733_v31  ;;  %1239 = vmatmul.bf16.gmra.mxu1 %v3735_v32 }
  0x65   :  { %1288 = vmatmul.bf16.gmra.mxu2 %v3737_v33 }
  0x66   :  { %1337 = vmatmul.bf16.gmra.mxu3 %v3739_v34 }
  0x74   :  { %1195 = vmatmul.bf16.gmra.mxu0 %v3793_v63  ;;  %1244 = vmatmul.bf16.gmra.mxu1 %v3795_v0 }
  0x75   :  { %1293 = vmatmul.bf16.gmra.mxu2 %v3797_v1 }
  0x76   :  { %1342 = vmatmul.bf16.gmra.mxu3 %v3799_v2 }
  0x84   :  { %1200 = vmatmul.bf16.gmra.mxu0 %v3847_v28  ;;  %1249 = vmatmul.bf16.gmra.mxu1 %v3849_v29 }
  0x85   :  { %1298 = vmatmul.bf16.gmra.mxu2 %v3851_v30 }
  0x86   :  { %1347 = vmatmul.bf16.gmra.mxu3 %v3853_v35 }
  0x94   :  { %1205 = vmatmul.bf16.gmra.mxu0 %v3907_v4  ;;  %1254 = vmatmul.bf16.gmra.mxu1 %v3909_v5 }
  0x95   :  { %1303 = vmatmul.bf16.gmra.mxu2 %v3911_v10 }
  0x96   :  { %1352 = vmatmul.bf16.gmra.mxu3 %v3913_v11 }
  0xa1   :  { %v1171_v38 = vpop.f32.mrf.mxu0  ;;  %v1220_v40 = vpop.f32.mrf.mxu1 }
  0xa2   :  { %v1172_v39 = vadd.f32 %v1171_v38, %v3949_v36 }
  0xa4   :  { %v1221_v41 = vadd.f32 %v1220_v40, %v1172_v39  ;;  %3010 = vmatmul.msk.bf16.vlgmr.msrb.gmra.mxu0 %vm1137_vm0, %v3951_v37  ;;  %1415 = vmatmul.bf16.vlgmr.msrb.gmra.mxu1 %v3484_v48 }
  0xa5   :  { %1464 = vmatmul.bf16.vlgmr.msrb.gmra.mxu2 %v3495_v53 }
  0xa6   :  { %1513 = vmatmul.bf16.vlgmr.msrb.gmra.mxu3 %v3497_v54 }
  0xa8   :  { %v1269_v56 = vpop.f32.mrf.mxu2 }
  0xa9   :  { %v1270_v60 = vadd.f32 %v1269_v56, %v1221_v41  ;;  %v1318_v61 = vpop.f32.mrf.mxu3  ;;  %v1173_v62 = vpop.f32.mrf.mxu0  ;;  %v2636_v56 = vld [vmem:[%s5093_s1 + $0x188] sm:$0xf] }
  0xaa   :  { %v1174_v3 = vadd.f32 %v1173_v62, %v3949_v36  ;;  %v1222_v12 = vpop.f32.mrf.mxu1 }
  0xab   :  { %v3978_v13 = vadd.f32 %v1318_v61, %v1270_v60  ;;  %v2889_v60 = vor.u32 %v3194_v51, %v2886_v55  ;;  %v2637_v61 = vor.u32 %v3133_v58, %v2636_v56  ;;  %v2492_v51 = vld [vmem:[%s5093_s1 + $0x68] sm:$0xf]  ;;  %v3190_v55 = vld [vmem:[%s5093_s1 + $0x364] sm:$0xf]  ;;  %v2870_v58 = vld [vmem:[%s5093_s1 + $0x370] sm:$0xf0] }
  0xac   :  { %v1223_v16 = vadd.f32 %v1222_v12, %v1174_v3  ;;  %v2493_v56 = vor.u32 %v3097_v52, %v2492_v51 }
  0xad   :  { %1557 = vmatpush.bf16.msra.mxu0 %v2889_v60  ;;  %1704 = vmatpush.bf16.msra.mxu3 %v2637_v61  ;;  %v3129_v60 = vld [vmem:[%s5093_s1 + $0x174] sm:$0xf0] }
  0xae   :  { %1656 = vmatpush.bf16.msra.mxu2 %v2493_v56 }
  0xb0   :  { %v1271_v20 = vpop.f32.mrf.mxu2 }
  0xb1   :  { %v1272_v27 = vadd.f32 %v1271_v20, %v1223_v16  ;;  %v1320_v38 = vpop.f32.mrf.mxu3  ;;  %v1176_v39 = vpop.f32.mrf.mxu0 }
  0xb2   :  { %v1177_v40 = vadd.f32 %v1176_v39, %v3949_v36  ;;  %v1225_v41 = vpop.f32.mrf.mxu1 }
  0xb3   :  { %v3995_v46 = vadd.f32 %v1320_v38, %v1272_v27  ;;  %v4029_v27 = vor.u32 %v3056_v19, %v2332_v18 }
  0xb4   :  { %v1226_v47 = vadd.f32 %v1225_v41, %v1177_v40  ;;  %3011 = vmatmul.msk.bf16.gmra.mxu0 %vm1137_vm0, %v3992_v26  ;;  %1420 = vmatmul.bf16.gmra.mxu1 %v3565_v21 }
  0xb5   :  { %1469 = vmatmul.bf16.gmra.mxu2 %v3567_v22 }
  0xb6   :  { %1518 = vmatmul.bf16.gmra.mxu3 %v3569_v23 }
  0xb8   :  { %v1274_v59 = vpop.f32.mrf.mxu2 }
  0xb9   :  { %v1275_v62 = vadd.f32 %v1274_v59, %v1226_v47  ;;  %v1323_v3 = vpop.f32.mrf.mxu3  ;;  %v1178_v12 = vpop.f32.mrf.mxu0  ;;  %v2620_v59 = vld [vmem:[%s5093_s1 + $0x168] sm:$0xf] }
  0xba   :  { %v1179_v14 = vadd.f32 %v1178_v12, %v3949_v36  ;;  %v1227_v15 = vpop.f32.mrf.mxu1 }
  0xbb   :  { %v4021_v16 = vadd.f32 %v1323_v3, %v1275_v62  ;;  %v2873_v62 = vor.u32 %v3190_v55, %v2870_v58  ;;  %v2621_v3 = vor.u32 %v3129_v60, %v2620_v59 }
  0xbc   :  { %v1228_v17 = vadd.f32 %v1227_v15, %v1179_v14 }
  0xbd   :  { %1558 = vmatpush.bf16.msra.mxu0 %v2873_v62  ;;  %1705 = vmatpush.bf16.msra.mxu3 %v2621_v3  ;;  %v2476_v62 = vld [vmem:[%s5093_s1 + $0x48] sm:$0xf]  ;;  %v3093_v3 = vld [vmem:[%s5093_s1 + $0x54] sm:$0xf0] }
  0xc0   :  { %v1276_v20 = vpop.f32.mrf.mxu2 }
  0xc1   :  { %v1277_v38 = vadd.f32 %v1276_v20, %v1228_v17  ;;  %v1325_v39 = vpop.f32.mrf.mxu3  ;;  %v1181_v40 = vpop.f32.mrf.mxu0  ;;  %v3214_v20 = vld [vmem:[%s5093_s1 + $0x424] sm:$0xf] }
  0xc2   :  { %v1182_v41 = vadd.f32 %v1181_v40, %v3949_v36  ;;  %v1230_v47 = vpop.f32.mrf.mxu1 }
  0xc3   :  { %v4032_v49 = vadd.f32 %v1325_v39, %v1277_v38  ;;  %v2966_v38 = vld [vmem:[%s5093_s1 + $0x430] sm:$0xf0] }
  0xc4   :  { %v1231_v50 = vadd.f32 %v1230_v47, %v1182_v41  ;;  %3012 = vmatmul.msk.bf16.gmra.mxu0 %vm1137_vm0, %v4029_v27  ;;  %1425 = vmatmul.bf16.gmra.mxu1 %v3619_v42  ;;  %v2969_v40 = vor.u32 %v3214_v20, %v2966_v38  ;;  %v2352_v41 = vld [vmem:[%s5094_s0 + $0x88] sm:$0xf]  ;;  %v3061_v47 = vld [vmem:[%s5094_s0 + $0x98] sm:$0xf0] }
  0xc5   :  { %1474 = vmatmul.bf16.gmra.mxu2 %v3621_v43  ;;  %v4072_v51 = vor.u32 %v3061_v47, %v2352_v41 }
  0xc6   :  { %1523 = vmatmul.bf16.gmra.mxu3 %v3623_v44  ;;  %1609 = vmatpush.bf16.msra.mxu1 %v2969_v40 }
  0xc8   :  { %v1279_v61 = vpop.f32.mrf.mxu2 }
  0xc9   :  { %v1280_v12 = vadd.f32 %v1279_v61, %v1231_v50  ;;  %v1328_v14 = vpop.f32.mrf.mxu3  ;;  %v1183_v15 = vpop.f32.mrf.mxu0 }
  0xca   :  { %v1184_v17 = vadd.f32 %v1183_v15, %v3949_v36  ;;  %v1232_v18 = vpop.f32.mrf.mxu1  ;;  %v2854_v15 = vld [vmem:[%s5093_s1 + $0x350] sm:$0xf0] }
  0xcb   :  { %v4058_v19 = vadd.f32 %v1328_v14, %v1280_v12  ;;  %v3186_v12 = vld [vmem:[%s5093_s1 + $0x344] sm:$0xf]  ;;  %v2477_v14 = vor.u32 %v3093_v3, %v2476_v62 }
  0xcc   :  { %v1233_v39 = vadd.f32 %v1232_v18, %v1184_v17  ;;  %v2604_v17 = vld [vmem:[%s5093_s1 + $0x148] sm:$0xf]  ;;  %v3125_v18 = vld [vmem:[%s5093_s1 + $0x154] sm:$0xf0]  ;;  %v2857_v38 = vor.u32 %v3186_v12, %v2854_v15 }
  0xcd   :  { %1657 = vmatpush.bf16.msra.mxu2 %v2477_v14 }
  0xce   :  { %1559 = vmatpush.bf16.msra.mxu0 %v2857_v38  ;;  %v2460_v38 = vld [vmem:[%s5093_s1 + $0x28] sm:$0xf] }
  0xd0   :  { %v1281_v50 = vpop.f32.mrf.mxu2 }
  0xd1   :  { %v1282_v52 = vadd.f32 %v1281_v50, %v1233_v39  ;;  %v1330_v55 = vpop.f32.mrf.mxu3  ;;  %v1186_v56 = vpop.f32.mrf.mxu0  ;;  %v2605_v39 = vor.u32 %v3125_v18, %v2604_v17 }
  0xd2   :  { %v1187_v58 = vadd.f32 %v1186_v56, %v3949_v36  ;;  %v1235_v59 = vpop.f32.mrf.mxu1 }
  0xd3   :  { %v4075_v60 = vadd.f32 %v1330_v55, %v1282_v52  ;;  %1706 = vmatpush.bf16.msra.mxu3 %v2605_v39  ;;  %v3089_v39 = vld [vmem:[%s5093_s1 + $0x34] sm:$0xf0] }
  0xd4   :  { %v1236_v61 = vadd.f32 %v1235_v59, %v1187_v58  ;;  %3013 = vmatmul.msk.bf16.gmra.mxu0 %vm1137_vm0, %v4072_v51  ;;  %1430 = vmatmul.bf16.gmra.mxu1 %v3679_v6  ;;  %v2372_v58 = vld [vmem:[%s5094_s0 + $0xb0] sm:$0xf]  ;;  %v3066_v59 = vld [vmem:[%s5094_s0 + $0xc0] sm:$0xf0] }
  0xd5   :  { %1479 = vmatmul.bf16.gmra.mxu2 %v3681_v7  ;;  %v4109_v62 = vor.u32 %v3066_v59, %v2372_v58 }
  0xd6   :  { %1528 = vmatmul.bf16.gmra.mxu3 %v3683_v8  ;;  %v2412_v8 = vld [vmem:[%s5094_s0 + $0x100] sm:$0xf] }
  0xd8   :  { %v1284_v20 = vpop.f32.mrf.mxu2 }
  0xd9   :  { %v1285_v40 = vadd.f32 %v1284_v20, %v1236_v61  ;;  %v1333_v41 = vpop.f32.mrf.mxu3  ;;  %v1188_v47 = vpop.f32.mrf.mxu0 }
  0xda   :  { %v1189_v50 = vadd.f32 %v1188_v47, %v3949_v36  ;;  %v1237_v52 = vpop.f32.mrf.mxu1  ;;  %v2838_v47 = vld [vmem:[%s5093_s1 + $0x330] sm:$0xf0] }
  0xdb   :  { %v4101_v55 = vadd.f32 %v1333_v41, %v1285_v40  ;;  %v3182_v40 = vld [vmem:[%s5093_s1 + $0x324] sm:$0xf]  ;;  %v2461_v41 = vor.u32 %v3089_v39, %v2460_v38  ;;  %v2950_v39 = vld [vmem:[%s5093_s1 + $0x410] sm:$0xf0] }
  0xdc   :  { %v1238_v56 = vadd.f32 %v1237_v52, %v1189_v50  ;;  %v2588_v50 = vld [vmem:[%s5093_s1 + $0x128] sm:$0xf]  ;;  %v3121_v52 = vld [vmem:[%s5093_s1 + $0x134] sm:$0xf0]  ;;  %v2841_v58 = vor.u32 %v3182_v40, %v2838_v47  ;;  %v3210_v38 = vld [vmem:[%s5093_s1 + $0x404] sm:$0xf] }
  0xdd   :  { %v2589_v59 = vor.u32 %v3121_v52, %v2588_v50  ;;  %1658 = vmatpush.bf16.msra.mxu2 %v2461_v41  ;;  %v2392_v41 = vld [vmem:[%s5094_s0 + $0xd8] sm:$0xf]  ;;  %v3071_v47 = vld [vmem:[%s5094_s0 + $0xe8] sm:$0xf0] }
  0xde   :  { %1560 = vmatpush.bf16.msra.mxu0 %v2841_v58  ;;  %v4152_v52 = vor.u32 %v3071_v47, %v2392_v41  ;;  %v2572_v41 = vld [vmem:[%s5093_s1 + $0x108] sm:$0xf]  ;;  %v3117_v47 = vld [vmem:[%s5093_s1 + $0x114] sm:$0xf0] }
  0xdf   :  { %1707 = vmatpush.bf16.msra.mxu3 %v2589_v59 }
  0xe0   :  { %v1286_v61 = vpop.f32.mrf.mxu2 }
  0xe1   :  { %v1287_v3 = vadd.f32 %v1286_v61, %v1238_v56  ;;  %v1335_v12 = vpop.f32.mrf.mxu3  ;;  %v1191_v14 = vpop.f32.mrf.mxu0 }
  0xe2   :  { %v1192_v15 = vadd.f32 %v1191_v14, %v3949_v36  ;;  %v1240_v17 = vpop.f32.mrf.mxu1 }
  0xe3   :  { %v4112_v18 = vadd.f32 %v1335_v12, %v1287_v3 }
  0xe4   :  { %v1241_v20 = vadd.f32 %v1240_v17, %v1192_v15  ;;  %3014 = vmatmul.msk.bf16.gmra.mxu0 %vm1137_vm0, %v4109_v62  ;;  %1435 = vmatmul.bf16.gmra.mxu1 %v3733_v31 }
  0xe5   :  { %1484 = vmatmul.bf16.gmra.mxu2 %v3735_v32 }
  0xe6   :  { %1533 = vmatmul.bf16.gmra.mxu3 %v3737_v33 }
  0xe8   :  { %v1289_v56 = vpop.f32.mrf.mxu2 }
  0xe9   :  { %v1290_v61 = vadd.f32 %v1289_v56, %v1241_v20  ;;  %v1338_v3 = vpop.f32.mrf.mxu3  ;;  %v1193_v12 = vpop.f32.mrf.mxu0  ;;  %v2953_v20 = vor.u32 %v3210_v38, %v2950_v39  ;;  %v3085_v38 = vld [vmem:[%s5093_s1 + $0x14] sm:$0xf0]  ;;  %v3178_v39 = vld [vmem:[%s5093_s1 + $0x304] sm:$0xf] }
  0xea   :  { %v1194_v14 = vadd.f32 %v1193_v12, %v3949_v36  ;;  %v1242_v15 = vpop.f32.mrf.mxu1 }
  0xeb   :  { %v4138_v17 = vadd.f32 %v1338_v3, %v1290_v61  ;;  %1610 = vmatpush.bf16.msra.mxu1 %v2953_v20  ;;  %v2822_v20 = vld [vmem:[%s5093_s1 + $0x310] sm:$0xf0] }
  0xec   :  { %v1243_v40 = vadd.f32 %v1242_v15, %v1194_v14  ;;  %v2444_v15 = vld [vmem:[%s5093_s1 + $0x8] sm:$0xf] }
  0xf0   :  { %v1291_v50 = vpop.f32.mrf.mxu2 }
  0xf1   :  { %v1292_v56 = vadd.f32 %v1291_v50, %v1243_v40  ;;  %v1340_v58 = vpop.f32.mrf.mxu3  ;;  %v1196_v59 = vpop.f32.mrf.mxu0  ;;  %v2445_v40 = vor.u32 %v3085_v38, %v2444_v15 }
  0xf2   :  { %v1197_v61 = vadd.f32 %v1196_v59, %v3949_v36  ;;  %v1245_v3 = vpop.f32.mrf.mxu1 }
  0xf3   :  { %v4155_v12 = vadd.f32 %v1340_v58, %v1292_v56  ;;  %v2825_v56 = vor.u32 %v3178_v39, %v2822_v20  ;;  %v2573_v58 = vor.u32 %v3117_v47, %v2572_v41  ;;  %1659 = vmatpush.bf16.msra.mxu2 %v2445_v40  ;;  %v3076_v39 = vld [vmem:[%s5094_s0 + $0x110] sm:$0xf0] }
  0xf4   :  { %v1246_v14 = vadd.f32 %v1245_v3, %v1197_v61  ;;  %3015 = vmatmul.msk.bf16.gmra.mxu0 %vm1137_vm0, %v4152_v52  ;;  %1440 = vmatmul.bf16.gmra.mxu1 %v3793_v63  ;;  %v4189_v20 = vor.u32 %v3076_v39, %v2412_v8  ;;  %v3004_v8 = vld [vmem:[%s5093_s1 + $0x468] sm:$0xf] }
  0xf5   :  { %1489 = vmatmul.bf16.gmra.mxu2 %v3795_v0  ;;  %1561 = vmatpush.bf16.msra.mxu0 %v2825_v56 }
  0xf6   :  { %1538 = vmatmul.bf16.gmra.mxu3 %v3797_v1 }
  0xf7   :  { %1708 = vmatpush.bf16.msra.mxu3 %v2573_v58 }
  0xf8   :  { %v1294_v50 = vpop.f32.mrf.mxu2 }
  0xf9   :  { %v1295_v59 = vadd.f32 %v1294_v50, %v1246_v14  ;;  %v1343_v61 = vpop.f32.mrf.mxu3  ;;  %v1198_v3 = vpop.f32.mrf.mxu0 }
  0xfa   :  { %v1199_v15 = vadd.f32 %v1198_v3, %v3949_v36  ;;  %v1247_v38 = vpop.f32.mrf.mxu1  ;;  %v2812_v3 = vld [vmem:[%s5093_s1 + $0x2e8] sm:$0xf] }
  0xfb   :  { %v4181_v1 = vadd.f32 %v1343_v61, %v1295_v59 }
  0xfc   :  { %v1248_v33 = vadd.f32 %v1247_v38, %v1199_v15  ;;  %v3177_v15 = vld [vmem:[%s5093_s1 + $0x2f4] sm:$0xf0]  ;;  %v3111_v38 = vld [vmem:[%s5093_s1 + $0xec] sm:$0xf] }
 0x100   :  { %v1296_v14 = vpop.f32.mrf.mxu2 }
 0x101   :  { %v1297_v40 = vadd.f32 %v1296_v14, %v1248_v33  ;;  %v1345_v41 = vpop.f32.mrf.mxu3  ;;  %v1201_v47 = vpop.f32.mrf.mxu0  ;;  %v3225_v33 = vld [vmem:[%s5093_s1 + $0x474] sm:$0xf0]  ;;  %v2813_v14 = vor.u32 %v3177_v15, %v2812_v3  ;;  %v2940_v3 = vld [vmem:[%s5093_s1 + $0x3e8] sm:$0xf] }
 0x102   :  { %v1202_v50 = vadd.f32 %v1201_v47, %v3949_v36  ;;  %v1250_v56 = vpop.f32.mrf.mxu1  ;;  %v3005_v61 = vor.u32 %v3225_v33, %v3004_v8  ;;  %v3209_v15 = vld [vmem:[%s5093_s1 + $0x3f4] sm:$0xf0] }
 0x103   :  { %v4192_v58 = vadd.f32 %v1345_v41, %v1297_v40  ;;  %v2558_v40 = vld [vmem:[%s5093_s1 + $0xf8] sm:$0xf0]  ;;  %1750 = vmatpush.bf16.msrb.mxu0 %v2813_v14 }
 0x104   :  { %v1251_v59 = vadd.f32 %v1250_v56, %v1202_v50  ;;  %3016 = vmatmul.msk.bf16.gmra.mxu0 %vm1137_vm0, %v4189_v20  ;;  %1445 = vmatmul.bf16.gmra.mxu1 %v3847_v28  ;;  %v2561_v56 = vor.u32 %v3111_v38, %v2558_v40  ;;  %v3081_v38 = vld [vmem:[%s5094_s0 + $0x138] sm:$0xf0] }
 0x105   :  { %1494 = vmatmul.bf16.gmra.mxu2 %v3849_v29 }
 0x106   :  { %1543 = vmatmul.bf16.gmra.mxu3 %v3851_v30  ;;  %1852 = vmatpush.bf16.msrb.mxu2 %v3005_v61  ;;  %v2432_v61 = vld [vmem:[%s5094_s0 + $0x128] sm:$0xf] }
 0x107   :  { %1897 = vmatpush.bf16.msrb.mxu3 %v2561_v56  ;;  %v4232_v40 = vor.u32 %v3081_v38, %v2432_v61 }
 0x108   :  { %v1299_v39 = vpop.f32.mrf.mxu2 }
 0x109   :  { %v1300_v41 = vadd.f32 %v1299_v39, %v1251_v59  ;;  %v1348_v47 = vpop.f32.mrf.mxu3  ;;  %v1203_v50 = vpop.f32.mrf.mxu0  ;;  %v2941_v39 = vor.u32 %v3209_v15, %v2940_v3  ;;  %v2796_v3 = vld [vmem:[%s5093_s1 + $0x2c8] sm:$0xf]  ;;  %v3173_v15 = vld [vmem:[%s5093_s1 + $0x2d4] sm:$0xf0] }
 0x10a   :  { %v1204_v8 = vadd.f32 %v1203_v50, %v3949_v36  ;;  %v1252_v33 = vpop.f32.mrf.mxu1 }
 0x10b   :  { %v4218_v30 = vadd.f32 %v1348_v47, %v1300_v41  ;;  %1799 = vmatpush.bf16.msrb.mxu1 %v2941_v39  ;;  %v2542_v39 = vld [vmem:[%s5093_s1 + $0xd8] sm:$0xf0] }
 0x10c   :  { %v1253_v59 = vadd.f32 %v1252_v33, %v1204_v8 }
 0x110   :  { %v1301_v14 = vpop.f32.mrf.mxu2 }
 0x111   :  { %v1302_v41 = vadd.f32 %v1301_v14, %v1253_v59  ;;  %v1350_v47 = vpop.f32.mrf.mxu3  ;;  %v1206_v50 = vpop.f32.mrf.mxu0  ;;  %v2797_v59 = vor.u32 %v3173_v15, %v2796_v3  ;;  %v2924_v3 = vld [vmem:[%s5093_s1 + $0x3c8] sm:$0xf]  ;;  %v3205_v15 = vld [vmem:[%s5093_s1 + $0x3d4] sm:$0xf0] }
 0x112   :  { %v1207_v56 = vadd.f32 %v1206_v50, %v3949_v36  ;;  %v1255_v44 = vpop.f32.mrf.mxu1 }
 0x113   :  { %v4235_v8 = vadd.f32 %v1350_v47, %v1302_v41  ;;  %1751 = vmatpush.bf16.msrb.mxu0 %v2797_v59 }
 0x114   :  { %v1256_v33 = vadd.f32 %v1255_v44, %v1207_v56  ;;  %3017 = vmatmul.msk.bf16.gmra.mxu0 %vm1137_vm0, %v4232_v40  ;;  %1450 = vmatmul.bf16.gmra.mxu1 %v3907_v4  ;;  %v3107_v44 = vld [vmem:[%s5093_s1 + $0xcc] sm:$0xf] }
 0x115   :  { %1499 = vmatmul.bf16.gmra.mxu2 %v3909_v5  ;;  %v2545_v38 = vor.u32 %v3107_v44, %v2542_v39  ;;  %v2925_v44 = vor.u32 %v3205_v15, %v2924_v3  ;;  %v3103_v3 = vld [vmem:[%s5093_s1 + $0xac] sm:$0xf]  ;;  %v2526_v15 = vld [vmem:[%s5093_s1 + $0xb8] sm:$0xf0] }
 0x116   :  { %1548 = vmatmul.bf16.gmra.mxu3 %v3911_v10 }
 0x117   :  { %1898 = vmatpush.bf16.msrb.mxu3 %v2545_v38  ;;  %1800 = vmatpush.bf16.msrb.mxu1 %v2925_v44 }
 0x118   :  { %v1304_v61 = vpop.f32.mrf.mxu2 }
 0x119   :  { %v1305_v14 = vadd.f32 %v1304_v61, %v1256_v33  ;;  %v1353_v41 = vpop.f32.mrf.mxu3  ;;  %v1208_v47 = vpop.f32.mrf.mxu0 }
 0x11a   :  { %v1209_v50 = vadd.f32 %v1208_v47, %v3949_v36  ;;  %v1257_v56 = vpop.f32.mrf.mxu1  ;;  %v4264_v36 = vperm.slane %v3940_v25, 1  ;;  %v3221_v25 = vld [vmem:[%s5093_s1 + $0x454] sm:$0xf0] }
 0x11b   :  { %v4255_v10 = vadd.f32 %v1353_v41, %v1305_v14 }
 0x11c   :  { %v1258_v23 = vadd.f32 %v1257_v56, %v1209_v50  ;;  %v3169_v56 = vld [vmem:[%s5093_s1 + $0x2b4] sm:$0xf0] }
 0x120   :  { %v1306_v33 = vpop.f32.mrf.mxu2 }
 0x121   :  { %v1307_v39 = vadd.f32 %v1306_v33, %v1258_v23  ;;  %v1355_v59 = vpop.f32.mrf.mxu3  ;;  %v1367_v61 = vpop.f32.mrf.mxu0  ;;  %v2988_v23 = vld [vmem:[%s5093_s1 + $0x448] sm:$0xf] }
 0x122   :  { %v1368_v38 = vadd.f32 %v1367_v61, %v3978_v13  ;;  %v1416_v14 = vpop.f32.mrf.mxu1  ;;  %v2780_v13 = vld [vmem:[%s5093_s1 + $0x2a8] sm:$0xf]  ;;  %v2989_v50 = vor.u32 %v3221_v25, %v2988_v23 }
 0x123   :  { %v4267_v41 = vadd.f32 %v1355_v59, %v1307_v39  ;;  %v1417_v54 = vadd.f32 %v1416_v14, %v4264_v36  ;;  %v2781_v33 = vor.u32 %v3169_v56, %v2780_v13  ;;  %v2529_v39 = vor.u32 %v3103_v3, %v2526_v15  ;;  %v2908_v25 = vld [vmem:[%s5093_s1 + $0x3a8] sm:$0xf]  ;;  %v3201_v13 = vld [vmem:[%s5093_s1 + $0x3b4] sm:$0xf0] }
 0x124   :  { %v2142_v47 = vmax.f32 %v1368_v38, 0.0  ;;  %1562 = vmatmul.bf16.vlgmr.msra.gmra.mxu0 %v3505_v57  ;;  %3018 = vmatmul.msk.bf16.vlgmr.msra.gmra.mxu1 %vm1137_vm0, %v3951_v37 }
 0x125   :  { %1660 = vmatmul.bf16.vlgmr.msra.gmra.mxu2 %v3484_v48  ;;  %1752 = vmatpush.bf16.msrb.mxu0 %v2781_v33 }
 0x126   :  { %2206 = vst [vmem:[%s5096_s3] sm:$0xff] %v2142_v47  ;;  %1709 = vmatmul.bf16.vlgmr.msra.gmra.mxu3 %v3495_v53  ;;  %1853 = vmatpush.bf16.msrb.mxu2 %v2989_v50 }
 0x127   :  { %1899 = vmatpush.bf16.msrb.mxu3 %v2529_v39 }
 0x128   :  { %v1465_v44 = vpop.f32.mrf.mxu2 }
 0x129   :  { %v1466_v59 = vadd.f32 %v1465_v44, %v1417_v54  ;;  %v1514_v61 = vpop.f32.mrf.mxu3  ;;  %v1369_v38 = vpop.f32.mrf.mxu0  ;;  %v2909_v54 = vor.u32 %v3201_v13, %v2908_v25  ;;  %v3099_v25 = vld [vmem:[%s5093_s1 + $0x8c] sm:$0xf]  ;;  %v2510_v13 = vld [vmem:[%s5093_s1 + $0x98] sm:$0xf0] }
 0x12a   :  { %v1370_v14 = vadd.f32 %v1369_v38, %v3995_v46  ;;  %v1418_v47 = vpop.f32.mrf.mxu1 }
 0x12b   :  { %v4297_v23 = vadd.f32 %v1514_v61, %v1466_v59  ;;  %1801 = vmatpush.bf16.msrb.mxu1 %v2909_v54  ;;  %v1419_v46 = vadd.f32 %v1418_v47, %v4264_v36  ;;  %v2513_v54 = vor.u32 %v3099_v25, %v2510_v13 }
 0x12c   :  { %v2146_v56 = vmax.f32 %v1370_v14, 0.0  ;;  %v3165_v14 = vld [vmem:[%s5093_s1 + $0x294] sm:$0xf0] }
 0x12d   :  { %1900 = vmatpush.bf16.msrb.mxu3 %v2513_v54 }
 0x12e   :  { %2210 = vst [vmem:[%s5096_s3 + $0x20] sm:$0xff] %v2146_v56 }
 0x130   :  { %v1467_v50 = vpop.f32.mrf.mxu2 }
 0x131   :  { %v1468_v3 = vadd.f32 %v1467_v50, %v1419_v46  ;;  %v1516_v15 = vpop.f32.mrf.mxu3  ;;  %v1372_v44 = vpop.f32.mrf.mxu0 }
 0x132   :  { %v1373_v33 = vadd.f32 %v1372_v44, %v4021_v16  ;;  %v1421_v39 = vpop.f32.mrf.mxu1  ;;  %v2764_v16 = vld [vmem:[%s5093_s1 + $0x288] sm:$0xf] }
 0x133   :  { %v4310_v59 = vadd.f32 %v1516_v15, %v1468_v3  ;;  %v1422_v38 = vadd.f32 %v1421_v39, %v4264_v36  ;;  %v2765_v47 = vor.u32 %v3165_v14, %v2764_v16  ;;  %v2892_v39 = vld [vmem:[%s5093_s1 + $0x388] sm:$0xf] }
 0x134   :  { %v2150_v61 = vmax.f32 %v1373_v33, 0.0  ;;  %1567 = vmatmul.bf16.gmra.mxu0 %v3571_v24  ;;  %3019 = vmatmul.msk.bf16.gmra.mxu1 %vm1137_vm0, %v3992_v26 }
 0x135   :  { %1665 = vmatmul.bf16.gmra.mxu2 %v3565_v21  ;;  %1753 = vmatpush.bf16.msrb.mxu0 %v2765_v47 }
 0x136   :  { %2214 = vst [vmem:[%s5096_s3 + $0x40] sm:$0xff] %v2150_v61  ;;  %1714 = vmatmul.bf16.gmra.mxu3 %v3567_v22  ;;  %v3197_v61 = vld [vmem:[%s5093_s1 + $0x394] sm:$0xf0] }
 0x137   :  { %v2893_v14 = vor.u32 %v3197_v61, %v2892_v39  ;;  %v2748_v39 = vld [vmem:[%s5093_s1 + $0x268] sm:$0xf]  ;;  %v3161_v61 = vld [vmem:[%s5093_s1 + $0x274] sm:$0xf0] }
 0x138   :  { %v1470_v56 = vpop.f32.mrf.mxu2 }
 0x139   :  { %v1471_v46 = vadd.f32 %v1470_v56, %v1422_v38  ;;  %v1519_v50 = vpop.f32.mrf.mxu3  ;;  %v1374_v3 = vpop.f32.mrf.mxu0  ;;  %1802 = vmatpush.bf16.msrb.mxu1 %v2893_v14 }
 0x13a   :  { %v1375_v15 = vadd.f32 %v1374_v3, %v4032_v49  ;;  %v1423_v44 = vpop.f32.mrf.mxu1 }
 0x13b   :  { %v4334_v33 = vadd.f32 %v1519_v50, %v1471_v46  ;;  %v1424_v49 = vadd.f32 %v1423_v44, %v4264_v36 }
 0x13c   :  { %v2154_v16 = vmax.f32 %v1375_v15, 0.0  ;;  %v3217_v15 = vld [vmem:[%s5093_s1 + $0x434] sm:$0xf0] }
 0x13e   :  { %2218 = vst [vmem:[%s5096_s3 + $0x60] sm:$0xff] %v2154_v16  ;;  %v3095_v16 = vld [vmem:[%s5093_s1 + $0x6c] sm:$0xf] }
 0x140   :  { %v1472_v38 = vpop.f32.mrf.mxu2 }
 0x141   :  { %v1473_v47 = vadd.f32 %v1472_v38, %v1424_v49  ;;  %v1521_v25 = vpop.f32.mrf.mxu3  ;;  %v1377_v13 = vpop.f32.mrf.mxu0  ;;  %v2749_v49 = vor.u32 %v3161_v61, %v2748_v39  ;;  %v2494_v38 = vld [vmem:[%s5093_s1 + $0x78] sm:$0xf0]  ;;  %v3193_v39 = vld [vmem:[%s5093_s1 + $0x374] sm:$0xf0] }
 0x142   :  { %v1378_v56 = vadd.f32 %v1377_v13, %v4058_v19  ;;  %v1426_v54 = vpop.f32.mrf.mxu1  ;;  %v2972_v19 = vld [vmem:[%s5093_s1 + $0x428] sm:$0xf] }
 0x143   :  { %v4347_v46 = vadd.f32 %v1521_v25, %v1473_v47  ;;  %v1427_v3 = vadd.f32 %v1426_v54, %v4264_v36  ;;  %v2973_v44 = vor.u32 %v3217_v15, %v2972_v19  ;;  %1754 = vmatpush.bf16.msrb.mxu0 %v2749_v49  ;;  %v2876_v15 = vld [vmem:[%s5093_s1 + $0x368] sm:$0xf] }
 0x144   :  { %v2158_v50 = vmax.f32 %v1378_v56, 0.0  ;;  %1572 = vmatmul.bf16.gmra.mxu0 %v3625_v45  ;;  %3020 = vmatmul.msk.bf16.gmra.mxu1 %vm1137_vm0, %v4029_v27  ;;  %v2497_v56 = vor.u32 %v3095_v16, %v2494_v38  ;;  %v2877_v61 = vor.u32 %v3193_v39, %v2876_v15  ;;  %v3091_v15 = vld [vmem:[%s5093_s1 + $0x4c] sm:$0xf]  ;;  %v2478_v39 = vld [vmem:[%s5093_s1 + $0x58] sm:$0xf0] }
 0x145   :  { %1670 = vmatmul.bf16.gmra.mxu2 %v3619_v42 }
 0x146   :  { %2222 = vst [vmem:[%s5096_s3 + $0x80] sm:$0xff] %v2158_v50  ;;  %1719 = vmatmul.bf16.gmra.mxu3 %v3621_v43  ;;  %1854 = vmatpush.bf16.msrb.mxu2 %v2973_v44 }
 0x147   :  { %1901 = vmatpush.bf16.msrb.mxu3 %v2497_v56  ;;  %1803 = vmatpush.bf16.msrb.mxu1 %v2877_v61  ;;  %v2481_v61 = vor.u32 %v3091_v15, %v2478_v39 }
 0x148   :  { %v1475_v14 = vpop.f32.mrf.mxu2 }
 0x149   :  { %v1476_v47 = vadd.f32 %v1475_v14, %v1427_v3  ;;  %v1524_v25 = vpop.f32.mrf.mxu3  ;;  %v1379_v13 = vpop.f32.mrf.mxu0 }
 0x14a   :  { %v1380_v54 = vadd.f32 %v1379_v13, %v4075_v60  ;;  %v1428_v50 = vpop.f32.mrf.mxu1 }
 0x14b   :  { %v4377_v19 = vadd.f32 %v1524_v25, %v1476_v47  ;;  %v1429_v60 = vadd.f32 %v1428_v50, %v4264_v36  ;;  %1902 = vmatpush.bf16.msrb.mxu3 %v2481_v61 }
 0x14c   :  { %v2162_v3 = vmax.f32 %v1380_v54, 0.0  ;;  %v3157_v54 = vld [vmem:[%s5093_s1 + $0x254] sm:$0xf0] }
 0x14e   :  { %2226 = vst [vmem:[%s5096_s3 + $0xa0] sm:$0xff] %v2162_v3 }
 0x150   :  { %v1477_v44 = vpop.f32.mrf.mxu2 }
 0x151   :  { %v1478_v16 = vadd.f32 %v1477_v44, %v1429_v60  ;;  %v1526_v14 = vpop.f32.mrf.mxu3  ;;  %v1382_v49 = vpop.f32.mrf.mxu0 }
 0x152   :  { %v1383_v38 = vadd.f32 %v1382_v49, %v4101_v55  ;;  %v1431_v47 = vpop.f32.mrf.mxu1  ;;  %v2732_v55 = vld [vmem:[%s5093_s1 + $0x248] sm:$0xf] }
 0x153   :  { %v4390_v25 = vadd.f32 %v1526_v14, %v1478_v16  ;;  %v1432_v56 = vadd.f32 %v1431_v47, %v4264_v36  ;;  %v2733_v50 = vor.u32 %v3157_v54, %v2732_v55  ;;  %v2860_v47 = vld [vmem:[%s5093_s1 + $0x348] sm:$0xf] }
 0x154   :  { %v2166_v13 = vmax.f32 %v1383_v38, 0.0  ;;  %1577 = vmatmul.bf16.gmra.mxu0 %v3685_v9  ;;  %3021 = vmatmul.msk.bf16.gmra.mxu1 %vm1137_vm0, %v4072_v51 }
 0x155   :  { %1675 = vmatmul.bf16.gmra.mxu2 %v3679_v6  ;;  %1755 = vmatpush.bf16.msrb.mxu0 %v2733_v50 }
 0x156   :  { %2230 = vst [vmem:[%s5096_s3 + $0xc0] sm:$0xff] %v2166_v13  ;;  %1724 = vmatmul.bf16.gmra.mxu3 %v3681_v7  ;;  %v3189_v13 = vld [vmem:[%s5093_s1 + $0x354] sm:$0xf0] }
 0x157   :  { %v2861_v54 = vor.u32 %v3189_v13, %v2860_v47  ;;  %v2716_v47 = vld [vmem:[%s5093_s1 + $0x228] sm:$0xf]  ;;  %v3153_v13 = vld [vmem:[%s5093_s1 + $0x234] sm:$0xf0] }
 0x158   :  { %v1480_v3 = vpop.f32.mrf.mxu2 }
 0x159   :  { %v1481_v60 = vadd.f32 %v1480_v3, %v1432_v56  ;;  %v1529_v44 = vpop.f32.mrf.mxu3  ;;  %v1384_v16 = vpop.f32.mrf.mxu0  ;;  %1804 = vmatpush.bf16.msrb.mxu1 %v2861_v54 }
 0x15a   :  { %v1385_v14 = vadd.f32 %v1384_v16, %v4112_v18  ;;  %v1433_v49 = vpop.f32.mrf.mxu1 }
 0x15b   :  { %v4414_v38 = vadd.f32 %v1529_v44, %v1481_v60  ;;  %v1434_v18 = vadd.f32 %v1433_v49, %v4264_v36 }
 0x15c   :  { %v2170_v55 = vmax.f32 %v1385_v14, 0.0  ;;  %v3213_v14 = vld [vmem:[%s5093_s1 + $0x414] sm:$0xf0] }
 0x15e   :  { %2234 = vst [vmem:[%s5096_s3 + $0xe0] sm:$0xff] %v2170_v55  ;;  %v3087_v55 = vld [vmem:[%s5093_s1 + $0x2c] sm:$0xf] }
 0x160   :  { %v1482_v56 = vpop.f32.mrf.mxu2 }
 0x161   :  { %v1483_v50 = vadd.f32 %v1482_v56, %v1434_v18  ;;  %v1531_v15 = vpop.f32.mrf.mxu3  ;;  %v1387_v39 = vpop.f32.mrf.mxu0  ;;  %v2717_v18 = vor.u32 %v3153_v13, %v2716_v47  ;;  %v2462_v56 = vld [vmem:[%s5093_s1 + $0x38] sm:$0xf0]  ;;  %v3185_v47 = vld [vmem:[%s5093_s1 + $0x334] sm:$0xf0] }
 0x162   :  { %v1388_v3 = vadd.f32 %v1387_v39, %v4138_v17  ;;  %v1436_v61 = vpop.f32.mrf.mxu1  ;;  %v2956_v17 = vld [vmem:[%s5093_s1 + $0x408] sm:$0xf] }
 0x163   :  { %v4427_v60 = vadd.f32 %v1531_v15, %v1483_v50  ;;  %v1437_v16 = vadd.f32 %v1436_v61, %v4264_v36  ;;  %v2957_v49 = vor.u32 %v3213_v14, %v2956_v17  ;;  %1756 = vmatpush.bf16.msrb.mxu0 %v2717_v18  ;;  %v2844_v14 = vld [vmem:[%s5093_s1 + $0x328] sm:$0xf] }
 0x164   :  { %v2174_v44 = vmax.f32 %v1388_v3, 0.0  ;;  %1582 = vmatmul.bf16.gmra.mxu0 %v3739_v34  ;;  %3022 = vmatmul.msk.bf16.gmra.mxu1 %vm1137_vm0, %v4109_v62  ;;  %v2465_v3 = vor.u32 %v3087_v55, %v2462_v56  ;;  %v2845_v13 = vor.u32 %v3185_v47, %v2844_v14  ;;  %v3083_v14 = vld [vmem:[%s5093_s1 + $0xc] sm:$0xf]  ;;  %v2446_v47 = vld [vmem:[%s5093_s1 + $0x18] sm:$0xf0] }
 0x165   :  { %1680 = vmatmul.bf16.gmra.mxu2 %v3733_v31 }
 0x166   :  { %2238 = vst [vmem:[%s5096_s3 + $0x100] sm:$0xff] %v2174_v44  ;;  %1729 = vmatmul.bf16.gmra.mxu3 %v3735_v32  ;;  %1855 = vmatpush.bf16.msrb.mxu2 %v2957_v49 }
 0x167   :  { %1903 = vmatpush.bf16.msrb.mxu3 %v2465_v3  ;;  %1805 = vmatpush.bf16.msrb.mxu1 %v2845_v13  ;;  %v2449_v13 = vor.u32 %v3083_v14, %v2446_v47 }
 0x168   :  { %v1485_v54 = vpop.f32.mrf.mxu2 }
 0x169   :  { %v1486_v50 = vadd.f32 %v1485_v54, %v1437_v16  ;;  %v1534_v15 = vpop.f32.mrf.mxu3  ;;  %v1389_v39 = vpop.f32.mrf.mxu0 }
 0x16a   :  { %v1390_v61 = vadd.f32 %v1389_v39, %v4155_v12  ;;  %v1438_v44 = vpop.f32.mrf.mxu1 }
 0x16b   :  { %v4457_v17 = vadd.f32 %v1534_v15, %v1486_v50  ;;  %v1439_v12 = vadd.f32 %v1438_v44, %v4264_v36  ;;  %1904 = vmatpush.bf16.msrb.mxu3 %v2449_v13 }
 0x16c   :  { %v2178_v16 = vmax.f32 %v1390_v61, 0.0  ;;  %v3149_v61 = vld [vmem:[%s5093_s1 + $0x214] sm:$0xf0] }
 0x16e   :  { %2242 = vst [vmem:[%s5096_s3 + $0x120] sm:$0xff] %v2178_v16 }
 0x170   :  { %v1487_v49 = vpop.f32.mrf.mxu2 }
 0x171   :  { %v1488_v55 = vadd.f32 %v1487_v49, %v1439_v12  ;;  %v1536_v54 = vpop.f32.mrf.mxu3  ;;  %v1392_v18 = vpop.f32.mrf.mxu0 }
 0x172   :  { %v1393_v56 = vadd.f32 %v1392_v18, %v4181_v1  ;;  %v1441_v50 = vpop.f32.mrf.mxu1  ;;  %v2700_v1 = vld [vmem:[%s5093_s1 + $0x208] sm:$0xf] }
 0x173   :  { %v4470_v15 = vadd.f32 %v1536_v54, %v1488_v55  ;;  %v1442_v3 = vadd.f32 %v1441_v50, %v4264_v36  ;;  %v2701_v44 = vor.u32 %v3149_v61, %v2700_v1  ;;  %v2828_v50 = vld [vmem:[%s5093_s1 + $0x308] sm:$0xf] }
 0x174   :  { %v2182_v39 = vmax.f32 %v1393_v56, 0.0  ;;  %1587 = vmatmul.bf16.gmra.mxu0 %v3799_v2  ;;  %3023 = vmatmul.msk.bf16.gmra.mxu1 %vm1137_vm0, %v4152_v52 }
 0x175   :  { %1685 = vmatmul.bf16.gmra.mxu2 %v3793_v63  ;;  %1757 = vmatpush.bf16.msrb.mxu0 %v2701_v44 }
 0x176   :  { %2246 = vst [vmem:[%s5096_s3 + $0x140] sm:$0xff] %v2182_v39  ;;  %1734 = vmatmul.bf16.gmra.mxu3 %v3795_v0  ;;  %v3181_v39 = vld [vmem:[%s5093_s1 + $0x314] sm:$0xf0] }
 0x177   :  { %v2829_v61 = vor.u32 %v3181_v39, %v2828_v50  ;;  %v3143_v50 = vld [vmem:[%s5093_s1 + $0x1ec] sm:$0xf] }
 0x178   :  { %v1490_v16 = vpop.f32.mrf.mxu2 }
 0x179   :  { %v1491_v12 = vadd.f32 %v1490_v16, %v1442_v3  ;;  %v1539_v49 = vpop.f32.mrf.mxu3  ;;  %v1394_v55 = vpop.f32.mrf.mxu0  ;;  %1806 = vmatpush.bf16.msrb.mxu1 %v2829_v61 }
 0x17a   :  { %v1395_v54 = vadd.f32 %v1394_v55, %v4192_v58  ;;  %v1443_v18 = vpop.f32.mrf.mxu1 }
 0x17b   :  { %v4494_v56 = vadd.f32 %v1539_v49, %v1491_v12  ;;  %v1444_v58 = vadd.f32 %v1443_v18, %v4264_v36  ;;  %v2942_v18 = vld [vmem:[%s5093_s1 + $0x3f8] sm:$0xf0] }
 0x17c   :  { %v2186_v1 = vmax.f32 %v1395_v54, 0.0  ;;  %v3207_v54 = vld [vmem:[%s5093_s1 + $0x3ec] sm:$0xf] }
 0x17e   :  { %2250 = vst [vmem:[%s5096_s3 + $0x160] sm:$0xff] %v2186_v1 }
 0x180   :  { %v1492_v3 = vpop.f32.mrf.mxu2 }
 0x181   :  { %v1493_v44 = vadd.f32 %v1492_v3, %v1444_v58  ;;  %v1541_v14 = vpop.f32.mrf.mxu3  ;;  %v1397_v47 = vpop.f32.mrf.mxu0  ;;  %v2945_v58 = vor.u32 %v3207_v54, %v2942_v18  ;;  %v2686_v3 = vld [vmem:[%s5093_s1 + $0x1f8] sm:$0xf0] }
 0x182   :  { %v1398_v16 = vadd.f32 %v1397_v47, %v4218_v30  ;;  %v1446_v13 = vpop.f32.mrf.mxu1  ;;  %v2814_v54 = vld [vmem:[%s5093_s1 + $0x2f8] sm:$0xf0] }
 0x183   :  { %v4507_v12 = vadd.f32 %v1541_v14, %v1493_v44  ;;  %v1447_v55 = vadd.f32 %v1446_v13, %v4264_v36  ;;  %v3223_v44 = vld [vmem:[%s5093_s1 + $0x46c] sm:$0xf]  ;;  %v3006_v14 = vld [vmem:[%s5093_s1 + $0x478] sm:$0xf0]  ;;  %v2689_v13 = vor.u32 %v3143_v50, %v2686_v3  ;;  %2044 = vmatpush.bf16.msra.mxu2 %v2945_v58 }
 0x184   :  { %v2190_v49 = vmax.f32 %v1398_v16, 0.0  ;;  %1592 = vmatmul.bf16.gmra.mxu0 %v3853_v35  ;;  %3024 = vmatmul.msk.bf16.gmra.mxu1 %vm1137_vm0, %v4189_v20 }
 0x185   :  { %1690 = vmatmul.bf16.gmra.mxu2 %v3847_v28  ;;  %1946 = vmatpush.bf16.msra.mxu0 %v2689_v13  ;;  %v3139_v13 = vld [vmem:[%s5093_s1 + $0x1cc] sm:$0xf] }
 0x186   :  { %2254 = vst [vmem:[%s5096_s3 + $0x180] sm:$0xff] %v2190_v49  ;;  %1739 = vmatmul.bf16.gmra.mxu3 %v3849_v29  ;;  %v3009_v49 = vor.u32 %v3223_v44, %v3006_v14 }
 0x188   :  { %v1495_v30 = vpop.f32.mrf.mxu2  ;;  %2097 = vmatpush.bf16.msra.mxu3 %v3009_v49 }
 0x189   :  { %v1496_v39 = vadd.f32 %v1495_v30, %v1447_v55  ;;  %v1544_v1 = vpop.f32.mrf.mxu3  ;;  %v1399_v61 = vpop.f32.mrf.mxu0  ;;  %v3175_v30 = vld [vmem:[%s5093_s1 + $0x2ec] sm:$0xf] }
 0x18a   :  { %v1400_v47 = vadd.f32 %v1399_v61, %v4235_v8  ;;  %v1448_v16 = vpop.f32.mrf.mxu1  ;;  %v2817_v29 = vor.u32 %v3175_v30, %v2814_v54 }
 0x18b   :  { %v4537_v55 = vadd.f32 %v1544_v1, %v1496_v39  ;;  %v1449_v8 = vadd.f32 %v1448_v16, %v4264_v36  ;;  %v2926_v16 = vld [vmem:[%s5093_s1 + $0x3d8] sm:$0xf0] }
 0x18c   :  { %v2194_v18 = vmax.f32 %v1400_v47, 0.0  ;;  %1995 = vmatpush.bf16.msra.mxu1 %v2817_v29 }
 0x18e   :  { %2258 = vst [vmem:[%s5096_s3 + $0x1a0] sm:$0xff] %v2194_v18 }
 0x190   :  { %v1497_v50 = vpop.f32.mrf.mxu2 }
 0x191   :  { %v1498_v39 = vadd.f32 %v1497_v50, %v1449_v8  ;;  %v1546_v1 = vpop.f32.mrf.mxu3  ;;  %v1402_v61 = vpop.f32.mrf.mxu0  ;;  %v2670_v8 = vld [vmem:[%s5093_s1 + $0x1d8] sm:$0xf0] }
 0x192   :  { %v1403_v58 = vadd.f32 %v1402_v61, %v4255_v10  ;;  %v1451_v3 = vpop.f32.mrf.mxu1  ;;  %v3203_v10 = vld [vmem:[%s5093_s1 + $0x3cc] sm:$0xf] }
 0x193   :  { %v4550_v44 = vadd.f32 %v1546_v1, %v1498_v39  ;;  %v1452_v47 = vadd.f32 %v1451_v3, %v4264_v36  ;;  %v2929_v18 = vor.u32 %v3203_v10, %v2926_v16  ;;  %v2673_v1 = vor.u32 %v3139_v13, %v2670_v8  ;;  %v2798_v3 = vld [vmem:[%s5093_s1 + $0x2d8] sm:$0xf0]  ;;  %v5123_v8 = vld [vmem:[#allocation2_spill] sm:$0xff] }
 0x194   :  { %v2198_v14 = vmax.f32 %v1403_v58, 0.0  ;;  %1597 = vmatmul.bf16.gmra.mxu0 %v3913_v11  ;;  %3025 = vmatmul.msk.bf16.gmra.mxu1 %vm1137_vm0, %v4232_v40  ;;  %v3171_v58 = vld [vmem:[%s5093_s1 + $0x2cc] sm:$0xf] }
 0x195   :  { %1695 = vmatmul.bf16.gmra.mxu2 %v3907_v4  ;;  %1947 = vmatpush.bf16.msra.mxu0 %v2673_v1  ;;  %v3199_v1 = vld [vmem:[%s5093_s1 + $0x3ac] sm:$0xf] }
 0x196   :  { %2262 = vst [vmem:[%s5096_s3 + $0x1c0] sm:$0xff] %v2198_v14  ;;  %1744 = vmatmul.bf16.gmra.mxu3 %v3909_v5  ;;  %2045 = vmatpush.bf16.msra.mxu2 %v2929_v18 }
 0x198   :  { %v1500_v29 = vpop.f32.mrf.mxu2 }
 0x199   :  { %v1501_v49 = vadd.f32 %v1500_v29, %v1452_v47  ;;  %v1549_v30 = vpop.f32.mrf.mxu3  ;;  %v1404_v54 = vpop.f32.mrf.mxu0  ;;  %v2801_v47 = vor.u32 %v3171_v58, %v2798_v3  ;;  %v2910_v58 = vld [vmem:[%s5093_s1 + $0x3b8] sm:$0xf0] }
 0x19a   :  { %v1405_v50 = vadd.f32 %v1404_v54, %v4267_v41  ;;  %v1453_v39 = vpop.f32.mrf.mxu1 }
 0x19b   :  { %v4574_v61 = vadd.f32 %v1549_v30, %v1501_v49  ;;  %1996 = vmatpush.bf16.msra.mxu1 %v2801_v47  ;;  %v1454_v41 = vadd.f32 %v1453_v39, %v4264_v36  ;;  %v4596_v36 = vld [vmem:[%s5095_s2] sm:$0xf] }
 0x19c   :  { %v2202_v14 = vmax.f32 %v1405_v50, 0.0  ;;  %v4599_v50 = vperm.slane %v4596_v36, 2 }
 0x19e   :  { %2266 = vst [vmem:[%s5096_s3 + $0x1e0] sm:$0xff] %v2202_v14 }
 0x1a0   :  { %v1502_v29 = vpop.f32.mrf.mxu2 }
 0x1a1   :  { %v1503_v10 = vadd.f32 %v1502_v29, %v1454_v41  ;;  %v1551_v16 = vpop.f32.mrf.mxu3  ;;  %v1563_v13 = vpop.f32.mrf.mxu0  ;;  %v2913_v41 = vor.u32 %v3199_v1, %v2910_v58  ;;  %v2654_v29 = vld [vmem:[%s5093_s1 + $0x1b8] sm:$0xf0] }
 0x1a2   :  { %v1564_v49 = vadd.f32 %v1563_v13, %v4297_v23  ;;  %v1612_v30 = vpop.f32.mrf.mxu1  ;;  %v2782_v1 = vld [vmem:[%s5093_s1 + $0x2b8] sm:$0xf0] }
 0x1a3   :  { %v4587_v54 = vadd.f32 %v1551_v16, %v1503_v10  ;;  %v3219_v10 = vld [vmem:[%s5093_s1 + $0x44c] sm:$0xf]  ;;  %2046 = vmatpush.bf16.msra.mxu2 %v2913_v41 }
 0x1a4   :  { %v1613_v18 = vadd.f32 %v1612_v30, %v1564_v49  ;;  %1758 = vmatmul.bf16.vlgmr.msrb.gmra.mxu0 %v5123_v8  ;;  %1807 = vmatmul.bf16.vlgmr.msrb.gmra.mxu1 %v3505_v57  ;;  %v2990_v30 = vld [vmem:[%s5093_s1 + $0x458] sm:$0xf0] }
 0x1a5   :  { %3026 = vmatmul.msk.bf16.vlgmr.msrb.gmra.mxu2 %vm1137_vm0, %v3951_v37 }
 0x1a6   :  { %v2143_v23 = vmax.f32 %v1613_v18, 0.0  ;;  %1905 = vmatmul.bf16.vlgmr.msrb.gmra.mxu3 %v3484_v48  ;;  %v3135_v48 = vld [vmem:[%s5093_s1 + $0x1ac] sm:$0xf] }
 0x1a7   :  { %v2657_v49 = vor.u32 %v3135_v48, %v2654_v29 }
 0x1a8   :  { %2207 = vst [vmem:[%s5096_s3 + $0x8] sm:$0xff] %v2143_v23  ;;  %v1661_v39 = vpop.f32.mrf.mxu2  ;;  %v2993_v23 = vor.u32 %v3219_v10, %v2990_v30 }
 0x1a9   :  { %v1662_v3 = vadd.f32 %v1661_v39, %v4599_v50  ;;  %v1710_v14 = vpop.f32.mrf.mxu3  ;;  %v1565_v47 = vpop.f32.mrf.mxu0  ;;  %v3167_v39 = vld [vmem:[%s5093_s1 + $0x2ac] sm:$0xf]  ;;  %1948 = vmatpush.bf16.msra.mxu0 %v2657_v49 }
 0x1aa   :  { %v1566_v16 = vadd.f32 %v1565_v47, %v4310_v59  ;;  %v1614_v13 = vpop.f32.mrf.mxu1  ;;  %v2785_v59 = vor.u32 %v3167_v39, %v2782_v1  ;;  %2098 = vmatpush.bf16.msra.mxu3 %v2993_v23  ;;  %v2894_v39 = vld [vmem:[%s5093_s1 + $0x398] sm:$0xf0] }
 0x1ab   :  { %v4625_v18 = vadd.f32 %v1710_v14, %v1662_v3 }
 0x1ac   :  { %v1615_v58 = vadd.f32 %v1614_v13, %v1566_v16  ;;  %1997 = vmatpush.bf16.msra.mxu1 %v2785_v59  ;;  %v5124_v13 = vld [vmem:[#allocation3_spill] sm:$0xff] }
 0x1ae   :  { %v2147_v47 = vmax.f32 %v1615_v58, 0.0 }
 0x1b0   :  { %2211 = vst [vmem:[%s5096_s3 + $0x28] sm:$0xff] %v2147_v47  ;;  %v1663_v3 = vpop.f32.mrf.mxu2 }
 0x1b1   :  { %v1664_v14 = vadd.f32 %v1663_v3, %v4599_v50  ;;  %v1712_v41 = vpop.f32.mrf.mxu3  ;;  %v1568_v48 = vpop.f32.mrf.mxu0  ;;  %v2638_v3 = vld [vmem:[%s5093_s1 + $0x198] sm:$0xf0] }
 0x1b2   :  { %v1569_v29 = vadd.f32 %v1568_v48, %v4334_v33  ;;  %v1617_v10 = vpop.f32.mrf.mxu1  ;;  %v3195_v33 = vld [vmem:[%s5093_s1 + $0x38c] sm:$0xf] }
 0x1b3   :  { %v4638_v30 = vadd.f32 %v1712_v41, %v1664_v14  ;;  %v2897_v47 = vor.u32 %v3195_v33, %v2894_v39 }
 0x1b4   :  { %v1618_v16 = vadd.f32 %v1617_v10, %v1569_v29  ;;  %1763 = vmatmul.bf16.gmra.mxu0 %v5124_v13  ;;  %1812 = vmatmul.bf16.gmra.mxu1 %v3571_v24  ;;  %v3163_v10 = vld [vmem:[%s5093_s1 + $0x28c] sm:$0xf] }
 0x1b5   :  { %3027 = vmatmul.msk.bf16.gmra.mxu2 %vm1137_vm0, %v3992_v26 }
 0x1b6   :  { %v2151_v49 = vmax.f32 %v1618_v16, 0.0  ;;  %1910 = vmatmul.bf16.gmra.mxu3 %v3565_v21  ;;  %v3131_v21 = vld [vmem:[%s5093_s1 + $0x18c] sm:$0xf]  ;;  %2047 = vmatpush.bf16.msra.mxu2 %v2897_v47  ;;  %v2766_v16 = vld [vmem:[%s5093_s1 + $0x298] sm:$0xf0] }
 0x1b7   :  { %v2641_v48 = vor.u32 %v3131_v21, %v2638_v3 }
 0x1b8   :  { %2215 = vst [vmem:[%s5096_s3 + $0x48] sm:$0xff] %v2151_v49  ;;  %v1666_v23 = vpop.f32.mrf.mxu2 }
 0x1b9   :  { %v1667_v1 = vadd.f32 %v1666_v23, %v4599_v50  ;;  %v1715_v58 = vpop.f32.mrf.mxu3  ;;  %v1570_v59 = vpop.f32.mrf.mxu0  ;;  %1949 = vmatpush.bf16.msra.mxu0 %v2641_v48  ;;  %v2769_v23 = vor.u32 %v3163_v10, %v2766_v16  ;;  %v2878_v10 = vld [vmem:[%s5093_s1 + $0x378] sm:$0xf0] }
 0x1ba   :  { %v1571_v14 = vadd.f32 %v1570_v59, %v4347_v46  ;;  %v1619_v41 = vpop.f32.mrf.mxu1 }
 0x1bb   :  { %v4662_v29 = vadd.f32 %v1715_v58, %v1667_v1  ;;  %1998 = vmatpush.bf16.msra.mxu1 %v2769_v23 }
 0x1bc   :  { %v1620_v49 = vadd.f32 %v1619_v41, %v1571_v14  ;;  %v5125_v14 = vld [vmem:[#allocation4_spill] sm:$0xff] }
 0x1be   :  { %v2155_v33 = vmax.f32 %v1620_v49, 0.0 }
 0x1c0   :  { %2219 = vst [vmem:[%s5096_s3 + $0x68] sm:$0xff] %v2155_v33  ;;  %v1668_v46 = vpop.f32.mrf.mxu2 }
 0x1c1   :  { %v1669_v39 = vadd.f32 %v1668_v46, %v4599_v50  ;;  %v1717_v1 = vpop.f32.mrf.mxu3  ;;  %v1573_v58 = vpop.f32.mrf.mxu0  ;;  %v2622_v46 = vld [vmem:[%s5093_s1 + $0x178] sm:$0xf0] }
 0x1c2   :  { %v1574_v59 = vadd.f32 %v1573_v58, %v4377_v19  ;;  %v1622_v47 = vpop.f32.mrf.mxu1  ;;  %v3191_v19 = vld [vmem:[%s5093_s1 + $0x36c] sm:$0xf] }
 0x1c3   :  { %v4675_v21 = vadd.f32 %v1717_v1, %v1669_v39  ;;  %v2881_v33 = vor.u32 %v3191_v19, %v2878_v10  ;;  %v3215_v39 = vld [vmem:[%s5093_s1 + $0x42c] sm:$0xf]  ;;  %v2750_v19 = vld [vmem:[%s5093_s1 + $0x278] sm:$0xf0] }
 0x1c4   :  { %v1623_v3 = vadd.f32 %v1622_v47, %v1574_v59  ;;  %1768 = vmatmul.bf16.gmra.mxu0 %v5125_v14  ;;  %1817 = vmatmul.bf16.gmra.mxu1 %v3625_v45  ;;  %v2974_v47 = vld [vmem:[%s5093_s1 + $0x438] sm:$0xf0] }
 0x1c5   :  { %3028 = vmatmul.msk.bf16.gmra.mxu2 %vm1137_vm0, %v4029_v27 }
 0x1c6   :  { %v2159_v41 = vmax.f32 %v1623_v3, 0.0  ;;  %1915 = vmatmul.bf16.gmra.mxu3 %v3619_v42  ;;  %v3127_v42 = vld [vmem:[%s5093_s1 + $0x16c] sm:$0xf]  ;;  %2048 = vmatpush.bf16.msra.mxu2 %v2881_v33 }
 0x1c7   :  { %v2625_v59 = vor.u32 %v3127_v42, %v2622_v46 }
 0x1c8   :  { %2223 = vst [vmem:[%s5096_s3 + $0x88] sm:$0xff] %v2159_v41  ;;  %v1671_v48 = vpop.f32.mrf.mxu2  ;;  %v2977_v41 = vor.u32 %v3215_v39, %v2974_v47 }
 0x1c9   :  { %v1672_v16 = vadd.f32 %v1671_v48, %v4599_v50  ;;  %v1720_v49 = vpop.f32.mrf.mxu3  ;;  %v1575_v23 = vpop.f32.mrf.mxu0  ;;  %v3159_v48 = vld [vmem:[%s5093_s1 + $0x26c] sm:$0xf]  ;;  %1950 = vmatpush.bf16.msra.mxu0 %v2625_v59 }
 0x1ca   :  { %v1576_v1 = vadd.f32 %v1575_v23, %v4390_v25  ;;  %v1624_v58 = vpop.f32.mrf.mxu1  ;;  %v2753_v25 = vor.u32 %v3159_v48, %v2750_v19  ;;  %2099 = vmatpush.bf16.msra.mxu3 %v2977_v41  ;;  %v2862_v48 = vld [vmem:[%s5093_s1 + $0x358] sm:$0xf0] }
 0x1cb   :  { %v4705_v3 = vadd.f32 %v1720_v49, %v1672_v16 }
 0x1cc   :  { %v1625_v10 = vadd.f32 %v1624_v58, %v1576_v1  ;;  %1999 = vmatpush.bf16.msra.mxu1 %v2753_v25  ;;  %v5126_v58 = vld [vmem:[#allocation5_spill] sm:$0xff] }
 0x1ce   :  { %v2163_v23 = vmax.f32 %v1625_v10, 0.0 }
 0x1d0   :  { %2227 = vst [vmem:[%s5096_s3 + $0xa8] sm:$0xff] %v2163_v23  ;;  %v1673_v16 = vpop.f32.mrf.mxu2 }
 0x1d1   :  { %v1674_v49 = vadd.f32 %v1673_v16, %v4599_v50  ;;  %v1722_v33 = vpop.f32.mrf.mxu3  ;;  %v1578_v42 = vpop.f32.mrf.mxu0  ;;  %v2606_v16 = vld [vmem:[%s5093_s1 + $0x158] sm:$0xf0] }
 0x1d2   :  { %v1579_v46 = vadd.f32 %v1578_v42, %v4414_v38  ;;  %v1627_v39 = vpop.f32.mrf.mxu1  ;;  %v3187_v38 = vld [vmem:[%s5093_s1 + $0x34c] sm:$0xf] }
 0x1d3   :  { %v4718_v47 = vadd.f32 %v1722_v33, %v1674_v49  ;;  %v2865_v23 = vor.u32 %v3187_v38, %v2862_v48 }
 0x1d4   :  { %v1628_v1 = vadd.f32 %v1627_v39, %v1579_v46  ;;  %1773 = vmatmul.bf16.gmra.mxu0 %v5126_v58  ;;  %1822 = vmatmul.bf16.gmra.mxu1 %v3685_v9  ;;  %v3155_v39 = vld [vmem:[%s5093_s1 + $0x24c] sm:$0xf] }
 0x1d5   :  { %3029 = vmatmul.msk.bf16.gmra.mxu2 %vm1137_vm0, %v4072_v51 }
 0x1d6   :  { %v2167_v59 = vmax.f32 %v1628_v1, 0.0  ;;  %1920 = vmatmul.bf16.gmra.mxu3 %v3679_v6  ;;  %v3123_v6 = vld [vmem:[%s5093_s1 + $0x14c] sm:$0xf]  ;;  %2049 = vmatpush.bf16.msra.mxu2 %v2865_v23  ;;  %v2734_v1 = vld [vmem:[%s5093_s1 + $0x258] sm:$0xf0] }
 0x1d7   :  { %v2609_v42 = vor.u32 %v3123_v6, %v2606_v16 }
 0x1d8   :  { %2231 = vst [vmem:[%s5096_s3 + $0xc8] sm:$0xff] %v2167_v59  ;;  %v1676_v41 = vpop.f32.mrf.mxu2 }
 0x1d9   :  { %v1677_v19 = vadd.f32 %v1676_v41, %v4599_v50  ;;  %v1725_v10 = vpop.f32.mrf.mxu3  ;;  %v1580_v25 = vpop.f32.mrf.mxu0  ;;  %1951 = vmatpush.bf16.msra.mxu0 %v2609_v42  ;;  %v2737_v41 = vor.u32 %v3155_v39, %v2734_v1  ;;  %v2846_v39 = vld [vmem:[%s5093_s1 + $0x338] sm:$0xf0] }
 0x1da   :  { %v1581_v49 = vadd.f32 %v1580_v25, %v4427_v60  ;;  %v1629_v33 = vpop.f32.mrf.mxu1 }
 0x1db   :  { %v4742_v46 = vadd.f32 %v1725_v10, %v1677_v19  ;;  %2000 = vmatpush.bf16.msra.mxu1 %v2737_v41 }
 0x1dc   :  { %v1630_v59 = vadd.f32 %v1629_v33, %v1581_v49  ;;  %v5127_v49 = vld [vmem:[#allocation6_spill] sm:$0xff] }
 0x1de   :  { %v2171_v38 = vmax.f32 %v1630_v59, 0.0 }
 0x1e0   :  { %2235 = vst [vmem:[%s5096_s3 + $0xe8] sm:$0xff] %v2171_v38  ;;  %v1678_v60 = vpop.f32.mrf.mxu2 }
 0x1e1   :  { %v1679_v48 = vadd.f32 %v1678_v60, %v4599_v50  ;;  %v1727_v19 = vpop.f32.mrf.mxu3  ;;  %v1583_v10 = vpop.f32.mrf.mxu0  ;;  %v2590_v60 = vld [vmem:[%s5093_s1 + $0x138] sm:$0xf0] }
 0x1e2   :  { %v1584_v25 = vadd.f32 %v1583_v10, %v4457_v17  ;;  %v1632_v23 = vpop.f32.mrf.mxu1  ;;  %v3183_v17 = vld [vmem:[%s5093_s1 + $0x32c] sm:$0xf] }
 0x1e3   :  { %v4755_v6 = vadd.f32 %v1727_v19, %v1679_v48  ;;  %v2849_v38 = vor.u32 %v3183_v17, %v2846_v39  ;;  %v3211_v48 = vld [vmem:[%s5093_s1 + $0x40c] sm:$0xf]  ;;  %v2718_v17 = vld [vmem:[%s5093_s1 + $0x238] sm:$0xf0] }
 0x1e4   :  { %v1633_v16 = vadd.f32 %v1632_v23, %v1584_v25  ;;  %1778 = vmatmul.bf16.gmra.mxu0 %v5127_v49  ;;  %1827 = vmatmul.bf16.gmra.mxu1 %v3739_v34  ;;  %v2958_v23 = vld [vmem:[%s5093_s1 + $0x418] sm:$0xf0] }
 0x1e5   :  { %3030 = vmatmul.msk.bf16.gmra.mxu2 %vm1137_vm0, %v4109_v62 }
 0x1e6   :  { %v2175_v33 = vmax.f32 %v1633_v16, 0.0  ;;  %1925 = vmatmul.bf16.gmra.mxu3 %v3733_v31  ;;  %v3119_v31 = vld [vmem:[%s5093_s1 + $0x12c] sm:$0xf]  ;;  %2050 = vmatpush.bf16.msra.mxu2 %v2849_v38 }
 0x1e7   :  { %v2593_v25 = vor.u32 %v3119_v31, %v2590_v60 }
 0x1e8   :  { %2239 = vst [vmem:[%s5096_s3 + $0x108] sm:$0xff] %v2175_v33  ;;  %v1681_v42 = vpop.f32.mrf.mxu2  ;;  %v2961_v33 = vor.u32 %v3211_v48, %v2958_v23 }
 0x1e9   :  { %v1682_v1 = vadd.f32 %v1681_v42, %v4599_v50  ;;  %v1730_v59 = vpop.f32.mrf.mxu3  ;;  %v1585_v41 = vpop.f32.mrf.mxu0  ;;  %v3151_v42 = vld [vmem:[%s5093_s1 + $0x22c] sm:$0xf]  ;;  %1952 = vmatpush.bf16.msra.mxu0 %v2593_v25 }
 0x1ea   :  { %v1586_v19 = vadd.f32 %v1585_v41, %v4470_v15  ;;  %v1634_v10 = vpop.f32.mrf.mxu1  ;;  %v2721_v15 = vor.u32 %v3151_v42, %v2718_v17  ;;  %2100 = vmatpush.bf16.msra.mxu3 %v2961_v33  ;;  %v2830_v42 = vld [vmem:[%s5093_s1 + $0x318] sm:$0xf0] }
 0x1eb   :  { %v4785_v16 = vadd.f32 %v1730_v59, %v1682_v1 }
 0x1ec   :  { %v1635_v39 = vadd.f32 %v1634_v10, %v1586_v19  ;;  %2001 = vmatpush.bf16.msra.mxu1 %v2721_v15  ;;  %v5128_v10 = vld [vmem:[#allocation7_spill] sm:$0xff] }
 0x1ee   :  { %v2179_v41 = vmax.f32 %v1635_v39, 0.0 }
 0x1f0   :  { %2243 = vst [vmem:[%s5096_s3 + $0x128] sm:$0xff] %v2179_v41  ;;  %v1683_v1 = vpop.f32.mrf.mxu2 }
 0x1f1   :  { %v1684_v59 = vadd.f32 %v1683_v1, %v4599_v50  ;;  %v1732_v38 = vpop.f32.mrf.mxu3  ;;  %v1588_v31 = vpop.f32.mrf.mxu0  ;;  %v2574_v1 = vld [vmem:[%s5093_s1 + $0x118] sm:$0xf0] }
 0x1f2   :  { %v1589_v60 = vadd.f32 %v1588_v31, %v4494_v56  ;;  %v1637_v48 = vpop.f32.mrf.mxu1  ;;  %v3179_v56 = vld [vmem:[%s5093_s1 + $0x30c] sm:$0xf] }
 0x1f3   :  { %v4798_v23 = vadd.f32 %v1732_v38, %v1684_v59  ;;  %v2833_v41 = vor.u32 %v3179_v56, %v2830_v42 }
 0x1f4   :  { %v1638_v19 = vadd.f32 %v1637_v48, %v1589_v60  ;;  %1783 = vmatmul.bf16.gmra.mxu0 %v5128_v10  ;;  %1832 = vmatmul.bf16.gmra.mxu1 %v3799_v2  ;;  %v3147_v48 = vld [vmem:[%s5093_s1 + $0x20c] sm:$0xf] }
 0x1f5   :  { %3031 = vmatmul.msk.bf16.gmra.mxu2 %vm1137_vm0, %v4152_v52 }
 0x1f6   :  { %v2183_v25 = vmax.f32 %v1638_v19, 0.0  ;;  %1930 = vmatmul.bf16.gmra.mxu3 %v3793_v63  ;;  %v3115_v63 = vld [vmem:[%s5093_s1 + $0x10c] sm:$0xf]  ;;  %2051 = vmatpush.bf16.msra.mxu2 %v2833_v41  ;;  %v2702_v19 = vld [vmem:[%s5093_s1 + $0x218] sm:$0xf0] }
 0x1f7   :  { %v2577_v31 = vor.u32 %v3115_v63, %v2574_v1 }
 0x1f8   :  { %2247 = vst [vmem:[%s5096_s3 + $0x148] sm:$0xff] %v2183_v25  ;;  %v1686_v33 = vpop.f32.mrf.mxu2 }
 0x1f9   :  { %v1687_v17 = vadd.f32 %v1686_v33, %v4599_v50  ;;  %v1735_v39 = vpop.f32.mrf.mxu3  ;;  %v1590_v15 = vpop.f32.mrf.mxu0  ;;  %1953 = vmatpush.bf16.msra.mxu0 %v2577_v31  ;;  %v2705_v33 = vor.u32 %v3147_v48, %v2702_v19 }
 0x1fa   :  { %v1591_v59 = vadd.f32 %v1590_v15, %v4507_v12  ;;  %v1639_v38 = vpop.f32.mrf.mxu1 }
 0x1fb   :  { %v4822_v60 = vadd.f32 %v1735_v39, %v1687_v17  ;;  %2002 = vmatpush.bf16.msra.mxu1 %v2705_v33 }
 0x1fc   :  { %v1640_v25 = vadd.f32 %v1639_v38, %v1591_v59  ;;  %v5129_v59 = vld [vmem:[#allocation9_spill] sm:$0xff] }
 0x1fe   :  { %v2187_v56 = vmax.f32 %v1640_v25, 0.0 }
 0x200   :  { %2251 = vst [vmem:[%s5096_s3 + $0x168] sm:$0xff] %v2187_v56  ;;  %v1688_v12 = vpop.f32.mrf.mxu2 }
 0x201   :  { %v1689_v42 = vadd.f32 %v1688_v12, %v4599_v50  ;;  %v1737_v17 = vpop.f32.mrf.mxu3  ;;  %v1593_v39 = vpop.f32.mrf.mxu0 }
 0x202   :  { %v1594_v15 = vadd.f32 %v1593_v39, %v4537_v55  ;;  %v1642_v41 = vpop.f32.mrf.mxu1 }
 0x203   :  { %v4835_v63 = vadd.f32 %v1737_v17, %v1689_v42 }
 0x204   :  { %v1643_v1 = vadd.f32 %v1642_v41, %v1594_v15  ;;  %1788 = vmatmul.bf16.gmra.mxu0 %v5129_v59  ;;  %1837 = vmatmul.bf16.gmra.mxu1 %v3853_v35 }
 0x205   :  { %3032 = vmatmul.msk.bf16.gmra.mxu2 %vm1137_vm0, %v4189_v20 }
 0x206   :  { %v2191_v38 = vmax.f32 %v1643_v1, 0.0  ;;  %1935 = vmatmul.bf16.gmra.mxu3 %v3847_v28 }
 0x208   :  { %2255 = vst [vmem:[%s5096_s3 + $0x188] sm:$0xff] %v2191_v38  ;;  %v1691_v31 = vpop.f32.mrf.mxu2 }
 0x209   :  { %v1692_v55 = vadd.f32 %v1691_v31, %v4599_v50  ;;  %v1740_v48 = vpop.f32.mrf.mxu3  ;;  %v1595_v19 = vpop.f32.mrf.mxu0  ;;  %v5130_v31 = vld [vmem:[#allocation10_spill] sm:$0xff] }
 0x20a   :  { %v1596_v25 = vadd.f32 %v1595_v19, %v4550_v44  ;;  %v1644_v33 = vpop.f32.mrf.mxu1 }
 0x20b   :  { %v4847_v56 = vadd.f32 %v1740_v48, %v1692_v55 }
 0x20c   :  { %v1645_v12 = vadd.f32 %v1644_v33, %v1596_v25 }
 0x20e   :  { %v2195_v42 = vmax.f32 %v1645_v12, 0.0 }
 0x210   :  { %2259 = vst [vmem:[%s5096_s3 + $0x1a8] sm:$0xff] %v2195_v42  ;;  %v1693_v28 = vpop.f32.mrf.mxu2 }
 0x211   :  { %v1694_v17 = vadd.f32 %v1693_v28, %v4599_v50  ;;  %v1742_v39 = vpop.f32.mrf.mxu3  ;;  %v1598_v15 = vpop.f32.mrf.mxu0 }
 0x212   :  { %v1599_v41 = vadd.f32 %v1598_v15, %v4574_v61  ;;  %v1647_v1 = vpop.f32.mrf.mxu1 }
 0x213   :  { %v4854_v38 = vadd.f32 %v1742_v39, %v1694_v17 }
 0x214   :  { %v1648_v44 = vadd.f32 %v1647_v1, %v1599_v41  ;;  %1793 = vmatmul.bf16.gmra.mxu0 %v5130_v31  ;;  %1842 = vmatmul.bf16.gmra.mxu1 %v3913_v11 }
 0x215   :  { %3033 = vmatmul.msk.bf16.gmra.mxu2 %vm1137_vm0, %v4232_v40 }
 0x216   :  { %v2199_v55 = vmax.f32 %v1648_v44, 0.0  ;;  %1940 = vmatmul.bf16.gmra.mxu3 %v3907_v4 }
 0x218   :  { %2263 = vst [vmem:[%s5096_s3 + $0x1c8] sm:$0xff] %v2199_v55  ;;  %v1696_v48 = vpop.f32.mrf.mxu2 }
 0x219   :  { %v1697_v61 = vadd.f32 %v1696_v48, %v4599_v50  ;;  %v1745_v19 = vpop.f32.mrf.mxu3  ;;  %v1600_v25 = vpop.f32.mrf.mxu0 }
 0x21a   :  { %v1601_v33 = vadd.f32 %v1600_v25, %v4587_v54  ;;  %v1649_v12 = vpop.f32.mrf.mxu1 }
 0x21b   :  { %v4866_v42 = vadd.f32 %v1745_v19, %v1697_v61 }
 0x21c   :  { %v1650_v28 = vadd.f32 %v1649_v12, %v1601_v33 }
 0x21e   :  { %v2203_v17 = vmax.f32 %v1650_v28, 0.0 }
 0x220   :  { %2267 = vst [vmem:[%s5096_s3 + $0x1e8] sm:$0xff] %v2203_v17  ;;  %v1698_v4 = vpop.f32.mrf.mxu2 }
 0x221   :  { %v1699_v39 = vadd.f32 %v1698_v4, %v4599_v50  ;;  %v1747_v15 = vpop.f32.mrf.mxu3  ;;  %v1759_v41 = vpop.f32.mrf.mxu0 }
 0x222   :  { %v1808_v1 = vpop.f32.mrf.mxu1  ;;  %v1760_v55 = vadd.f32 %v1759_v41, %v4625_v18 }
 0x223   :  { %v4872_v44 = vadd.f32 %v1747_v15, %v1699_v39 }
 0x224   :  { %1954 = vmatmul.bf16.vlgmr.msra.gmra.mxu0 %v3495_v53  ;;  %2003 = vmatmul.bf16.vlgmr.msra.gmra.mxu1 %v5123_v8  ;;  %v1809_v54 = vadd.f32 %v1808_v1, %v1760_v55 }
 0x225   :  { %2052 = vmatmul.bf16.vlgmr.msra.gmra.mxu2 %v3505_v57 }
 0x226   :  { %3034 = vmatmul.msk.bf16.vlgmr.msra.gmra.mxu3 %vm1137_vm0, %v3951_v37 }
 0x228   :  { %v1857_v48 = vpop.f32.mrf.mxu2 }
 0x229   :  { %v1858_v61 = vadd.f32 %v1857_v48, %v1809_v54  ;;  %v4880_v50 = vpop.f32.mrf.mxu3  ;;  %v1761_v19 = vpop.f32.mrf.mxu0 }
 0x22a   :  { %v1810_v25 = vpop.f32.mrf.mxu1  ;;  %v1762_v12 = vadd.f32 %v1761_v19, %v4638_v30 }
 0x22b   :  { %v2144_v33 = vmax.f32 %v1858_v61, 0.0 }
 0x22c   :  { %v1811_v53 = vadd.f32 %v1810_v25, %v1762_v12 }
 0x22d   :  { %2208 = vst [vmem:[%s5096_s3 + $0x10] sm:$0xff] %v2144_v33 }
 0x230   :  { %v1859_v8 = vpop.f32.mrf.mxu2 }
 0x231   :  { %v1860_v57 = vadd.f32 %v1859_v8, %v1811_v53  ;;  %v4886_v18 = vpop.f32.mrf.mxu3  ;;  %v1764_v37 = vpop.f32.mrf.mxu0 }
 0x232   :  { %v1813_v28 = vpop.f32.mrf.mxu1  ;;  %v1765_v4 = vadd.f32 %v1764_v37, %v4662_v29 }
 0x233   :  { %v2148_v17 = vmax.f32 %v1860_v57, 0.0 }
 0x234   :  { %1959 = vmatmul.bf16.gmra.mxu0 %v3567_v22  ;;  %2008 = vmatmul.bf16.gmra.mxu1 %v5124_v13  ;;  %v1814_v30 = vadd.f32 %v1813_v28, %v1765_v4 }
 0x235   :  { %2212 = vst [vmem:[%s5096_s3 + $0x30] sm:$0xff] %v2148_v17  ;;  %2057 = vmatmul.bf16.gmra.mxu2 %v3571_v24 }
 0x236   :  { %3035 = vmatmul.msk.bf16.gmra.mxu3 %vm1137_vm0, %v3992_v26 }
 0x238   :  { %v1862_v39 = vpop.f32.mrf.mxu2 }
 0x239   :  { %v1863_v15 = vadd.f32 %v1862_v39, %v1814_v30  ;;  %v4897_v41 = vpop.f32.mrf.mxu3  ;;  %v1766_v1 = vpop.f32.mrf.mxu0 }
 0x23a   :  { %v1815_v29 = vpop.f32.mrf.mxu1  ;;  %v1767_v22 = vadd.f32 %v1766_v1, %v4675_v21 }
 0x23b   :  { %v2152_v55 = vmax.f32 %v1863_v15, 0.0 }
 0x23c   :  { %v1816_v13 = vadd.f32 %v1815_v29, %v1767_v22 }
 0x23d   :  { %2216 = vst [vmem:[%s5096_s3 + $0x50] sm:$0xff] %v2152_v55 }
 0x240   :  { %v1864_v54 = vpop.f32.mrf.mxu2 }
 0x241   :  { %v1865_v24 = vadd.f32 %v1864_v54, %v1816_v13  ;;  %v4903_v48 = vpop.f32.mrf.mxu3  ;;  %v1769_v26 = vpop.f32.mrf.mxu0 }
 0x242   :  { %v1818_v61 = vpop.f32.mrf.mxu1  ;;  %v1770_v25 = vadd.f32 %v1769_v26, %v4705_v3 }
 0x243   :  { %v2156_v19 = vmax.f32 %v1865_v24, 0.0 }
 0x244   :  { %1964 = vmatmul.bf16.gmra.mxu0 %v3621_v43  ;;  %2013 = vmatmul.bf16.gmra.mxu1 %v5125_v14  ;;  %v1819_v21 = vadd.f32 %v1818_v61, %v1770_v25 }
 0x245   :  { %2220 = vst [vmem:[%s5096_s3 + $0x70] sm:$0xff] %v2156_v19  ;;  %2062 = vmatmul.bf16.gmra.mxu2 %v3625_v45 }
 0x246   :  { %3036 = vmatmul.msk.bf16.gmra.mxu3 %vm1137_vm0, %v4029_v27 }
 0x248   :  { %v1867_v33 = vpop.f32.mrf.mxu2 }
 0x249   :  { %v1868_v12 = vadd.f32 %v1867_v33, %v1819_v21  ;;  %v4914_v53 = vpop.f32.mrf.mxu3  ;;  %v1771_v8 = vpop.f32.mrf.mxu0 }
 0x24a   :  { %v1820_v3 = vpop.f32.mrf.mxu1  ;;  %v1772_v43 = vadd.f32 %v1771_v8, %v4718_v47 }
 0x24b   :  { %v2160_v57 = vmax.f32 %v1868_v12, 0.0 }
 0x24c   :  { %v1821_v14 = vadd.f32 %v1820_v3, %v1772_v43 }
 0x24d   :  { %2224 = vst [vmem:[%s5096_s3 + $0x90] sm:$0xff] %v2160_v57 }
 0x250   :  { %v1869_v37 = vpop.f32.mrf.mxu2 }
 0x251   :  { %v1870_v45 = vadd.f32 %v1869_v37, %v1821_v14  ;;  %v4920_v28 = vpop.f32.mrf.mxu3  ;;  %v1774_v27 = vpop.f32.mrf.mxu0 }
 0x252   :  { %v1823_v17 = vpop.f32.mrf.mxu1  ;;  %v1775_v30 = vadd.f32 %v1774_v27, %v4742_v46 }
 0x253   :  { %v2164_v4 = vmax.f32 %v1870_v45, 0.0 }
 0x254   :  { %1969 = vmatmul.bf16.gmra.mxu0 %v3681_v7  ;;  %2018 = vmatmul.bf16.gmra.mxu1 %v5126_v58  ;;  %v1824_v47 = vadd.f32 %v1823_v17, %v1775_v30 }
 0x255   :  { %2228 = vst [vmem:[%s5096_s3 + $0xb0] sm:$0xff] %v2164_v4  ;;  %2067 = vmatmul.bf16.gmra.mxu2 %v3685_v9 }
 0x256   :  { %3037 = vmatmul.msk.bf16.gmra.mxu3 %vm1137_vm0, %v4072_v51 }
 0x258   :  { %v1872_v39 = vpop.f32.mrf.mxu2 }
 0x259   :  { %v1873_v15 = vadd.f32 %v1872_v39, %v1824_v47  ;;  %v4931_v1 = vpop.f32.mrf.mxu3  ;;  %v1776_v29 = vpop.f32.mrf.mxu0 }
 0x25a   :  { %v1825_v46 = vpop.f32.mrf.mxu1  ;;  %v1777_v7 = vadd.f32 %v1776_v29, %v4755_v6  ;;  %v5131_v29 = vld [vmem:[#allocation8_spill] sm:$0xff] }
 0x25b   :  { %v2168_v55 = vmax.f32 %v1873_v15, 0.0 }
 0x25c   :  { %v1826_v58 = vadd.f32 %v1825_v46, %v1777_v7 }
 0x25d   :  { %2232 = vst [vmem:[%s5096_s3 + $0xd0] sm:$0xff] %v2168_v55 }
 0x260   :  { %v1874_v22 = vpop.f32.mrf.mxu2 }
 0x261   :  { %v1875_v9 = vadd.f32 %v1874_v22, %v1826_v58  ;;  %v4937_v13 = vpop.f32.mrf.mxu3  ;;  %v1779_v51 = vpop.f32.mrf.mxu0 }
 0x262   :  { %v1828_v54 = vpop.f32.mrf.mxu1  ;;  %v1780_v26 = vadd.f32 %v1779_v51, %v4785_v16 }
 0x263   :  { %v2172_v24 = vmax.f32 %v1875_v9, 0.0 }
 0x264   :  { %1974 = vmatmul.bf16.gmra.mxu0 %v3735_v32  ;;  %2023 = vmatmul.bf16.gmra.mxu1 %v5127_v49  ;;  %v1829_v6 = vadd.f32 %v1828_v54, %v1780_v26 }
 0x265   :  { %2236 = vst [vmem:[%s5096_s3 + $0xf0] sm:$0xff] %v2172_v24  ;;  %2072 = vmatmul.bf16.gmra.mxu2 %v3739_v34 }
 0x266   :  { %3038 = vmatmul.msk.bf16.gmra.mxu3 %vm1137_vm0, %v4109_v62 }
 0x268   :  { %v1877_v61 = vpop.f32.mrf.mxu2 }
 0x269   :  { %v1878_v19 = vadd.f32 %v1877_v61, %v1829_v6  ;;  %v4948_v25 = vpop.f32.mrf.mxu3  ;;  %v1781_v21 = vpop.f32.mrf.mxu0 }
 0x26a   :  { %v1830_v16 = vpop.f32.mrf.mxu1  ;;  %v1782_v32 = vadd.f32 %v1781_v21, %v4798_v23 }
 0x26b   :  { %v2176_v33 = vmax.f32 %v1878_v19, 0.0 }
 0x26c   :  { %v1831_v49 = vadd.f32 %v1830_v16, %v1782_v32  ;;  %v5003_v32 = vperm.slane %v4596_v36, 3 }
 0x26d   :  { %2240 = vst [vmem:[%s5096_s3 + $0x110] sm:$0xff] %v2176_v33 }
 0x270   :  { %v1879_v12 = vpop.f32.mrf.mxu2 }
 0x271   :  { %v1880_v34 = vadd.f32 %v1879_v12, %v1831_v49  ;;  %v4954_v8 = vpop.f32.mrf.mxu3  ;;  %v1784_v62 = vpop.f32.mrf.mxu0 }
 0x272   :  { %v1833_v3 = vpop.f32.mrf.mxu1  ;;  %v1785_v43 = vadd.f32 %v1784_v62, %v4822_v60 }
 0x273   :  { %v2180_v57 = vmax.f32 %v1880_v34, 0.0 }
 0x274   :  { %1979 = vmatmul.bf16.gmra.mxu0 %v3795_v0  ;;  %2028 = vmatmul.bf16.gmra.mxu1 %v5128_v10  ;;  %v1834_v23 = vadd.f32 %v1833_v3, %v1785_v43  ;;  %v1909_v43 = vadd.f32 %v4886_v18, %v5003_v32 }
 0x275   :  { %2244 = vst [vmem:[%s5096_s3 + $0x130] sm:$0xff] %v2180_v57  ;;  %2077 = vmatmul.bf16.gmra.mxu2 %v3799_v2 }
 0x276   :  { %3039 = vmatmul.msk.bf16.gmra.mxu3 %vm1137_vm0, %v4152_v52 }
 0x278   :  { %v1882_v14 = vpop.f32.mrf.mxu2 }
 0x279   :  { %v1883_v37 = vadd.f32 %v1882_v14, %v1834_v23  ;;  %v4965_v45 = vpop.f32.mrf.mxu3  ;;  %v1786_v27 = vpop.f32.mrf.mxu0 }
 0x27a   :  { %v1835_v60 = vpop.f32.mrf.mxu1  ;;  %v1787_v0 = vadd.f32 %v1786_v27, %v4835_v63 }
 0x27b   :  { %v2184_v17 = vmax.f32 %v1883_v37, 0.0 }
 0x27c   :  { %v1836_v10 = vadd.f32 %v1835_v60, %v1787_v0 }
 0x27d   :  { %2248 = vst [vmem:[%s5096_s3 + $0x150] sm:$0xff] %v2184_v17 }
 0x280   :  { %v1884_v4 = vpop.f32.mrf.mxu2 }
 0x281   :  { %v1885_v2 = vadd.f32 %v1884_v4, %v1836_v10  ;;  %v4971_v30 = vpop.f32.mrf.mxu3  ;;  %v1789_v52 = vpop.f32.mrf.mxu0  ;;  %v1912_v4 = vadd.f32 %v4897_v41, %v5003_v32 }
 0x282   :  { %v1838_v47 = vpop.f32.mrf.mxu1  ;;  %v1790_v15 = vadd.f32 %v1789_v52, %v4847_v56 }
 0x283   :  { %v2188_v39 = vmax.f32 %v1885_v2, 0.0 }
 0x284   :  { %1984 = vmatmul.bf16.gmra.mxu0 %v5131_v29  ;;  %2033 = vmatmul.bf16.gmra.mxu1 %v5129_v59  ;;  %v1839_v63 = vadd.f32 %v1838_v47, %v1790_v15 }
 0x285   :  { %2252 = vst [vmem:[%s5096_s3 + $0x170] sm:$0xff] %v2188_v39  ;;  %2082 = vmatmul.bf16.gmra.mxu2 %v3853_v35 }
 0x286   :  { %3040 = vmatmul.msk.bf16.gmra.mxu3 %vm1137_vm0, %v4189_v20 }
 0x288   :  { %v1887_v46 = vpop.f32.mrf.mxu2 }
 0x289   :  { %v1888_v55 = vadd.f32 %v1887_v46, %v1839_v63  ;;  %v4982_v7 = vpop.f32.mrf.mxu3  ;;  %v1791_v58 = vpop.f32.mrf.mxu0 }
 0x28a   :  { %v1840_v56 = vpop.f32.mrf.mxu1  ;;  %v1792_v9 = vadd.f32 %v1791_v58, %v4854_v38 }
 0x28b   :  { %v2192_v22 = vmax.f32 %v1888_v55, 0.0  ;;  %v1914_v55 = vadd.f32 %v4903_v48, %v5003_v32 }
 0x28c   :  { %v1841_v59 = vadd.f32 %v1840_v56, %v1792_v9 }
 0x28d   :  { %2256 = vst [vmem:[%s5096_s3 + $0x190] sm:$0xff] %v2192_v22 }
 0x290   :  { %v1889_v51 = vpop.f32.mrf.mxu2 }
 0x291   :  { %v1890_v35 = vadd.f32 %v1889_v51, %v1841_v59  ;;  %v4988_v54 = vpop.f32.mrf.mxu3  ;;  %v1794_v20 = vpop.f32.mrf.mxu0 }
 0x292   :  { %v1843_v24 = vpop.f32.mrf.mxu1  ;;  %v1795_v6 = vadd.f32 %v1794_v20, %v4866_v42 }
 0x293   :  { %v2196_v26 = vmax.f32 %v1890_v35, 0.0 }
 0x294   :  { %1989 = vmatmul.bf16.gmra.mxu0 %v3909_v5  ;;  %2038 = vmatmul.bf16.gmra.mxu1 %v5130_v31  ;;  %v1844_v38 = vadd.f32 %v1843_v24, %v1795_v6  ;;  %v1917_v24 = vadd.f32 %v4914_v53, %v5003_v32 }
 0x295   :  { %2260 = vst [vmem:[%s5096_s3 + $0x1b0] sm:$0xff] %v2196_v26  ;;  %2087 = vmatmul.bf16.gmra.mxu2 %v3913_v11 }
 0x296   :  { %3041 = vmatmul.msk.bf16.gmra.mxu3 %vm1137_vm0, %v4232_v40  ;;  %v1907_v40 = vadd.f32 %v4880_v50, %v5003_v32 }
 0x298   :  { %v1892_v61 = vpop.f32.mrf.mxu2 }
 0x299   :  { %v1893_v19 = vadd.f32 %v1892_v61, %v1844_v38  ;;  %v4999_v21 = vpop.f32.mrf.mxu3  ;;  %v1796_v16 = vpop.f32.mrf.mxu0 }
 0x29a   :  { %v1845_v42 = vpop.f32.mrf.mxu1  ;;  %v1797_v5 = vadd.f32 %v1796_v16, %v4872_v44 }
 0x29b   :  { %v2200_v33 = vmax.f32 %v1893_v19, 0.0 }
 0x29c   :  { %v1846_v11 = vadd.f32 %v1845_v42, %v1797_v5  ;;  %v1919_v5 = vadd.f32 %v4920_v28, %v5003_v32 }
 0x29d   :  { %2264 = vst [vmem:[%s5096_s3 + $0x1d0] sm:$0xff] %v2200_v33 }
 0x2a0   :  { %v1894_v31 = vpop.f32.mrf.mxu2 }
 0x2a1   :  { %v1895_v49 = vadd.f32 %v1894_v31, %v1846_v11  ;;  %v5010_v12 = vpop.f32.mrf.mxu3  ;;  %v1955_v34 = vpop.f32.mrf.mxu0 }
 0x2a2   :  { %v2004_v62 = vpop.f32.mrf.mxu1  ;;  %v1956_v57 = vadd.f32 %v1955_v34, %v1907_v40 }
 0x2a3   :  { %v2204_v3 = vmax.f32 %v1895_v49, 0.0 }
 0x2a4   :  { %v2005_v36 = vadd.f32 %v2004_v62, %v1956_v57 }
 0x2a5   :  { %2268 = vst [vmem:[%s5096_s3 + $0x1f0] sm:$0xff] %v2204_v3 }
 0x2a8   :  { %v2053_v44 = vpop.f32.mrf.mxu2 }
 0x2a9   :  { %v2054_v23 = vadd.f32 %v2053_v44, %v2005_v36  ;;  %v2102_v14 = vpop.f32.mrf.mxu3  ;;  %v1957_v37 = vpop.f32.mrf.mxu0  ;;  %v1922_v36 = vadd.f32 %v4931_v1, %v5003_v32 }
 0x2aa   :  { %v2006_v50 = vpop.f32.mrf.mxu1  ;;  %v1958_v60 = vadd.f32 %v1957_v37, %v1909_v43 }
 0x2ab   :  { %v2103_v27 = vadd.f32 %v2102_v14, %v2054_v23 }
 0x2ac   :  { %v2007_v0 = vadd.f32 %v2006_v50, %v1958_v60 }
 0x2ad   :  { %v2145_v17 = vmax.f32 %v2103_v27, 0.0 }
 0x2af   :  { %2209 = vst [vmem:[%s5096_s3 + $0x18] sm:$0xff] %v2145_v17  ;;  %v1924_v17 = vadd.f32 %v4937_v13, %v5003_v32 }
 0x2b0   :  { %v2055_v10 = vpop.f32.mrf.mxu2 }
 0x2b1   :  { %v2056_v2 = vadd.f32 %v2055_v10, %v2007_v0  ;;  %v2104_v52 = vpop.f32.mrf.mxu3  ;;  %v1960_v47 = vpop.f32.mrf.mxu0 }
 0x2b2   :  { %v2009_v18 = vpop.f32.mrf.mxu1  ;;  %v1961_v15 = vadd.f32 %v1960_v47, %v1912_v4 }
 0x2b3   :  { %v2105_v39 = vadd.f32 %v2104_v52, %v2056_v2 }
 0x2b4   :  { %v2010_v63 = vadd.f32 %v2009_v18, %v1961_v15  ;;  %v1927_v15 = vadd.f32 %v4948_v25, %v5003_v32 }
 0x2b5   :  { %v2149_v29 = vmax.f32 %v2105_v39, 0.0 }
 0x2b7   :  { %2213 = vst [vmem:[%s5096_s3 + $0x38] sm:$0xff] %v2149_v29 }
 0x2b8   :  { %v2058_v46 = vpop.f32.mrf.mxu2 }
 0x2b9   :  { %v2059_v58 = vadd.f32 %v2058_v46, %v2010_v63  ;;  %v2107_v56 = vpop.f32.mrf.mxu3  ;;  %v1962_v22 = vpop.f32.mrf.mxu0 }
 0x2ba   :  { %v2011_v41 = vpop.f32.mrf.mxu1  ;;  %v1963_v59 = vadd.f32 %v1962_v22, %v1914_v55 }
 0x2bb   :  { %v2108_v9 = vadd.f32 %v2107_v56, %v2059_v58 }
 0x2bc   :  { %v2012_v35 = vadd.f32 %v2011_v41, %v1963_v59 }
 0x2bd   :  { %v2153_v51 = vmax.f32 %v2108_v9, 0.0  ;;  %v1929_v9 = vadd.f32 %v4954_v8, %v5003_v32 }
 0x2bf   :  { %2217 = vst [vmem:[%s5096_s3 + $0x58] sm:$0xff] %v2153_v51 }
 0x2c0   :  { %v2060_v20 = vpop.f32.mrf.mxu2 }
 0x2c1   :  { %v2061_v26 = vadd.f32 %v2060_v20, %v2012_v35  ;;  %v2109_v6 = vpop.f32.mrf.mxu3  ;;  %v1965_v38 = vpop.f32.mrf.mxu0 }
 0x2c2   :  { %v2014_v48 = vpop.f32.mrf.mxu1  ;;  %v1966_v19 = vadd.f32 %v1965_v38, %v1917_v24 }
 0x2c3   :  { %v2110_v61 = vadd.f32 %v2109_v6, %v2061_v26 }
 0x2c4   :  { %v2015_v42 = vadd.f32 %v2014_v48, %v1966_v19  ;;  %v1932_v48 = vadd.f32 %v4965_v45, %v5003_v32 }
 0x2c5   :  { %v2157_v16 = vmax.f32 %v2110_v61, 0.0 }
 0x2c7   :  { %2221 = vst [vmem:[%s5096_s3 + $0x78] sm:$0xff] %v2157_v16 }
 0x2c8   :  { %v2063_v33 = vpop.f32.mrf.mxu2 }
 0x2c9   :  { %v2064_v11 = vadd.f32 %v2063_v33, %v2015_v42  ;;  %v2112_v31 = vpop.f32.mrf.mxu3  ;;  %v1967_v40 = vpop.f32.mrf.mxu0 }
 0x2ca   :  { %v2016_v53 = vpop.f32.mrf.mxu1  ;;  %v1968_v34 = vadd.f32 %v1967_v40, %v1919_v5  ;;  %v1934_v40 = vadd.f32 %v4971_v30, %v5003_v32 }
 0x2cb   :  { %v2113_v49 = vadd.f32 %v2112_v31, %v2064_v11 }
 0x2cc   :  { %v2017_v3 = vadd.f32 %v2016_v53, %v1968_v34 }
 0x2cd   :  { %v2161_v62 = vmax.f32 %v2113_v49, 0.0 }
 0x2cf   :  { %2225 = vst [vmem:[%s5096_s3 + $0x98] sm:$0xff] %v2161_v62 }
 0x2d0   :  { %v2065_v57 = vpop.f32.mrf.mxu2 }
 0x2d1   :  { %v2066_v44 = vadd.f32 %v2065_v57, %v2017_v3  ;;  %v2114_v43 = vpop.f32.mrf.mxu3  ;;  %v1970_v23 = vpop.f32.mrf.mxu0 }
 0x2d2   :  { %v2019_v28 = vpop.f32.mrf.mxu1  ;;  %v1971_v37 = vadd.f32 %v1970_v23, %v1922_v36 }
 0x2d3   :  { %v2115_v14 = vadd.f32 %v2114_v43, %v2066_v44  ;;  %v1937_v43 = vadd.f32 %v4982_v7, %v5003_v32 }
 0x2d4   :  { %v2020_v27 = vadd.f32 %v2019_v28, %v1971_v37 }
 0x2d5   :  { %v2165_v50 = vmax.f32 %v2115_v14, 0.0 }
 0x2d7   :  { %2229 = vst [vmem:[%s5096_s3 + $0xb8] sm:$0xff] %v2165_v50 }
 0x2d8   :  { %v2068_v60 = vpop.f32.mrf.mxu2 }
 0x2d9   :  { %v2069_v0 = vadd.f32 %v2068_v60, %v2020_v27  ;;  %v2117_v10 = vpop.f32.mrf.mxu3  ;;  %v1972_v4 = vpop.f32.mrf.mxu0 }
 0x2da   :  { %v2021_v1 = vpop.f32.mrf.mxu1  ;;  %v1973_v52 = vadd.f32 %v1972_v4, %v1924_v17 }
 0x2db   :  { %v2118_v2 = vadd.f32 %v2117_v10, %v2069_v0  ;;  %v1939_v0 = vadd.f32 %v4988_v54, %v5003_v32 }
 0x2dc   :  { %v2022_v18 = vadd.f32 %v2021_v1, %v1973_v52 }
 0x2dd   :  { %v2169_v47 = vmax.f32 %v2118_v2, 0.0 }
 0x2df   :  { %2233 = vst [vmem:[%s5096_s3 + $0xd8] sm:$0xff] %v2169_v47 }
 0x2e0   :  { %v2070_v39 = vpop.f32.mrf.mxu2 }
 0x2e1   :  { %v2071_v29 = vadd.f32 %v2070_v39, %v2022_v18  ;;  %v2119_v63 = vpop.f32.mrf.mxu3  ;;  %v1975_v46 = vpop.f32.mrf.mxu0 }
 0x2e2   :  { %v2024_v13 = vpop.f32.mrf.mxu1  ;;  %v1976_v58 = vadd.f32 %v1975_v46, %v1927_v15  ;;  %v1942_v15 = vadd.f32 %v4999_v21, %v5003_v32 }
 0x2e3   :  { %v2120_v55 = vadd.f32 %v2119_v63, %v2071_v29 }
 0x2e4   :  { %v2025_v22 = vadd.f32 %v2024_v13, %v1976_v58 }
 0x2e5   :  { %v2173_v56 = vmax.f32 %v2120_v55, 0.0 }
 0x2e7   :  { %2237 = vst [vmem:[%s5096_s3 + $0xf8] sm:$0xff] %v2173_v56 }
 0x2e8   :  { %v2073_v41 = vpop.f32.mrf.mxu2 }
 0x2e9   :  { %v2074_v59 = vadd.f32 %v2073_v41, %v2025_v22  ;;  %v2122_v51 = vpop.f32.mrf.mxu3  ;;  %v1977_v35 = vpop.f32.mrf.mxu0  ;;  %v1944_v41 = vadd.f32 %v5010_v12, %v5003_v32 }
 0x2ea   :  { %v2026_v25 = vpop.f32.mrf.mxu1  ;;  %v1978_v24 = vadd.f32 %v1977_v35, %v1929_v9 }
 0x2eb   :  { %v2123_v20 = vadd.f32 %v2122_v51, %v2074_v59 }
 0x2ec   :  { %v2027_v6 = vadd.f32 %v2026_v25, %v1978_v24 }
 0x2ed   :  { %v2177_v26 = vmax.f32 %v2123_v20, 0.0 }
 0x2ef   :  { %2241 = vst [vmem:[%s5096_s3 + $0x118] sm:$0xff] %v2177_v26 }
 0x2f0   :  { %v2075_v38 = vpop.f32.mrf.mxu2 }
 0x2f1   :  { %v2076_v61 = vadd.f32 %v2075_v38, %v2027_v6  ;;  %v2124_v19 = vpop.f32.mrf.mxu3  ;;  %v1980_v16 = vpop.f32.mrf.mxu0 }
 0x2f2   :  { %v2029_v8 = vpop.f32.mrf.mxu1  ;;  %v1981_v33 = vadd.f32 %v1980_v16, %v1932_v48 }
 0x2f3   :  { %v2125_v42 = vadd.f32 %v2124_v19, %v2076_v61 }
 0x2f4   :  { %v2030_v11 = vadd.f32 %v2029_v8, %v1981_v33 }
 0x2f5   :  { %v2181_v5 = vmax.f32 %v2125_v42, 0.0 }
 0x2f7   :  { %2245 = vst [vmem:[%s5096_s3 + $0x138] sm:$0xff] %v2181_v5 }
 0x2f8   :  { %v2078_v31 = vpop.f32.mrf.mxu2 }
 0x2f9   :  { %v2079_v53 = vadd.f32 %v2078_v31, %v2030_v11  ;;  %v2127_v49 = vpop.f32.mrf.mxu3  ;;  %v1982_v34 = vpop.f32.mrf.mxu0 }
 0x2fa   :  { %v2031_v45 = vpop.f32.mrf.mxu1  ;;  %v1983_v3 = vadd.f32 %v1982_v34, %v1934_v40 }
 0x2fb   :  { %v2128_v62 = vadd.f32 %v2127_v49, %v2079_v53 }
 0x2fc   :  { %v2032_v36 = vadd.f32 %v2031_v45, %v1983_v3 }
 0x2fd   :  { %v2185_v57 = vmax.f32 %v2128_v62, 0.0 }
 0x2ff   :  { %2249 = vst [vmem:[%s5096_s3 + $0x158] sm:$0xff] %v2185_v57 }
 0x300   :  { %v2080_v44 = vpop.f32.mrf.mxu2 }
 0x301   :  { %v2081_v23 = vadd.f32 %v2080_v44, %v2032_v36  ;;  %v2129_v28 = vpop.f32.mrf.mxu3  ;;  %v1985_v14 = vpop.f32.mrf.mxu0 }
 0x302   :  { %v2034_v30 = vpop.f32.mrf.mxu1  ;;  %v1986_v50 = vadd.f32 %v1985_v14, %v1937_v43 }
 0x303   :  { %v2130_v37 = vadd.f32 %v2129_v28, %v2081_v23 }
 0x304   :  { %v2035_v60 = vadd.f32 %v2034_v30, %v1986_v50 }
 0x305   :  { %v2189_v27 = vmax.f32 %v2130_v37, 0.0 }
 0x307   :  { %2253 = vst [vmem:[%s5096_s3 + $0x178] sm:$0xff] %v2189_v27 }
 0x308   :  { %v2083_v17 = vpop.f32.mrf.mxu2 }
 0x309   :  { %v2084_v10 = vadd.f32 %v2083_v17, %v2035_v60  ;;  %v2132_v4 = vpop.f32.mrf.mxu3  ;;  %v1987_v1 = vpop.f32.mrf.mxu0 }
 0x30a   :  { %v2036_v7 = vpop.f32.mrf.mxu1  ;;  %v1988_v52 = vadd.f32 %v1987_v1, %v1939_v0 }
 0x30b   :  { %v2133_v2 = vadd.f32 %v2132_v4, %v2084_v10 }
 0x30c   :  { %v2037_v18 = vadd.f32 %v2036_v7, %v1988_v52 }
 0x30d   :  { %v2193_v47 = vmax.f32 %v2133_v2, 0.0 }
 0x30f   :  { %2257 = vst [vmem:[%s5096_s3 + $0x198] sm:$0xff] %v2193_v47 }
 0x310   :  { %v2085_v39 = vpop.f32.mrf.mxu2 }
 0x311   :  { %v2086_v29 = vadd.f32 %v2085_v39, %v2037_v18  ;;  %v2134_v63 = vpop.f32.mrf.mxu3  ;;  %v1990_v46 = vpop.f32.mrf.mxu0 }
 0x312   :  { %v1991_v13 = vadd.f32 %v1990_v46, %v1942_v15  ;;  %v2039_v55 = vpop.f32.mrf.mxu1 }
 0x313   :  { %v2135_v54 = vadd.f32 %v2134_v63, %v2086_v29 }
 0x314   :  { %v2040_v56 = vadd.f32 %v2039_v55, %v1991_v13 }
 0x315   :  { %v2197_v58 = vmax.f32 %v2135_v54, 0.0 }
 0x317   :  { %2261 = vst [vmem:[%s5096_s3 + $0x1b8] sm:$0xff] %v2197_v58 }
 0x318   :  { %v2088_v22 = vpop.f32.mrf.mxu2 }
 0x319   :  { %v2089_v9 = vadd.f32 %v2088_v22, %v2040_v56  ;;  %v2137_v59 = vpop.f32.mrf.mxu3  ;;  %v1992_v51 = vpop.f32.mrf.mxu0 }
 0x31a   :  { %v1993_v35 = vadd.f32 %v1992_v51, %v1944_v41  ;;  %v2041_v20 = vpop.f32.mrf.mxu1 }
 0x31b   :  { %v2138_v21 = vadd.f32 %v2137_v59, %v2089_v9 }
 0x31c   :  { %v2042_v24 = vadd.f32 %v2041_v20, %v1993_v35 }
 0x31d   :  { %v2201_v25 = vmax.f32 %v2138_v21, 0.0 }
 0x31f   :  { %2265 = vst [vmem:[%s5096_s3 + $0x1d8] sm:$0xff] %v2201_v25 }
 0x320   :  { %v2090_v26 = vpop.f32.mrf.mxu2 }
 0x321   :  { %v2091_v6 = vadd.f32 %v2090_v26, %v2042_v24  ;;  %v2139_v38 = vpop.f32.mrf.mxu3 }
 0x323   :  { %v2140_v48 = vadd.f32 %v2139_v38, %v2091_v6 }
 0x325   :  { %v2205_v61 = vmax.f32 %v2140_v48, 0.0 }
 0x327   :  { %2269 = vst [vmem:[%s5096_s3 + $0x1f8] sm:$0xff] %v2205_v61 }

</bundles_post_ra>
